<compile_context>
chip_gen: v5e
topology: v5e:2x2
jax: 0.10.0
libtpu: 0.0.40
codegen_flags: <defaults>
</compile_context>

<pallas_src>
import functools
import math

import jax
import jax.numpy as jnp
from jax import lax
from jax.experimental import pallas as pl
from jax.experimental.pallas import tpu as pltpu


_LN_EPS = 1e-5  # PyTorch nn.LayerNorm default

# Per-block parameter order as seen by the kernel (Q/K/V already fused).
FUSED_PARAM_ORDER = (
    "wqkv", "bqkv", "wo", "bo",
    "ln1_g", "ln1_b",
    "w1", "b1", "w2", "b2",
    "ln2_g", "ln2_b",
)


def _transformer_kernel(num_heads, q_chunk,
                        x_ref,
                        wqkv_ref, bqkv_ref, wo_ref, bo_ref,
                        ln1_g_ref, ln1_b_ref,
                        w1_ref, b1_ref, w2_ref, b2_ref,
                        ln2_g_ref, ln2_b_ref,
                        out_ref,
                        x_sc, q_sc, head_sc):
    """One encoder block per grid step; activation carried in VMEM scratch."""
    blk = pl.program_id(1)

    # Load this batch element's activations into the resident f32 scratch only
    # at the first block; later blocks read the carried residual stream.
    @pl.when(blk == 0)
    def _():
        x_sc[...] = x_ref[...].astype(jnp.float32)

    x = x_sc[...]                                    # [S, D] f32
    S, D = x.shape
    Dh = D // num_heads
    n_chunks = S // q_chunk
    scale = 1.0 / math.sqrt(Dh)

    xb = x.astype(jnp.bfloat16)                      # bf16 operands for the MXU

    # Fused QKV projection: one [S,D]@[D,3D] bf16 matmul, f32 accumulation.
    qkv = (jnp.dot(xb, wqkv_ref[...], preferred_element_type=jnp.float32)
           + bqkv_ref[...])                          # [S, 3D] f32

    # Fold 1/sqrt(Dh) into Q once and park it in a bf16 scratch so q-chunks
    # below are cheap ref-level (dynamic) slices.
    q_sc[...] = (qkv[:, 0:D] * scale).astype(jnp.bfloat16)
    kb = qkv[:, D:2 * D].astype(jnp.bfloat16)        # [S, D] bf16
    vb = qkv[:, 2 * D:3 * D].astype(jnp.bfloat16)    # [S, D] bf16

    # Per-head K/V slices hoisted out of the q-chunk loop (loop-invariant).
    kh_list = [kb[:, h * Dh:(h + 1) * Dh] for h in range(num_heads)]
    vh_list = [vb[:, h * Dh:(h + 1) * Dh] for h in range(num_heads)]

    def attend_chunk(q0):
        qc = q_sc[pl.ds(q0, q_chunk), :]             # [TQ, D] bf16
        heads = []
        for h in range(num_heads):
            qh = qc[:, h * Dh:(h + 1) * Dh]          # [TQ, Dh] bf16
            # q @ k^T without an explicit transpose (contract on Dh of both).
            s = lax.dot_general(qh, kh_list[h], (((1,), (1,)), ((), ())),
                                preferred_element_type=jnp.float32)  # [TQ, S]
            m = jnp.max(s, axis=-1, keepdims=True)
            p = jnp.exp(s - m)                        # <= 1, safe in bf16
            denom = jnp.sum(p, axis=-1, keepdims=True)
            # Deferred normalization: scale the [TQ,Dh] P@V result instead of
            # the [TQ,S] probabilities (EUP reciprocal, VALU-free divide).
            head = jnp.dot(p.astype(jnp.bfloat16), vh_list[h],
                           preferred_element_type=jnp.float32)       # [TQ, Dh]
            heads.append(head * pl.reciprocal(denom, approx=True))
        # ONE lane-dense [TQ, D] bf16 store per chunk (no masked 32-lane vst).
        head_sc[pl.ds(q0, q_chunk), :] = (
            jnp.concatenate(heads, axis=-1).astype(jnp.bfloat16))

    if n_chunks <= 4:
        # Short static trip count (demo shapes): plain unroll, static slices.
        for ci in range(n_chunks):
            attend_chunk(ci * q_chunk)
    else:
        # Long sequences: fori_loop bounds live ranges (avoids vreg spills).
        def body(ci, carry):
            attend_chunk(pl.multiple_of(ci * q_chunk, q_chunk))
            return carry
        lax.fori_loop(0, n_chunks, body, 0)

    # Output projection: one [S,D]@[D,D] bf16 matmul over all heads at once
    # (head_sc is already bf16 — no extra cast pass).
    attn = (jnp.dot(head_sc[...], wo_ref[...],
                    preferred_element_type=jnp.float32) + bo_ref[...])

    # AddNorm 1 (f32 statistics).
    y = x + attn
    mu = jnp.mean(y, axis=-1, keepdims=True)
    var = jnp.mean((y - mu) ** 2, axis=-1, keepdims=True)
    y = (y - mu) * lax.rsqrt(var + _LN_EPS) * ln1_g_ref[...] + ln1_b_ref[...]

    # Position-wise FFN: Linear -> ReLU -> Linear (bf16 MXU operands).
    yb = y.astype(jnp.bfloat16)
    hdn = jnp.maximum(
        jnp.dot(yb, w1_ref[...], preferred_element_type=jnp.float32) + b1_ref[...],
        0.0)
    ffn = (jnp.dot(hdn.astype(jnp.bfloat16), w2_ref[...],
                   preferred_element_type=jnp.float32) + b2_ref[...])

    # AddNorm 2.
    z = y + ffn
    mu2 = jnp.mean(z, axis=-1, keepdims=True)
    var2 = jnp.mean((z - mu2) ** 2, axis=-1, keepdims=True)
    z = (z - mu2) * lax.rsqrt(var2 + _LN_EPS) * ln2_g_ref[...] + ln2_b_ref[...]

    # Carry the residual stream to the next block; emit only after last block.
    x_sc[...] = z

    @pl.when(blk == pl.num_programs(1) - 1)
    def _():
        out_ref[...] = z.astype(out_ref.dtype)


@functools.partial(jax.jit, static_argnames=("num_heads",))
def transformer_forward(x, params, num_heads):
    """Apply all encoder blocks in a single fused pallas_call.

    x: [B, S, D] float32. params: dict of arrays stacked over num_blks.
    """
    B, S, D = x.shape
    nblk = params["wq"].shape[0]
    F = params["w1"].shape[-1]
    assert D % num_heads == 0, "num_hiddens must be divisible by num_heads"
    q_chunk = min(S, 256)
    assert S % q_chunk == 0 and q_chunk % 8 == 0

    # Fuse Q/K/V weights/biases into one [D, 3D] projection per block.
    fused = dict(params)
    fused["wqkv"] = jnp.concatenate(
        [params["wq"], params["wk"], params["wv"]], axis=-1)
    fused["bqkv"] = jnp.concatenate(
        [params["bq"], params["bk"], params["bv"]], axis=-1)
    weight_args = [fused[name] for name in FUSED_PARAM_ORDER]
    for a in weight_args:
        assert a.ndim == 3 and a.shape[0] == nblk

    # x / out: squeeze the batch-1 block dim so the kernel sees [S, D].
    x_spec = pl.BlockSpec((None, S, D), lambda b, k: (b, 0, 0))
    # Per-block weights: stream block k's slab each grid step.
    # TODO(synk): weights are re-streamed once per batch element; blocking
    # several batch elements per grid step would amortize that DMA at large B.
    w_specs = [pl.BlockSpec((None,) + a.shape[1:], lambda b, k: (k, 0, 0))
               for a in weight_args]
    out_specs = pl.BlockSpec((None, S, D), lambda b, k: (b, 0, 0))

    # Derive the VMEM budget from the shapes instead of a fixed constant
    # (v7x has only 64 MiB physical VMEM per TensorCore).
    wbytes = sum(int(a.shape[1]) * int(a.shape[2]) * a.dtype.itemsize
                 for a in weight_args)
    scratch_bytes = S * D * (4 + 2 + 2)            # x_sc f32, q_sc/head_sc bf16
    act_bytes = 2 * 2 * S * D * 4                  # in/out blocks, 2-buffered
    tmp_bytes = q_chunk * S * 4 + S * 3 * D * 4    # score tile + qkv temporaries
    vmem_need = 2 * wbytes + scratch_bytes + act_bytes + tmp_bytes + (8 << 20)
    vmem_limit = int(max(32 << 20, min(vmem_need, 56 << 20)))

    # Advisory cost estimate so XLA schedules surrounding ops sensibly.
    flops = 2 * B * nblk * (S * D * 3 * D + 2 * S * S * D + S * D * D
                            + 2 * S * D * F)
    transcendentals = B * nblk * num_heads * S * S
    bytes_accessed = B * nblk * wbytes + 2 * B * S * D * 4
    cost = pl.CostEstimate(flops=flops, transcendentals=transcendentals,
                           bytes_accessed=bytes_accessed)

    kernel = functools.partial(_transformer_kernel, num_heads, q_chunk)
    return pl.pallas_call(
        kernel,
        out_shape=jax.ShapeDtypeStruct((B, S, D), x.dtype),
        grid_spec=pltpu.PrefetchScalarGridSpec(
            num_scalar_prefetch=0,
            grid=(B, nblk),                   # blocks are the inner (carried) axis
            in_specs=[x_spec] + w_specs,
            out_specs=out_specs,
            scratch_shapes=[
                pltpu.VMEM((S, D), jnp.float32),   # residual stream (carried)
                pltpu.VMEM((S, D), jnp.bfloat16),  # scaled Q
                pltpu.VMEM((S, D), jnp.bfloat16),  # concatenated head outputs
            ],
        ),
        compiler_params=pltpu.CompilerParams(
            # Batch axis feeds megacore / both v7x TCs when B >= 2.
            dimension_semantics=("parallel", "arbitrary"),
            vmem_limit_bytes=vmem_limit),
        cost_estimate=cost,
    )(x, *weight_args)


def init_transformer_params(key, num_hiddens, num_hiddens_ffn, num_blks):
    """Stacked per-block params: weight matrices in bf16, biases/LN in f32."""
    D, F = num_hiddens, num_hiddens_ffn
    ks = jax.random.split(key, 6)

    def lin(k, din, dout):
        w = (jax.random.normal(k, (num_blks, din, dout), jnp.float32)
             * (1.0 / math.sqrt(din))).astype(jnp.bfloat16)
        b = jnp.zeros((num_blks, 1, dout), jnp.float32)   # bias=True
        return w, b

    wq, bq = lin(ks[0], D, D)
    wk, bk = lin(ks[1], D, D)
    wv, bv = lin(ks[2], D, D)
    wo, bo = lin(ks[3], D, D)
    w1, b1 = lin(ks[4], D, F)
    w2, b2 = lin(ks[5], F, D)
    ones_d = jnp.ones((num_blks, 1, D), jnp.float32)
    zeros_d = jnp.zeros((num_blks, 1, D), jnp.float32)
    return dict(
        wq=wq, bq=bq, wk=wk, bk=bk, wv=wv, bv=bv, wo=wo, bo=bo,
        ln1_g=ones_d, ln1_b=zeros_d,
        w1=w1, b1=b1, w2=w2, b2=b2,
        ln2_g=ones_d, ln2_b=zeros_d,
    )


def _layernorm(x, g, b):
    mu = jnp.mean(x, axis=-1, keepdims=True)
    var = jnp.mean((x - mu) ** 2, axis=-1, keepdims=True)
    return (x - mu) * lax.rsqrt(var + _LN_EPS) * g + b


def _reference_forward(x, params, num_heads):
    """Pure-JAX f32 reference of the same encoder stack (sanity check)."""
    B, S, D = x.shape
    nblk = params["wq"].shape[0]
    Dh = D // num_heads
    out = x.astype(jnp.float32)
    for k in range(nblk):
        def lin(v, wname, bname):
            return v @ params[wname][k].astype(jnp.float32) + params[bname][k]
        q = lin(out, "wq", "bq")
        kk = lin(out, "wk", "bk")
        v = lin(out, "wv", "bv")
        def split(t):
            return t.reshape(B, S, num_heads, Dh).transpose(0, 2, 1, 3)
        qh, kh, vh = split(q), split(kk), split(v)
        s = jnp.einsum("bhqd,bhkd->bhqk", qh, kh) / math.sqrt(Dh)
        p = jax.nn.softmax(s, axis=-1)
        o = jnp.einsum("bhqk,bhkd->bhqd", p, vh)
        o = o.transpose(0, 2, 1, 3).reshape(B, S, D)
        attn = o @ params["wo"][k].astype(jnp.float32) + params["bo"][k]
        y = _layernorm(out + attn, params["ln1_g"][k], params["ln1_b"][k])
        h = jax.nn.relu(y @ params["w1"][k].astype(jnp.float32) + params["b1"][k])
        f = h @ params["w2"][k].astype(jnp.float32) + params["b2"][k]
        out = _layernorm(y + f, params["ln2_g"][k], params["ln2_b"][k])
    return out


if __name__ == "__main__":
    # Small but lane-dense shapes (last dims multiples of 128, seq multiple of 8).
    batch, seq = 2, 128
    num_hiddens, num_hiddens_ffn = 128, 256
    num_blks, num_heads, dropout = 2, 4, 0.0   # dropout is identity at inference

    key = jax.random.PRNGKey(0)
    kx, kp = jax.random.split(key)
    X = jax.random.normal(kx, (batch, seq, num_hiddens), dtype=jnp.float32)
    params = init_transformer_params(kp, num_hiddens, num_hiddens_ffn, num_blks)

    out = transformer_forward(X, params, num_heads)
    jax.block_until_ready(out)
    assert out.shape == (batch, seq, num_hiddens)
    assert bool(jnp.all(jnp.isfinite(out)))

    # Loose sanity check vs. a pure-JAX f32 reference (bf16 MXU operands and
    # approx reciprocal introduce ~1e-2-level deviation; only guard gross bugs).
    ref = _reference_forward(X, params, num_heads)
    max_err = float(jnp.max(jnp.abs(out - ref)))
    assert max_err < 0.25, f"max abs error {max_err} too large"

    print("KERNEL_OK")
</pallas_src>

<mosaic_0001>
module attributes {stable_mosaic.version = 11 : i64} {
  func.func @_transformer_kernel(%arg0: i32, %arg1: i32, %arg2: memref<1x128x128xf32, #tpu.memory_space<vmem>>, %arg3: memref<1x128x384xbf16, #tpu.memory_space<vmem>>, %arg4: memref<1x1x384xf32, #tpu.memory_space<vmem>>, %arg5: memref<1x128x128xbf16, #tpu.memory_space<vmem>>, %arg6: memref<1x1x128xf32, #tpu.memory_space<vmem>>, %arg7: memref<1x1x128xf32, #tpu.memory_space<vmem>>, %arg8: memref<1x1x128xf32, #tpu.memory_space<vmem>>, %arg9: memref<1x128x256xbf16, #tpu.memory_space<vmem>>, %arg10: memref<1x1x256xf32, #tpu.memory_space<vmem>>, %arg11: memref<1x256x128xbf16, #tpu.memory_space<vmem>>, %arg12: memref<1x1x128xf32, #tpu.memory_space<vmem>>, %arg13: memref<1x1x128xf32, #tpu.memory_space<vmem>>, %arg14: memref<1x1x128xf32, #tpu.memory_space<vmem>>, %arg15: memref<1x128x128xf32, #tpu.memory_space<vmem>>, %arg16: memref<128x128xf32, #tpu.memory_space<vmem>>, %arg17: memref<128x128xbf16, #tpu.memory_space<vmem>>, %arg18: memref<128x128xbf16, #tpu.memory_space<vmem>>) attributes {dimension_semantics = [#tpu.dimension_semantics<parallel>, #tpu.dimension_semantics<arbitrary>], iteration_bounds = array<i64: 2, 2>, scalar_prefetch = 0 : i64, scratch_operands = 3 : i64, tpu.core_type = #tpu.core_type<tc>, window_params = [{transform_indices = @transform_0, window_bounds = array<i64: 1, 128, 128>}, {transform_indices = @transform_1, window_bounds = array<i64: 1, 128, 384>}, {transform_indices = @transform_2, window_bounds = array<i64: 1, 1, 384>}, {transform_indices = @transform_3, window_bounds = array<i64: 1, 128, 128>}, {transform_indices = @transform_4, window_bounds = array<i64: 1, 1, 128>}, {transform_indices = @transform_5, window_bounds = array<i64: 1, 1, 128>}, {transform_indices = @transform_6, window_bounds = array<i64: 1, 1, 128>}, {transform_indices = @transform_7, window_bounds = array<i64: 1, 128, 256>}, {transform_indices = @transform_8, window_bounds = array<i64: 1, 1, 256>}, {transform_indices = @transform_9, window_bounds = array<i64: 1, 256, 128>}, {transform_indices = @transform_10, window_bounds = array<i64: 1, 1, 128>}, {transform_indices = @transform_11, window_bounds = array<i64: 1, 1, 128>}, {transform_indices = @transform_12, window_bounds = array<i64: 1, 1, 128>}, {transform_indices = @transform_13, window_bounds = array<i64: 1, 128, 128>}]} {
    %c0_i32 = arith.constant 0 : i32
    %0 = arith.cmpi eq, %arg1, %c0_i32 : i32
    %1 = arith.extui %0 : i1 to i32
    %c0_i32_0 = arith.constant 0 : i32
    %2 = arith.cmpi ne, %1, %c0_i32_0 : i32
    scf.if %2 {
      %c0_80 = arith.constant 0 : index
      %c0_81 = arith.constant 0 : index
      %c0_82 = arith.constant 0 : index
      %173 = vector.load %arg2[%c0_80, %c0_81, %c0_82] : memref<1x128x128xf32, #tpu.memory_space<vmem>>, vector<1x128x128xf32>
      %174 = vector.shape_cast %173 : vector<1x128x128xf32> to vector<128x128xf32>
      %c0_83 = arith.constant 0 : index
      %c0_84 = arith.constant 0 : index
      %175 = vector.load %arg16[%c0_83, %c0_84] : memref<128x128xf32, #tpu.memory_space<vmem>>, vector<128x128xf32>
      tpu.vector_store %arg16[%c0_83, %c0_84], %174 {strides = array<i32>} : memref<128x128xf32, #tpu.memory_space<vmem>>, vector<128x128xf32>,
    } else {
    }
    %c0 = arith.constant 0 : index
    %c0_1 = arith.constant 0 : index
    %3 = vector.load %arg16[%c0, %c0_1] : memref<128x128xf32, #tpu.memory_space<vmem>>, vector<128x128xf32>
    %4 = arith.truncf %3 : vector<128x128xf32> to vector<128x128xbf16>
    %c0_2 = arith.constant 0 : index
    %c0_3 = arith.constant 0 : index
    %c0_4 = arith.constant 0 : index
    %5 = vector.load %arg3[%c0_2, %c0_3, %c0_4] : memref<1x128x384xbf16, #tpu.memory_space<vmem>>, vector<1x128x384xbf16>
    %6 = vector.shape_cast %5 : vector<1x128x384xbf16> to vector<128x384xbf16>
    %cst = arith.constant dense<0.000000e+00> : vector<128x384xf32>
    %7 = tpu.matmul %4, %6, %cst {dimension_numbers = #tpu.dot_dimension_numbers<[1], [0], [0], [1], [0, 0, 1, 1], [], []>} : vector<128x128xbf16>, vector<128x384xbf16>, vector<128x384xf32> -> vector<128x384xf32>
    %c0_5 = arith.constant 0 : index
    %c0_6 = arith.constant 0 : index
    %c0_7 = arith.constant 0 : index
    %8 = vector.load %arg4[%c0_5, %c0_6, %c0_7] : memref<1x1x384xf32, #tpu.memory_space<vmem>>, vector<1x1x384xf32>
    %9 = vector.shape_cast %8 : vector<1x1x384xf32> to vector<1x384xf32>
    %10 = vector.broadcast %9 : vector<1x384xf32> to vector<128x384xf32>
    %11 = arith.addf %7, %10 : vector<128x384xf32>
    %12 = vector.extract_strided_slice %11 {offsets = [0, 0], sizes = [128, 128], strides = [1, 1]} : vector<128x384xf32> to vector<128x128xf32>
    %cst_8 = arith.constant 0.176776692 : f32
    %13 = vector.broadcast %cst_8 : f32 to vector<128x128xf32>
    %14 = arith.mulf %12, %13 : vector<128x128xf32>
    %15 = arith.truncf %14 : vector<128x128xf32> to vector<128x128xbf16>
    %c0_9 = arith.constant 0 : index
    %c0_10 = arith.constant 0 : index
    %16 = vector.load %arg17[%c0_9, %c0_10] : memref<128x128xbf16, #tpu.memory_space<vmem>>, vector<128x128xbf16>
    tpu.vector_store %arg17[%c0_9, %c0_10], %15 {strides = array<i32>} : memref<128x128xbf16, #tpu.memory_space<vmem>>, vector<128x128xbf16>,
    %17 = vector.extract_strided_slice %11 {offsets = [0, 128], sizes = [128, 128], strides = [1, 1]} : vector<128x384xf32> to vector<128x128xf32>
    %18 = arith.truncf %17 : vector<128x128xf32> to vector<128x128xbf16>
    %19 = vector.extract_strided_slice %11 {offsets = [0, 256], sizes = [128, 128], strides = [1, 1]} : vector<128x384xf32> to vector<128x128xf32>
    %20 = arith.truncf %19 : vector<128x128xf32> to vector<128x128xbf16>
    %21 = vector.extract_strided_slice %18 {offsets = [0, 0], sizes = [128, 32], strides = [1, 1]} : vector<128x128xbf16> to vector<128x32xbf16>
    %22 = vector.extract_strided_slice %18 {offsets = [0, 32], sizes = [128, 32], strides = [1, 1]} : vector<128x128xbf16> to vector<128x32xbf16>
    %23 = vector.extract_strided_slice %18 {offsets = [0, 64], sizes = [128, 32], strides = [1, 1]} : vector<128x128xbf16> to vector<128x32xbf16>
    %24 = vector.extract_strided_slice %18 {offsets = [0, 96], sizes = [128, 32], strides = [1, 1]} : vector<128x128xbf16> to vector<128x32xbf16>
    %25 = vector.extract_strided_slice %20 {offsets = [0, 0], sizes = [128, 32], strides = [1, 1]} : vector<128x128xbf16> to vector<128x32xbf16>
    %26 = vector.extract_strided_slice %20 {offsets = [0, 32], sizes = [128, 32], strides = [1, 1]} : vector<128x128xbf16> to vector<128x32xbf16>
    %27 = vector.extract_strided_slice %20 {offsets = [0, 64], sizes = [128, 32], strides = [1, 1]} : vector<128x128xbf16> to vector<128x32xbf16>
    %28 = vector.extract_strided_slice %20 {offsets = [0, 96], sizes = [128, 32], strides = [1, 1]} : vector<128x128xbf16> to vector<128x32xbf16>
    %c0_11 = arith.constant 0 : index
    %c0_12 = arith.constant 0 : index
    %29 = vector.load %arg17[%c0_11, %c0_12] : memref<128x128xbf16, #tpu.memory_space<vmem>>, vector<128x128xbf16>
    %30 = vector.extract_strided_slice %29 {offsets = [0, 0], sizes = [128, 32], strides = [1, 1]} : vector<128x128xbf16> to vector<128x32xbf16>
    %cst_13 = arith.constant dense<0.000000e+00> : vector<128x128xf32>
    %31 = tpu.matmul %30, %21, %cst_13 {dimension_numbers = #tpu.dot_dimension_numbers<[1], [1], [0], [0], [0, 0, 1, 0], [], []>} : vector<128x32xbf16>, vector<128x32xbf16>, vector<128x128xf32> -> vector<128x128xf32>
    %cst_14 = arith.constant dense<0xFF800000> : vector<128xf32>
    %32 = vector.multi_reduction <maximumf>, %31, %cst_14 [1] : vector<128x128xf32> to vector<128xf32>
    %33 = vector.shape_cast %32 : vector<128xf32> to vector<128x1xf32>
    %34 = vector.broadcast %33 : vector<128x1xf32> to vector<128x128xf32>
    %35 = arith.subf %31, %34 : vector<128x128xf32>
    %36 = math.exp %35 : vector<128x128xf32>
    %cst_15 = arith.constant dense<0.000000e+00> : vector<128xf32>
    %37 = vector.multi_reduction <add>, %36, %cst_15 [1] : vector<128x128xf32> to vector<128xf32>
    %38 = vector.shape_cast %37 : vector<128xf32> to vector<128x1xf32>
    %39 = arith.truncf %36 : vector<128x128xf32> to vector<128x128xbf16>
    %cst_16 = arith.constant dense<0.000000e+00> : vector<128x32xf32>
    %40 = tpu.matmul %39, %25, %cst_16 {dimension_numbers = #tpu.dot_dimension_numbers<[1], [0], [0], [1], [0, 0, 1, 1], [], []>} : vector<128x128xbf16>, vector<128x32xbf16>, vector<128x32xf32> -> vector<128x32xf32>
    %41 = tpu.reciprocal %38 {approx = true} : vector<128x1xf32> -> vector<128x1xf32>
    %42 = vector.broadcast %41 : vector<128x1xf32> to vector<128x32xf32>
    %43 = arith.mulf %40, %42 : vector<128x32xf32>
    %44 = vector.extract_strided_slice %29 {offsets = [0, 32], sizes = [128, 32], strides = [1, 1]} : vector<128x128xbf16> to vector<128x32xbf16>
    %cst_17 = arith.constant dense<0.000000e+00> : vector<128x128xf32>
    %45 = tpu.matmul %44, %22, %cst_17 {dimension_numbers = #tpu.dot_dimension_numbers<[1], [1], [0], [0], [0, 0, 1, 0], [], []>} : vector<128x32xbf16>, vector<128x32xbf16>, vector<128x128xf32> -> vector<128x128xf32>
    %cst_18 = arith.constant dense<0xFF800000> : vector<128xf32>
    %46 = vector.multi_reduction <maximumf>, %45, %cst_18 [1] : vector<128x128xf32> to vector<128xf32>
    %47 = vector.shape_cast %46 : vector<128xf32> to vector<128x1xf32>
    %48 = vector.broadcast %47 : vector<128x1xf32> to vector<128x128xf32>
    %49 = arith.subf %45, %48 : vector<128x128xf32>
    %50 = math.exp %49 : vector<128x128xf32>
    %cst_19 = arith.constant dense<0.000000e+00> : vector<128xf32>
    %51 = vector.multi_reduction <add>, %50, %cst_19 [1] : vector<128x128xf32> to vector<128xf32>
    %52 = vector.shape_cast %51 : vector<128xf32> to vector<128x1xf32>
    %53 = arith.truncf %50 : vector<128x128xf32> to vector<128x128xbf16>
    %cst_20 = arith.constant dense<0.000000e+00> : vector<128x32xf32>
    %54 = tpu.matmul %53, %26, %cst_20 {dimension_numbers = #tpu.dot_dimension_numbers<[1], [0], [0], [1], [0, 0, 1, 1], [], []>} : vector<128x128xbf16>, vector<128x32xbf16>, vector<128x32xf32> -> vector<128x32xf32>
    %55 = tpu.reciprocal %52 {approx = true} : vector<128x1xf32> -> vector<128x1xf32>
    %56 = vector.broadcast %55 : vector<128x1xf32> to vector<128x32xf32>
    %57 = arith.mulf %54, %56 : vector<128x32xf32>
    %58 = vector.extract_strided_slice %29 {offsets = [0, 64], sizes = [128, 32], strides = [1, 1]} : vector<128x128xbf16> to vector<128x32xbf16>
    %cst_21 = arith.constant dense<0.000000e+00> : vector<128x128xf32>
    %59 = tpu.matmul %58, %23, %cst_21 {dimension_numbers = #tpu.dot_dimension_numbers<[1], [1], [0], [0], [0, 0, 1, 0], [], []>} : vector<128x32xbf16>, vector<128x32xbf16>, vector<128x128xf32> -> vector<128x128xf32>
    %cst_22 = arith.constant dense<0xFF800000> : vector<128xf32>
    %60 = vector.multi_reduction <maximumf>, %59, %cst_22 [1] : vector<128x128xf32> to vector<128xf32>
    %61 = vector.shape_cast %60 : vector<128xf32> to vector<128x1xf32>
    %62 = vector.broadcast %61 : vector<128x1xf32> to vector<128x128xf32>
    %63 = arith.subf %59, %62 : vector<128x128xf32>
    %64 = math.exp %63 : vector<128x128xf32>
    %cst_23 = arith.constant dense<0.000000e+00> : vector<128xf32>
    %65 = vector.multi_reduction <add>, %64, %cst_23 [1] : vector<128x128xf32> to vector<128xf32>
    %66 = vector.shape_cast %65 : vector<128xf32> to vector<128x1xf32>
    %67 = arith.truncf %64 : vector<128x128xf32> to vector<128x128xbf16>
    %cst_24 = arith.constant dense<0.000000e+00> : vector<128x32xf32>
    %68 = tpu.matmul %67, %27, %cst_24 {dimension_numbers = #tpu.dot_dimension_numbers<[1], [0], [0], [1], [0, 0, 1, 1], [], []>} : vector<128x128xbf16>, vector<128x32xbf16>, vector<128x32xf32> -> vector<128x32xf32>
    %69 = tpu.reciprocal %66 {approx = true} : vector<128x1xf32> -> vector<128x1xf32>
    %70 = vector.broadcast %69 : vector<128x1xf32> to vector<128x32xf32>
    %71 = arith.mulf %68, %70 : vector<128x32xf32>
    %72 = vector.extract_strided_slice %29 {offsets = [0, 96], sizes = [128, 32], strides = [1, 1]} : vector<128x128xbf16> to vector<128x32xbf16>
    %cst_25 = arith.constant dense<0.000000e+00> : vector<128x128xf32>
    %73 = tpu.matmul %72, %24, %cst_25 {dimension_numbers = #tpu.dot_dimension_numbers<[1], [1], [0], [0], [0, 0, 1, 0], [], []>} : vector<128x32xbf16>, vector<128x32xbf16>, vector<128x128xf32> -> vector<128x128xf32>
    %cst_26 = arith.constant dense<0xFF800000> : vector<128xf32>
    %74 = vector.multi_reduction <maximumf>, %73, %cst_26 [1] : vector<128x128xf32> to vector<128xf32>
    %75 = vector.shape_cast %74 : vector<128xf32> to vector<128x1xf32>
    %76 = vector.broadcast %75 : vector<128x1xf32> to vector<128x128xf32>
    %77 = arith.subf %73, %76 : vector<128x128xf32>
    %78 = math.exp %77 : vector<128x128xf32>
    %cst_27 = arith.constant dense<0.000000e+00> : vector<128xf32>
    %79 = vector.multi_reduction <add>, %78, %cst_27 [1] : vector<128x128xf32> to vector<128xf32>
    %80 = vector.shape_cast %79 : vector<128xf32> to vector<128x1xf32>
    %81 = arith.truncf %78 : vector<128x128xf32> to vector<128x128xbf16>
    %cst_28 = arith.constant dense<0.000000e+00> : vector<128x32xf32>
    %82 = tpu.matmul %81, %28, %cst_28 {dimension_numbers = #tpu.dot_dimension_numbers<[1], [0], [0], [1], [0, 0, 1, 1], [], []>} : vector<128x128xbf16>, vector<128x32xbf16>, vector<128x32xf32> -> vector<128x32xf32>
    %83 = tpu.reciprocal %80 {approx = true} : vector<128x1xf32> -> vector<128x1xf32>
    %84 = vector.broadcast %83 : vector<128x1xf32> to vector<128x32xf32>
    %85 = arith.mulf %82, %84 : vector<128x32xf32>
    %86 = tpu.concatenate %43, %57, %71, %85 in 1 : vector<128x32xf32>, vector<128x32xf32>, vector<128x32xf32>, vector<128x32xf32> -> vector<128x128xf32>
    %87 = arith.truncf %86 : vector<128x128xf32> to vector<128x128xbf16>
    %c0_29 = arith.constant 0 : index
    %c0_30 = arith.constant 0 : index
    %88 = vector.load %arg18[%c0_29, %c0_30] : memref<128x128xbf16, #tpu.memory_space<vmem>>, vector<128x128xbf16>
    tpu.vector_store %arg18[%c0_29, %c0_30], %87 {strides = array<i32>} : memref<128x128xbf16, #tpu.memory_space<vmem>>, vector<128x128xbf16>,
    %c0_31 = arith.constant 0 : index
    %c0_32 = arith.constant 0 : index
    %89 = vector.load %arg18[%c0_31, %c0_32] : memref<128x128xbf16, #tpu.memory_space<vmem>>, vector<128x128xbf16>
    %c0_33 = arith.constant 0 : index
    %c0_34 = arith.constant 0 : index
    %c0_35 = arith.constant 0 : index
    %90 = vector.load %arg5[%c0_33, %c0_34, %c0_35] : memref<1x128x128xbf16, #tpu.memory_space<vmem>>, vector<1x128x128xbf16>
    %91 = vector.shape_cast %90 : vector<1x128x128xbf16> to vector<128x128xbf16>
    %cst_36 = arith.constant dense<0.000000e+00> : vector<128x128xf32>
    %92 = tpu.matmul %89, %91, %cst_36 {dimension_numbers = #tpu.dot_dimension_numbers<[1], [0], [0], [1], [0, 0, 1, 1], [], []>} : vector<128x128xbf16>, vector<128x128xbf16>, vector<128x128xf32> -> vector<128x128xf32>
    %c0_37 = arith.constant 0 : index
    %c0_38 = arith.constant 0 : index
    %c0_39 = arith.constant 0 : index
    %93 = vector.load %arg6[%c0_37, %c0_38, %c0_39] : memref<1x1x128xf32, #tpu.memory_space<vmem>>, vector<1x1x128xf32>
    %94 = vector.shape_cast %93 : vector<1x1x128xf32> to vector<1x128xf32>
    %95 = vector.broadcast %94 : vector<1x128xf32> to vector<128x128xf32>
    %96 = arith.addf %92, %95 : vector<128x128xf32>
    %97 = arith.addf %3, %96 : vector<128x128xf32>
    %cst_40 = arith.constant dense<0.000000e+00> : vector<128xf32>
    %98 = vector.multi_reduction <add>, %97, %cst_40 [1] : vector<128x128xf32> to vector<128xf32>
    %99 = vector.shape_cast %98 : vector<128xf32> to vector<128x1xf32>
    %cst_41 = arith.constant 1.280000e+02 : f32
    %100 = vector.broadcast %cst_41 : f32 to vector<128x1xf32>
    %101 = arith.divf %99, %100 : vector<128x1xf32>
    %102 = vector.broadcast %101 : vector<128x1xf32> to vector<128x128xf32>
    %103 = arith.subf %97, %102 : vector<128x128xf32>
    %104 = arith.mulf %103, %103 : vector<128x128xf32>
    %cst_42 = arith.constant dense<0.000000e+00> : vector<128xf32>
    %105 = vector.multi_reduction <add>, %104, %cst_42 [1] : vector<128x128xf32> to vector<128xf32>
    %106 = vector.shape_cast %105 : vector<128xf32> to vector<128x1xf32>
    %cst_43 = arith.constant 1.280000e+02 : f32
    %107 = vector.broadcast %cst_43 : f32 to vector<128x1xf32>
    %108 = arith.divf %106, %107 : vector<128x1xf32>
    %109 = vector.broadcast %101 : vector<128x1xf32> to vector<128x128xf32>
    %110 = arith.subf %97, %109 : vector<128x128xf32>
    %cst_44 = arith.constant 9.99999974E-6 : f32
    %111 = vector.broadcast %cst_44 : f32 to vector<128x1xf32>
    %112 = arith.addf %108, %111 : vector<128x1xf32>
    %113 = math.rsqrt %112 : vector<128x1xf32>
    %114 = vector.broadcast %113 : vector<128x1xf32> to vector<128x128xf32>
    %115 = arith.mulf %110, %114 : vector<128x128xf32>
    %c0_45 = arith.constant 0 : index
    %c0_46 = arith.constant 0 : index
    %c0_47 = arith.constant 0 : index
    %116 = vector.load %arg7[%c0_45, %c0_46, %c0_47] : memref<1x1x128xf32, #tpu.memory_space<vmem>>, vector<1x1x128xf32>
    %117 = vector.shape_cast %116 : vector<1x1x128xf32> to vector<1x128xf32>
    %118 = vector.broadcast %117 : vector<1x128xf32> to vector<128x128xf32>
    %119 = arith.mulf %115, %118 : vector<128x128xf32>
    %c0_48 = arith.constant 0 : index
    %c0_49 = arith.constant 0 : index
    %c0_50 = arith.constant 0 : index
    %120 = vector.load %arg8[%c0_48, %c0_49, %c0_50] : memref<1x1x128xf32, #tpu.memory_space<vmem>>, vector<1x1x128xf32>
    %121 = vector.shape_cast %120 : vector<1x1x128xf32> to vector<1x128xf32>
    %122 = vector.broadcast %121 : vector<1x128xf32> to vector<128x128xf32>
    %123 = arith.addf %119, %122 : vector<128x128xf32>
    %124 = arith.truncf %123 : vector<128x128xf32> to vector<128x128xbf16>
    %c0_51 = arith.constant 0 : index
    %c0_52 = arith.constant 0 : index
    %c0_53 = arith.constant 0 : index
    %125 = vector.load %arg9[%c0_51, %c0_52, %c0_53] : memref<1x128x256xbf16, #tpu.memory_space<vmem>>, vector<1x128x256xbf16>
    %126 = vector.shape_cast %125 : vector<1x128x256xbf16> to vector<128x256xbf16>
    %cst_54 = arith.constant dense<0.000000e+00> : vector<128x256xf32>
    %127 = tpu.matmul %124, %126, %cst_54 {dimension_numbers = #tpu.dot_dimension_numbers<[1], [0], [0], [1], [0, 0, 1, 1], [], []>} : vector<128x128xbf16>, vector<128x256xbf16>, vector<128x256xf32> -> vector<128x256xf32>
    %c0_55 = arith.constant 0 : index
    %c0_56 = arith.constant 0 : index
    %c0_57 = arith.constant 0 : index
    %128 = vector.load %arg10[%c0_55, %c0_56, %c0_57] : memref<1x1x256xf32, #tpu.memory_space<vmem>>, vector<1x1x256xf32>
    %129 = vector.shape_cast %128 : vector<1x1x256xf32> to vector<1x256xf32>
    %130 = vector.broadcast %129 : vector<1x256xf32> to vector<128x256xf32>
    %131 = arith.addf %127, %130 : vector<128x256xf32>
    %cst_58 = arith.constant 0.000000e+00 : f32
    %132 = vector.broadcast %cst_58 : f32 to vector<128x256xf32>
    %133 = arith.maximumf %131, %132 : vector<128x256xf32>
    %134 = arith.truncf %133 : vector<128x256xf32> to vector<128x256xbf16>
    %c0_59 = arith.constant 0 : index
    %c0_60 = arith.constant 0 : index
    %c0_61 = arith.constant 0 : index
    %135 = vector.load %arg11[%c0_59, %c0_60, %c0_61] : memref<1x256x128xbf16, #tpu.memory_space<vmem>>, vector<1x256x128xbf16>
    %136 = vector.shape_cast %135 : vector<1x256x128xbf16> to vector<256x128xbf16>
    %cst_62 = arith.constant dense<0.000000e+00> : vector<128x128xf32>
    %137 = tpu.matmul %134, %136, %cst_62 {dimension_numbers = #tpu.dot_dimension_numbers<[1], [0], [0], [1], [0, 0, 1, 1], [], []>} : vector<128x256xbf16>, vector<256x128xbf16>, vector<128x128xf32> -> vector<128x128xf32>
    %c0_63 = arith.constant 0 : index
    %c0_64 = arith.constant 0 : index
    %c0_65 = arith.constant 0 : index
    %138 = vector.load %arg12[%c0_63, %c0_64, %c0_65] : memref<1x1x128xf32, #tpu.memory_space<vmem>>, vector<1x1x128xf32>
    %139 = vector.shape_cast %138 : vector<1x1x128xf32> to vector<1x128xf32>
    %140 = vector.broadcast %139 : vector<1x128xf32> to vector<128x128xf32>
    %141 = arith.addf %137, %140 : vector<128x128xf32>
    %142 = arith.addf %123, %141 : vector<128x128xf32>
    %cst_66 = arith.constant dense<0.000000e+00> : vector<128xf32>
    %143 = vector.multi_reduction <add>, %142, %cst_66 [1] : vector<128x128xf32> to vector<128xf32>
    %144 = vector.shape_cast %143 : vector<128xf32> to vector<128x1xf32>
    %cst_67 = arith.constant 1.280000e+02 : f32
    %145 = vector.broadcast %cst_67 : f32 to vector<128x1xf32>
    %146 = arith.divf %144, %145 : vector<128x1xf32>
    %147 = vector.broadcast %146 : vector<128x1xf32> to vector<128x128xf32>
    %148 = arith.subf %142, %147 : vector<128x128xf32>
    %149 = arith.mulf %148, %148 : vector<128x128xf32>
    %cst_68 = arith.constant dense<0.000000e+00> : vector<128xf32>
    %150 = vector.multi_reduction <add>, %149, %cst_68 [1] : vector<128x128xf32> to vector<128xf32>
    %151 = vector.shape_cast %150 : vector<128xf32> to vector<128x1xf32>
    %cst_69 = arith.constant 1.280000e+02 : f32
    %152 = vector.broadcast %cst_69 : f32 to vector<128x1xf32>
    %153 = arith.divf %151, %152 : vector<128x1xf32>
    %154 = vector.broadcast %146 : vector<128x1xf32> to vector<128x128xf32>
    %155 = arith.subf %142, %154 : vector<128x128xf32>
    %cst_70 = arith.constant 9.99999974E-6 : f32
    %156 = vector.broadcast %cst_70 : f32 to vector<128x1xf32>
    %157 = arith.addf %153, %156 : vector<128x1xf32>
    %158 = math.rsqrt %157 : vector<128x1xf32>
    %159 = vector.broadcast %158 : vector<128x1xf32> to vector<128x128xf32>
    %160 = arith.mulf %155, %159 : vector<128x128xf32>
    %c0_71 = arith.constant 0 : index
    %c0_72 = arith.constant 0 : index
    %c0_73 = arith.constant 0 : index
    %161 = vector.load %arg13[%c0_71, %c0_72, %c0_73] : memref<1x1x128xf32, #tpu.memory_space<vmem>>, vector<1x1x128xf32>
    %162 = vector.shape_cast %161 : vector<1x1x128xf32> to vector<1x128xf32>
    %163 = vector.broadcast %162 : vector<1x128xf32> to vector<128x128xf32>
    %164 = arith.mulf %160, %163 : vector<128x128xf32>
    %c0_74 = arith.constant 0 : index
    %c0_75 = arith.constant 0 : index
    %c0_76 = arith.constant 0 : index
    %165 = vector.load %arg14[%c0_74, %c0_75, %c0_76] : memref<1x1x128xf32, #tpu.memory_space<vmem>>, vector<1x1x128xf32>
    %166 = vector.shape_cast %165 : vector<1x1x128xf32> to vector<1x128xf32>
    %167 = vector.broadcast %166 : vector<1x128xf32> to vector<128x128xf32>
    %168 = arith.addf %164, %167 : vector<128x128xf32>
    %c0_77 = arith.constant 0 : index
    %c0_78 = arith.constant 0 : index
    %169 = vector.load %arg16[%c0_77, %c0_78] : memref<128x128xf32, #tpu.memory_space<vmem>>, vector<128x128xf32>
    tpu.vector_store %arg16[%c0_77, %c0_78], %168 {strides = array<i32>} : memref<128x128xf32, #tpu.memory_space<vmem>>, vector<128x128xf32>,
    %c1_i32 = arith.constant 1 : i32
    %170 = arith.cmpi eq, %arg1, %c1_i32 : i32
    %171 = arith.extui %170 : i1 to i32
    %c0_i32_79 = arith.constant 0 : i32
    %172 = arith.cmpi ne, %171, %c0_i32_79 : i32
    scf.if %172 {
      %c0_80 = arith.constant 0 : index
      %c0_81 = arith.constant 0 : index
      %c0_82 = arith.constant 0 : index
      %173 = vector.load %arg15[%c0_80, %c0_81, %c0_82] : memref<1x128x128xf32, #tpu.memory_space<vmem>>, vector<1x128x128xf32>
      %174 = vector.shape_cast %173 : vector<1x128x128xf32> to vector<128x128xf32>
      %175 = vector.shape_cast %168 : vector<128x128xf32> to vector<1x128x128xf32>
      tpu.vector_store %arg15[%c0_80, %c0_81, %c0_82], %175 {strides = array<i32>} : memref<1x128x128xf32, #tpu.memory_space<vmem>>, vector<1x128x128xf32>,
    } else {
    }
    return
  }
  func.func @transform_0(%arg0: i32, %arg1: i32) -> (i32, i32, i32) {
    %c0_i32 = arith.constant 0 : i32
    %c0_i32_0 = arith.constant 0 : i32
    %c0_i32_1 = arith.constant 0 : i32
    return %arg0, %c0_i32, %c0_i32_0 : i32, i32, i32
  }
  func.func @transform_1(%arg0: i32, %arg1: i32) -> (i32, i32, i32) {
    %c0_i32 = arith.constant 0 : i32
    %c0_i32_0 = arith.constant 0 : i32
    %c0_i32_1 = arith.constant 0 : i32
    return %arg1, %c0_i32, %c0_i32_0 : i32, i32, i32
  }
  func.func @transform_2(%arg0: i32, %arg1: i32) -> (i32, i32, i32) {
    %c0_i32 = arith.constant 0 : i32
    %c0_i32_0 = arith.constant 0 : i32
    %c0_i32_1 = arith.constant 0 : i32
    return %arg1, %c0_i32, %c0_i32_0 : i32, i32, i32
  }
  func.func @transform_3(%arg0: i32, %arg1: i32) -> (i32, i32, i32) {
    %c0_i32 = arith.constant 0 : i32
    %c0_i32_0 = arith.constant 0 : i32
    %c0_i32_1 = arith.constant 0 : i32
    return %arg1, %c0_i32, %c0_i32_0 : i32, i32, i32
  }
  func.func @transform_4(%arg0: i32, %arg1: i32) -> (i32, i32, i32) {
    %c0_i32 = arith.constant 0 : i32
    %c0_i32_0 = arith.constant 0 : i32
    %c0_i32_1 = arith.constant 0 : i32
    return %arg1, %c0_i32, %c0_i32_0 : i32, i32, i32
  }
  func.func @transform_5(%arg0: i32, %arg1: i32) -> (i32, i32, i32) {
    %c0_i32 = arith.constant 0 : i32
    %c0_i32_0 = arith.constant 0 : i32
    %c0_i32_1 = arith.constant 0 : i32
    return %arg1, %c0_i32, %c0_i32_0 : i32, i32, i32
  }
  func.func @transform_6(%arg0: i32, %arg1: i32) -> (i32, i32, i32) {
    %c0_i32 = arith.constant 0 : i32
    %c0_i32_0 = arith.constant 0 : i32
    %c0_i32_1 = arith.constant 0 : i32
    return %arg1, %c0_i32, %c0_i32_0 : i32, i32, i32
  }
  func.func @transform_7(%arg0: i32, %arg1: i32) -> (i32, i32, i32) {
    %c0_i32 = arith.constant 0 : i32
    %c0_i32_0 = arith.constant 0 : i32
    %c0_i32_1 = arith.constant 0 : i32
    return %arg1, %c0_i32, %c0_i32_0 : i32, i32, i32
  }
  func.func @transform_8(%arg0: i32, %arg1: i32) -> (i32, i32, i32) {
    %c0_i32 = arith.constant 0 : i32
    %c0_i32_0 = arith.constant 0 : i32
    %c0_i32_1 = arith.constant 0 : i32
    return %arg1, %c0_i32, %c0_i32_0 : i32, i32, i32
  }
  func.func @transform_9(%arg0: i32, %arg1: i32) -> (i32, i32, i32) {
    %c0_i32 = arith.constant 0 : i32
    %c0_i32_0 = arith.constant 0 : i32
    %c0_i32_1 = arith.constant 0 : i32
    return %arg1, %c0_i32, %c0_i32_0 : i32, i32, i32
  }
  func.func @transform_10(%arg0: i32, %arg1: i32) -> (i32, i32, i32) {
    %c0_i32 = arith.constant 0 : i32
    %c0_i32_0 = arith.constant 0 : i32
    %c0_i32_1 = arith.constant 0 : i32
    return %arg1, %c0_i32, %c0_i32_0 : i32, i32, i32
  }
  func.func @transform_11(%arg0: i32, %arg1: i32) -> (i32, i32, i32) {
    %c0_i32 = arith.constant 0 : i32
    %c0_i32_0 = arith.constant 0 : i32
    %c0_i32_1 = arith.constant 0 : i32
    return %arg1, %c0_i32, %c0_i32_0 : i32, i32, i32
  }
  func.func @transform_12(%arg0: i32, %arg1: i32) -> (i32, i32, i32) {
    %c0_i32 = arith.constant 0 : i32
    %c0_i32_0 = arith.constant 0 : i32
    %c0_i32_1 = arith.constant 0 : i32
    return %arg1, %c0_i32, %c0_i32_0 : i32, i32, i32
  }
  func.func @transform_13(%arg0: i32, %arg1: i32) -> (i32, i32, i32) {
    %c0_i32 = arith.constant 0 : i32
    %c0_i32_0 = arith.constant 0 : i32
    %c0_i32_1 = arith.constant 0 : i32
    return %arg0, %c0_i32, %c0_i32_0 : i32, i32, i32
  }
}

</mosaic_0001>

<bundles_post_ra>
// kernel: transformer_forward.1
= control target key start
LH: loop header
LB: loop body
LE: loop exit
PB: predicated region body
PF: predicated region fallthrough
CT: control target
= control target key end

     0   :  { %s8216_s0 = inlined_call_operand.vmem [shape: f32[2,128,128], index: 0, kind: input, shape index: {}]   ;;  %s8217_s1 = inlined_call_operand.vmem [shape: bf16[2,128,384], index: 1, kind: input, shape index: {}]   ;;  %s8218_s2 = inlined_call_operand.vmem [shape: f32[2,1,384], index: 2, kind: input, shape index: {}]   ;;  %s8219_s3 = inlined_call_operand.hbm [shape: bf16[2,128,128], index: 3, kind: input, shape index: {}]   ;;  %s8220_s4 = inlined_call_operand.vmem [shape: f32[2,1,128], index: 4, kind: input, shape index: {}]   ;;  %s8221_s5 = inlined_call_operand.vmem [shape: f32[2,1,128], index: 5, kind: input, shape index: {}]   ;;  %s8222_s6 = inlined_call_operand.vmem [shape: f32[2,1,128], index: 6, kind: input, shape index: {}]   ;;  %s8223_s7 = inlined_call_operand.vmem [shape: bf16[2,128,256], index: 7, kind: input, shape index: {}]   ;;  %s8224_s8 = inlined_call_operand.vmem [shape: f32[2,1,256], index: 8, kind: input, shape index: {}]   ;;  %s8225_s9 = inlined_call_operand.vmem [shape: bf16[2,256,128], index: 9, kind: input, shape index: {}]   ;;  %s8226_s10 = inlined_call_operand.vmem [shape: f32[2,1,128], index: 10, kind: input, shape index: {}]   ;;  %s8227_s11 = inlined_call_operand.vmem [shape: f32[2,1,128], index: 11, kind: input, shape index: {}]   ;;  %s8228_s12 = inlined_call_operand.vmem [shape: f32[2,1,128], index: 12, kind: input, shape index: {}]   ;;  %s8229_s13 = inlined_call_operand.hbm [shape: f32[2,128,128], index: 13, kind: output, shape index: {}]  }
   0x1   :  { %8252 = sst [smem:[#allocation41_spill]] %s8216_s0 }
   0x2   :  { %8253 = sst [smem:[#allocation42_spill]] %s8217_s1 }
   0x3   :  { %8254 = sst [smem:[#allocation43_spill]] %s8218_s2 }
   0x4   :  { %8255 = sst [smem:[#allocation44_spill]] %s8219_s3 }
   0x5   :  { %8256 = sst [smem:[#allocation45_spill]] %s8221_s5 }
   0x6   :  { %8257 = sst [smem:[#allocation46_spill]] %s8222_s6 }
   0x7   :  { %8258 = sst [smem:[#allocation47_spill]] %s8223_s7 }
   0x8   :  { %8259 = sst [smem:[#allocation48_spill]] %s8225_s9 }
   0x9   :  { %8260 = sst [smem:[#allocation49_spill]] %s8226_s10 }
   0xa   :  { %8261 = sst [smem:[#allocation50_spill]] %s8227_s11 }
   0xb   :  { %8262 = sst [smem:[#allocation51_spill]] %s8228_s12 }
   0xc   :  { %8263 = sst [smem:[#allocation52_spill]] %s8229_s13 }
   0xd   :  { %18 = vsyncpa [#allocation6], 0 }
   0xe   :  { %20 = vsyncpa [#allocation6 + $0x1], 0 }
   0xf   :  { %21 = vsyncpa [#allocation7], 0 }
  0x10   :  { %23 = vsyncpa [#allocation7 + $0x1], 0  ;;  %s5965_s25 = smov 0   ;;  %s5967_s26 = smov 0  }
  0x11   :  { %s5969_s27 = smov 0   ;;  %s5971_s28 = smov 0  }
  0x12   :  { %s5973_s29 = smov 0   ;;  %s5975_s30 = smov 0  }
  0x13   :  { %s5977_s14 = smov 0   ;;  %s5979_s15 = smov 0  }
  0x14   :  { %s5981_s16 = smov 0   ;;  %s5983_s17 = smov 0  }
  0x15   :  { %s5985_s18 = smov 0  }
  0x16 LB: > { %8264 = sst [smem:[#allocation11_spill]] %s5845_s25  ;;  %s4593_s19 = sadd.s32 4294967295, %s5885_s18   ;;  %s5885_s18 = sphi %s5985_s18, %s29_s18   ;;  %s5881_s17 = sphi %s5983_s17, %s8359_s17   ;;  %s5877_s16 = sphi %s5981_s16, %s8358_s16   ;;  %s5873_s15 = sphi %s5979_s15, %s8357_s15   ;;  %s5869_s14 = sphi %s5977_s14, %s8356_s14   ;;  %s5865_s30 = sphi %s5975_s30, %s8355_s30   ;;  %s5861_s29 = sphi %s5973_s29, %s8354_s29   ;;  %s5857_s28 = sphi %s5971_s28, %s8353_s28   ;;  %s5853_s27 = sphi %s5969_s27, %s8352_s27   ;;  %s5849_s26 = sphi %s5967_s26, %s8351_s26   ;;  %s5845_s25 = sphi %s5965_s25, %s8350_s25  }
  0x17   : > { %8265 = sst [smem:[#allocation12_spill]] %s5849_s26  ;;  %s4594_s20 = sadd.s32 4294967294, %s5885_s18  }
  0x18   : > { %8266 = sst [smem:[#allocation13_spill]] %s5853_s27  ;;  %s38_s21 = sadd.s32 1, %s5877_s16 }
  0x19   : > { %8267 = sst [smem:[#allocation14_spill]] %s5861_s29  ;;  %s41_s22 = sadd.s32 1, %s5881_s17 }
  0x1a   : > { %8268 = sst [smem:[#allocation15_spill]] %s5865_s30  ;;  %p39_p0 = scmp.ge.s32.totalorder %s38_s21, 2 }
  0x1b   : > { %8269 = sst [smem:[#allocation16_spill]] %s5873_s15  ;;  %s126_s23 = sadd.s32 1, %s5865_s30 }
  0x1c   : > { %8270 = sst [smem:[#allocation17_spill]] %s5877_s16  ;;  %p133_p1 = scmp.ne.s32.totalorder %s5865_s30, %s5861_s29 }
  0x1d   : > { %8271 = sst [smem:[#allocation18_spill]] %s5881_s17  ;;  %p134_p2 = scmp.eq.s32.totalorder %s5885_s18, 0 }
  0x1e   : > { %8272 = sst [smem:[#allocation19_spill]] %s5885_s18  ;;  %s8361_s21 = smov (%p39_p0, %s38_s21), 0 }
  0x1f   : > { %8273 = sst [smem:[#allocation20_spill]] %s8361_s21  ;;  %s8363_s22 = smov (!%p39_p0, %s41_s22), %s5881_s17 }
  0x20   : > { %s123_s24 = ssub.s32 %s5877_s16, %s8361_s21  ;;  %p6031_p3 = por %p134_p2, %p133_p1 }
  0x21   : > { %p43_p4 = scmp.ge.s32.totalorder %s8363_s22, 2  ;;  %p124_p5 = scmp.eq.s32.totalorder %s123_s24, 0 }
  0x22   : > { %p139_p6 = scmp.ne.s32.totalorder %s5861_s29, %s5857_s28  ;;  %p140_p7 = scmp.eq.s32.totalorder %s4593_s19, 0 }
  0x23   : > { %s8365_s22 = smov (%p43_p4, %s8363_s22), 0  ;;  %s386_s10 = sadd.s32 1, %s5853_s27 }
  0x24   : > { %8275 = sst [smem:[#allocation21_spill]] %s8365_s22  ;;  %p6041_p8 = por %p140_p7, %p139_p6 }
  0x25   : > { %s6039_s12 = scalar_select %p124_p5, %s5865_s30, %s126_s23  }
  0x26   : > { %s383_s11 = ssub.s32 %s5881_s17, %s8365_s22  ;;  %p396_p10 = scmp.ne.s32.totalorder %s5853_s27, %s5849_s26 }
  0x27   : > { %8276 = sst [smem:[#allocation22_spill]] %s6039_s12  ;;  %p384_p9 = scmp.eq.s32.totalorder %s383_s11, 0 }
  0x28   : > { %p397_p11 = scmp.eq.s32.totalorder %s4593_s19, 3  ;;  %p402_p13 = scmp.ne.s32.totalorder %s5849_s26, %s5845_s25 }
  0x29   : > { %s6051_s24 = scalar_select %p384_p9, %s5853_s27, %s386_s10  }
  0x2a   : > { %p6053_p12 = por %p397_p11, %p396_p10  ;;  %p403_p0 = scmp.eq.s32.totalorder %s4594_s20, 3 }
  0x2b   : > { %8278 = sst [smem:[#allocation23_spill]] %s6051_s24  ;;  %p5171_p1 = scmp.lt.s32.totalorder %s5885_s18, 4 }
  0x2c   : > { %s8279_s28 = scalar_select %p6053_p12, 1, 0 }
  0x2d   : > { %s446_s23 = sand.u32 1, %s5865_s30   ;;  %p6061_p2 = por %p403_p0, %p402_p13 }
  0x2e   : > { %8280 = sst [smem:[#allocation24_spill]] %s8279_s28  ;;  %s4597_s11 = sshll.u32 %s446_s23, 6 }
  0x2f   : > { %s8281_s12 = scalar_select %p6061_p2, 1, 0 }
  0x30   : > { %s4970_s22 = sshll.u32 %s5877_s16, 6  ;;  %s8283_s3 = sld [smem:[#allocation44_spill]] }
  0x31   : > { %8282 = sst [smem:[#allocation25_spill]] %s8281_s12  ;;  %s450_s27 = scalar_lea.vmem [#allocation5], %s4597_s11 }
  0x32   : > { %s458_s9 = sshll.u32 %s450_s27, 4  ;;  %p5164_p4 = pnand %p5171_p1, %p6031_p3  ;;  %s459_s9 = int_to_ptr.vmem [resolvable:$true] %s458_s9 }
  0x33   : > { %p4600_p5 = scmp.ge.s32.totalorder %s5885_s18, 1  ;;  %p525_p6 = scmp.lt.s32.totalorder %s5885_s18, 5 }
  0x34   : > { %s447_s20 = scalar_lea.sflag [#allocation6], %s446_s23  ;;  %s5887_s30 = smov 64  }
  0x35   : > { %s5888_s25 = smov 4   ;;  %p526_p7 = pnand %p4600_p5, %p525_p6 }
  0x36   : > { %s455_s10 = scalar_lea.hbm %s8283_s3, %s4970_s22 }
  0x37   : > { %s456_s24 = sshll.u32 %s455_s10, 4  ;;  %529 = sbr.rel (%p526_p7) target bundleno = 2654 (0xa5e), region = 72  ;;  %s457_s24 = int_to_ptr.hbm [resolvable:$true] %s456_s24 }
  0x38   : > { %5166 = dma.hbm_to_vmem [thread:$0]  (!%p5164_p4), %s457_s24, 1024, %s459_s9, %s447_s20, %s5887_s30, %s5887_s30, %s5888_s25  }
  0x3c   : > { %s531_s16 = sand.u32 1, %s5861_s29  }
  0x3d   : > { %s4601_s17 = sshll.u32 %s531_s16, 6  ;;  %s532_s22 = scalar_lea.sflag [#allocation6], %s531_s16 }
  0x3e   : > { %s6074_s19 = scalar_lea.vmem [#allocation5], %s4601_s17 }
  0x3f   : > { %5836 = dma.done.wait (%p6041_p8), %s532_s22, 1024  }
  0x40   : > { %5838 = vsyncadd (%p6041_p8), %s532_s22, 4294966272  ;;  %s8238_s9 = sand.u32 1, %s5849_s26   ;;  %p625_p3 = scmp.lt.s32.totalorder %s5873_s15, 1 }
  0x41   : > { %s4602_s13 = sshll.u32 %s8238_s9, 7  ;;  %p630_p9 = scmp.lt.s32.totalorder %s5869_s14, 1 }
  0x42   : > { %s626_s25 = scalar_select %p625_p3, %s5873_s15, 1 }
  0x43   : > { %s6087_s27 = scalar_select %p630_p9, %s5869_s14, 1 }
  0x44   : > { %s4971_s30 = sshll.u32 %s626_s25, 7  ;;  %s8284_s0 = sld [smem:[#allocation41_spill]] }
  0x45   : > { %s5157_s23 = smul.u32 192, %s6087_s27  ;;  %s8285_s1 = sld [smem:[#allocation42_spill]] }
  0x46   : > { %s5158_s11 = smul.u32 3, %s6087_s27  ;;  %s8287_s2 = sld [smem:[#allocation43_spill]] }
  0x47   : > { %s4972_s10 = sshll.u32 %s6087_s27, 7  ;;  %s4608_s20 = sshll.u32 %s6087_s27, 1 }
  0x48   : > { %s8289_s7 = sld [smem:[#allocation47_spill]]  ;;  %s6128_s12 = scalar_lea.vmem %s8224_s8, %s4608_s20 }
  0x49   : > { %s8291_s21 = sld [smem:[#allocation49_spill]]  ;;  %p4611_p8 = scmp.ne.s32.totalorder %s5869_s14, 0 }
  0x4a   : > { %s6092_s24 = scalar_lea.vmem %s8284_s0, %s4971_s30  ;;  %s8292_s15 = sld [smem:[#allocation50_spill]] }
  0x4b   : > { %s6103_s3 = scalar_lea.vmem %s8285_s1, %s5157_s23  ;;  %s8293_s6 = sld [smem:[#allocation51_spill]] }
  0x4c   : > { %s6112_s30 = scalar_lea.vmem %s8287_s2, %s5158_s11  ;;  %s8290_s11 = sld [smem:[#allocation48_spill]] }
  0x4d   : > { %s6147_s23 = scalar_lea.vmem [#allocation8], %s4602_s13 }
  0x4e   : > { %s6123_s9 = scalar_lea.vmem %s8289_s7, %s4972_s10  ;;  %674 = sbr.rel (%p4611_p8) target bundleno = 100 (0x64), region = 80 }
  0x4f   : > { %s664_s28 = scalar_lea.vmem %s8291_s21, %s6087_s27 }
  0x50   : > { %s667_s26 = scalar_lea.vmem %s8292_s15, %s6087_s27 }
  0x51   : > { %s670_s5 = scalar_lea.vmem %s8293_s6, %s6087_s27 }
  0x52   : > { %s6133_s16 = scalar_lea.vmem %s8290_s11, %s4972_s10 }
  0x53   : > { %v675_v0 = vld [vmem:[%s6092_s24] sm:$0xff]  ;;  %v676_v1 = vld [vmem:[%s6092_s24 + $0x8] sm:$0xff]  ;;  %v677_v2 = vld [vmem:[%s6092_s24 + $0x10] sm:$0xff] }
  0x54   : > { %691 = vst [vmem:[#allocation2 + $0x30] sm:$0xff] %v675_v0  ;;  %v678_v3 = vld [vmem:[%s6092_s24 + $0x18] sm:$0xff]  ;;  %v679_v4 = vld [vmem:[%s6092_s24 + $0x20] sm:$0xff]  ;;  %v680_v5 = vld [vmem:[%s6092_s24 + $0x28] sm:$0xff] }
  0x55   : > { %692 = vst [vmem:[#allocation2] sm:$0xff] %v676_v1  ;;  %v681_v6 = vld [vmem:[%s6092_s24 + $0x30] sm:$0xff]  ;;  %v682_v7 = vld [vmem:[%s6092_s24 + $0x38] sm:$0xff]  ;;  %v683_v8 = vld [vmem:[%s6092_s24 + $0x40] sm:$0xff] }
  0x56   : > { %693 = vst [vmem:[#allocation2 + $0x58] sm:$0xff] %v677_v2  ;;  %v684_v9 = vld [vmem:[%s6092_s24 + $0x48] sm:$0xff]  ;;  %v685_v10 = vld [vmem:[%s6092_s24 + $0x50] sm:$0xff]  ;;  %v686_v11 = vld [vmem:[%s6092_s24 + $0x58] sm:$0xff] }
  0x57   : > { %694 = vst [vmem:[#allocation2 + $0x18] sm:$0xff] %v678_v3  ;;  %v687_v12 = vld [vmem:[%s6092_s24 + $0x60] sm:$0xff]  ;;  %v688_v13 = vld [vmem:[%s6092_s24 + $0x68] sm:$0xff]  ;;  %v689_v14 = vld [vmem:[%s6092_s24 + $0x70] sm:$0xff] }
  0x58   : > { %695 = vst [vmem:[#allocation2 + $0x50] sm:$0xff] %v679_v4  ;;  %v690_v15 = vld [vmem:[%s6092_s24 + $0x78] sm:$0xff] }
  0x59   : > { %696 = vst [vmem:[#allocation2 + $0x68] sm:$0xff] %v680_v5 }
  0x5a   : > { %697 = vst [vmem:[#allocation2 + $0x8] sm:$0xff] %v681_v6 }
  0x5b   : > { %698 = vst [vmem:[#allocation2 + $0x48] sm:$0xff] %v682_v7 }
  0x5c   : > { %699 = vst [vmem:[#allocation2 + $0x40] sm:$0xff] %v683_v8 }
  0x5d   : > { %700 = vst [vmem:[#allocation2 + $0x20] sm:$0xff] %v684_v9 }
  0x5e   : > { %701 = vst [vmem:[#allocation2 + $0x10] sm:$0xff] %v685_v10 }
  0x5f   : > { %702 = vst [vmem:[#allocation2 + $0x38] sm:$0xff] %v686_v11 }
  0x60   : > { %703 = vst [vmem:[#allocation2 + $0x60] sm:$0xff] %v687_v12 }
  0x61   : > { %704 = vst [vmem:[#allocation2 + $0x70] sm:$0xff] %v688_v13 }
  0x62   : > { %705 = vst [vmem:[#allocation2 + $0x78] sm:$0xff] %v689_v14 }
  0x63   : > { %706 = vst [vmem:[#allocation2 + $0x28] sm:$0xff] %v690_v15 }
  0x64 PF: > { %v4698_v16 = vld [vmem:[%s6103_s3 + $0xa8] sm:$0xf]  ;;  %v4996_v17 = vld [vmem:[%s6103_s3 + $0xb0] sm:$0xf0]  ;;  %v4995_v18 = vld [vmem:[%s6103_s3 + $0xac] sm:$0xf]  ;;  %s8331_s15 = scalar_lea.vmem %s8220_s4, %s6087_s27 }
  0x65   : > { %v4699_v19 = vor.u32 %v4996_v17, %v4698_v16  ;;  %v4700_v20 = vld [vmem:[%s6103_s3 + $0xb4] sm:$0xf0]  ;;  %v4706_v21 = vld [vmem:[%s6103_s3 + $0xb0] sm:$0xf]  ;;  %v4997_v22 = vld [vmem:[%s6103_s3 + $0xb8] sm:$0xf0] }
  0x66   : > { %v4703_v23 = vor.u32 %v4995_v18, %v4700_v20  ;;  %v4707_v24 = vor.u32 %v4997_v22, %v4706_v21  ;;  %v4686_v25 = vld [vmem:[%s6103_s3 + $0x90] sm:$0xf]  ;;  %v4993_v26 = vld [vmem:[%s6103_s3 + $0x98] sm:$0xf0]  ;;  %v4992_v27 = vld [vmem:[%s6103_s3 + $0x94] sm:$0xf] }
  0x67   : > { %899 = vmatpush.bf16.msra.mxu0 %v4699_v19  ;;  %v4687_v28 = vor.u32 %v4993_v26, %v4686_v25  ;;  %v4688_v29 = vld [vmem:[%s6103_s3 + $0x9c] sm:$0xf0]  ;;  %v4694_v30 = vld [vmem:[%s6103_s3 + $0x98] sm:$0xf]  ;;  %v4994_v31 = vld [vmem:[%s6103_s3 + $0xa0] sm:$0xf0] }
  0x68   : > { %948 = vmatpush.bf16.msra.mxu1 %v4703_v23  ;;  %997 = vmatpush.bf16.msra.mxu2 %v4707_v24  ;;  %v4691_v32 = vor.u32 %v4992_v27, %v4688_v29  ;;  %v4695_v33 = vor.u32 %v4994_v31, %v4694_v30  ;;  %v4674_v34 = vld [vmem:[%s6103_s3 + $0x78] sm:$0xf]  ;;  %v4990_v35 = vld [vmem:[%s6103_s3 + $0x80] sm:$0xf0]  ;;  %v4989_v36 = vld [vmem:[%s6103_s3 + $0x7c] sm:$0xf] }
  0x69   : > { %v4676_v37 = vld [vmem:[%s6103_s3 + $0x84] sm:$0xf0]  ;;  %v4682_v38 = vld [vmem:[%s6103_s3 + $0x80] sm:$0xf]  ;;  %v4991_v39 = vld [vmem:[%s6103_s3 + $0x88] sm:$0xf0]  ;;  %v4675_v40 = vor.u32 %v4990_v35, %v4674_v34 }
  0x6a   : > { %v4679_v41 = vor.u32 %v4989_v36, %v4676_v37  ;;  %v4683_v42 = vor.u32 %v4991_v39, %v4682_v38  ;;  %v4662_v43 = vld [vmem:[%s6103_s3 + $0x60] sm:$0xf]  ;;  %v4987_v44 = vld [vmem:[%s6103_s3 + $0x68] sm:$0xf0]  ;;  %v4986_v45 = vld [vmem:[%s6103_s3 + $0x64] sm:$0xf] }
  0x6b   : > { %900 = vmatpush.bf16.msra.mxu0 %v4687_v28  ;;  %v4664_v46 = vld [vmem:[%s6103_s3 + $0x6c] sm:$0xf0]  ;;  %v4670_v47 = vld [vmem:[%s6103_s3 + $0x68] sm:$0xf]  ;;  %v4988_v48 = vld [vmem:[%s6103_s3 + $0x70] sm:$0xf0]  ;;  %v4663_v49 = vor.u32 %v4987_v44, %v4662_v43 }
  0x6c   : > { %949 = vmatpush.bf16.msra.mxu1 %v4691_v32  ;;  %998 = vmatpush.bf16.msra.mxu2 %v4695_v33  ;;  %v4667_v50 = vor.u32 %v4986_v45, %v4664_v46  ;;  %v4671_v51 = vor.u32 %v4988_v48, %v4670_v47  ;;  %v4650_v52 = vld [vmem:[%s6103_s3 + $0x48] sm:$0xf]  ;;  %v4984_v53 = vld [vmem:[%s6103_s3 + $0x50] sm:$0xf0]  ;;  %v4983_v54 = vld [vmem:[%s6103_s3 + $0x4c] sm:$0xf] }
  0x6d   : > { %v4652_v55 = vld [vmem:[%s6103_s3 + $0x54] sm:$0xf0]  ;;  %v4658_v56 = vld [vmem:[%s6103_s3 + $0x50] sm:$0xf]  ;;  %v4985_v57 = vld [vmem:[%s6103_s3 + $0x58] sm:$0xf0]  ;;  %v4651_v58 = vor.u32 %v4984_v53, %v4650_v52 }
  0x6e   : > { %v4638_v59 = vld [vmem:[%s6103_s3 + $0x30] sm:$0xf]  ;;  %v4981_v60 = vld [vmem:[%s6103_s3 + $0x38] sm:$0xf0]  ;;  %v4655_v61 = vor.u32 %v4983_v54, %v4652_v55  ;;  %v4659_v62 = vor.u32 %v4985_v57, %v4658_v56  ;;  %v4980_v63 = vld [vmem:[%s6103_s3 + $0x34] sm:$0xf] }
  0x6f   : > { %901 = vmatpush.bf16.msra.mxu0 %v4675_v40  ;;  %v4640_v0 = vld [vmem:[%s6103_s3 + $0x3c] sm:$0xf0]  ;;  %v4646_v1 = vld [vmem:[%s6103_s3 + $0x38] sm:$0xf]  ;;  %v4982_v2 = vld [vmem:[%s6103_s3 + $0x40] sm:$0xf0]  ;;  %v4639_v3 = vor.u32 %v4981_v60, %v4638_v59 }
  0x70   : > { %950 = vmatpush.bf16.msra.mxu1 %v4679_v41  ;;  %999 = vmatpush.bf16.msra.mxu2 %v4683_v42  ;;  %v4643_v4 = vor.u32 %v4980_v63, %v4640_v0  ;;  %v4647_v5 = vor.u32 %v4982_v2, %v4646_v1  ;;  %v4626_v6 = vld [vmem:[%s6103_s3 + $0x18] sm:$0xf]  ;;  %v4978_v7 = vld [vmem:[%s6103_s3 + $0x20] sm:$0xf0]  ;;  %v4977_v8 = vld [vmem:[%s6103_s3 + $0x1c] sm:$0xf] }
  0x71   : > { %v4628_v9 = vld [vmem:[%s6103_s3 + $0x24] sm:$0xf0]  ;;  %v4634_v10 = vld [vmem:[%s6103_s3 + $0x20] sm:$0xf]  ;;  %v4979_v11 = vld [vmem:[%s6103_s3 + $0x28] sm:$0xf0]  ;;  %v4627_v12 = vor.u32 %v4978_v7, %v4626_v6 }
  0x72   : > { %v4631_v13 = vor.u32 %v4977_v8, %v4628_v9  ;;  %v4635_v14 = vor.u32 %v4979_v11, %v4634_v10  ;;  %v4614_v15 = vld [vmem:[%s6103_s3] sm:$0xf]  ;;  %v4975_v16 = vld [vmem:[%s6103_s3 + $0x8] sm:$0xf0]  ;;  %v4974_v17 = vld [vmem:[%s6103_s3 + $0x4] sm:$0xf] }
  0x73   : > { %902 = vmatpush.bf16.msra.mxu0 %v4663_v49  ;;  %v4616_v18 = vld [vmem:[%s6103_s3 + $0xc] sm:$0xf0]  ;;  %v4622_v19 = vld [vmem:[%s6103_s3 + $0x8] sm:$0xf]  ;;  %v4976_v20 = vld [vmem:[%s6103_s3 + $0x10] sm:$0xf0]  ;;  %v4615_v21 = vor.u32 %v4975_v16, %v4614_v15 }
  0x74   : > { %951 = vmatpush.bf16.msra.mxu1 %v4667_v50  ;;  %1000 = vmatpush.bf16.msra.mxu2 %v4671_v51  ;;  %v707_v22 = vld [vmem:[#allocation2 + $0x30] sm:$0xff]  ;;  %v708_v23 = vld [vmem:[#allocation2] sm:$0xff]  ;;  %v4619_v24 = vor.u32 %v4974_v17, %v4616_v18  ;;  %v4623_v25 = vor.u32 %v4976_v20, %v4622_v19  ;;  %v709_v27 = vld [vmem:[#allocation2 + $0x58] sm:$0xff]  ;;  %s5889_s1 = smov 64   ;;  %s5890_s2 = smov 96   ;;  %vm1222_vm0 = vcmask 261120  }
  0x75   : > { %v723_v26 = vpack.c.bf16 %v708_v23, %v707_v22  ;;  %v710_v28 = vld [vmem:[#allocation2 + $0x18] sm:$0xff]  ;;  %v711_v30 = vld [vmem:[#allocation2 + $0x50] sm:$0xff]  ;;  %v712_v31 = vld [vmem:[#allocation2 + $0x68] sm:$0xff]  ;;  %s5891_s3 = smov 32   ;;  %vm2839_vm1 = vcmask 523264   ;;  %vm2856_vm2 = vcmask 785408  }
  0x76   : > { %v724_v29 = vpack.c.bf16 %v710_v28, %v709_v27  ;;  %v725_v32 = vpack.c.bf16 %v712_v31, %v711_v30  ;;  %v713_v33 = vld [vmem:[#allocation2 + $0x8] sm:$0xff]  ;;  %v715_v36 = vld [vmem:[#allocation2 + $0x40] sm:$0xff]  ;;  %v717_v39 = vld [vmem:[#allocation2 + $0x10] sm:$0xff]  ;;  %s8335_s24 = sld [smem:[#allocation45_spill]]  ;;  %p4964_p10 = scmp.ne.s32.totalorder %s5869_s14, 1 }
  0x77   : > { %903 = vmatpush.bf16.msra.mxu0 %v4651_v58  ;;  %v714_v34 = vld [vmem:[#allocation2 + $0x48] sm:$0xff]  ;;  %v716_v37 = vld [vmem:[#allocation2 + $0x20] sm:$0xff]  ;;  %v718_v40 = vld [vmem:[#allocation2 + $0x38] sm:$0xff]  ;;  %s8337_s20 = sld [smem:[#allocation46_spill]] }
  0x78   : > { %952 = vmatpush.bf16.msra.mxu1 %v4655_v61  ;;  %1001 = vmatpush.bf16.msra.mxu2 %v4659_v62  ;;  %v726_v35 = vpack.c.bf16 %v714_v34, %v713_v33  ;;  %v727_v38 = vpack.c.bf16 %v716_v37, %v715_v36  ;;  %v728_v41 = vpack.c.bf16 %v718_v40, %v717_v39  ;;  %v719_v42 = vld [vmem:[#allocation2 + $0x60] sm:$0xff]  ;;  %v720_v43 = vld [vmem:[#allocation2 + $0x70] sm:$0xff]  ;;  %v721_v45 = vld [vmem:[#allocation2 + $0x78] sm:$0xff] }
  0x79   : > { %v729_v44 = vpack.c.bf16 %v720_v43, %v719_v42  ;;  %v722_v46 = vld [vmem:[#allocation2 + $0x28] sm:$0xff]  ;;  %v763_v48 = vld [vmem:[%s6112_s30] sm:$0x7] }
  0x7a   : > { %v730_v47 = vpack.c.bf16 %v722_v46, %v721_v45  ;;  %v6215_v51 = vperm.slane %v763_v48, 1  ;;  %v6217_v52 = vperm.slane %v763_v48, 0  ;;  %v6220_v54 = vperm.slane %v763_v48, 2 }
  0x7b   : > { %904 = vmatpush.bf16.msra.mxu0 %v4639_v3 }
  0x7c   : > { %953 = vmatpush.bf16.msra.mxu1 %v4643_v4  ;;  %1002 = vmatpush.bf16.msra.mxu2 %v4647_v5  ;;  %s8336_s25 = scalar_lea.vmem %s8335_s24, %s6087_s27 }
  0x7f   : > { %905 = vmatpush.bf16.msra.mxu0 %v4627_v12 }
  0x80   : > { %954 = vmatpush.bf16.msra.mxu1 %v4631_v13  ;;  %1003 = vmatpush.bf16.msra.mxu2 %v4635_v14 }
  0x83   : > { %906 = vmatpush.bf16.msra.mxu0 %v4615_v21 }
  0x84   : > { %955 = vmatpush.bf16.msra.mxu1 %v4619_v24  ;;  %1004 = vmatpush.bf16.msra.mxu2 %v4623_v25 }
  0x86   : > { %907 = vmatmul.bf16.vlgmr.msra.gmra.mxu0 %v723_v26 }
  0x87   : > { %956 = vmatmul.bf16.vlgmr.msra.gmra.mxu1 %v723_v26  ;;  %1005 = vmatmul.bf16.vlgmr.msra.gmra.mxu2 %v723_v26 }
  0x96   : > { %912 = vmatmul.bf16.gmra.mxu0 %v724_v29 }
  0x97   : > { %961 = vmatmul.bf16.gmra.mxu1 %v724_v29  ;;  %1010 = vmatmul.bf16.gmra.mxu2 %v724_v29 }
  0xa6   : > { %917 = vmatmul.bf16.gmra.mxu0 %v725_v32 }
  0xa7   : > { %966 = vmatmul.bf16.gmra.mxu1 %v725_v32  ;;  %1015 = vmatmul.bf16.gmra.mxu2 %v725_v32 }
  0xb6   : > { %922 = vmatmul.bf16.gmra.mxu0 %v726_v35 }
  0xb7   : > { %971 = vmatmul.bf16.gmra.mxu1 %v726_v35  ;;  %1020 = vmatmul.bf16.gmra.mxu2 %v726_v35 }
  0xc6   : > { %927 = vmatmul.bf16.gmra.mxu0 %v727_v38 }
  0xc7   : > { %976 = vmatmul.bf16.gmra.mxu1 %v727_v38  ;;  %1025 = vmatmul.bf16.gmra.mxu2 %v727_v38 }
  0xd6   : > { %932 = vmatmul.bf16.gmra.mxu0 %v728_v41 }
  0xd7   : > { %981 = vmatmul.bf16.gmra.mxu1 %v728_v41  ;;  %1030 = vmatmul.bf16.gmra.mxu2 %v728_v41 }
  0xe6   : > { %937 = vmatmul.bf16.gmra.mxu0 %v729_v44 }
  0xe7   : > { %986 = vmatmul.bf16.gmra.mxu1 %v729_v44  ;;  %1035 = vmatmul.bf16.gmra.mxu2 %v729_v44 }
  0xf6   : > { %942 = vmatmul.bf16.gmra.mxu0 %v730_v47 }
  0xf7   : > { %991 = vmatmul.bf16.gmra.mxu1 %v730_v47  ;;  %1040 = vmatmul.bf16.gmra.mxu2 %v730_v47 }
 0x103   : > { %v908_v49 = vpop.f32.mrf.mxu0 }
 0x104   : > { %v957_v50 = vpop.f32.mrf.mxu1  ;;  %v909_v55 = vadd.f32 %v908_v49, %v6217_v52 }
 0x105   : > { %v958_v53 = vadd.f32 %v957_v50, %v6215_v51 }
 0x106   : > { %v1046_v63 = vmul.f32 0.17677669, %v909_v55 }
 0x107   : > { %v1094_v60 = vpack.c.bf16 %v958_v53, %v958_v53 }
 0x109   : > { %v1198_v3 = vunpack.c.l.b16 %v1094_v60 }
 0x10a   : > { %v1006_v56 = vpop.f32.mrf.mxu2 }
 0x10b   : > { %v910_v57 = vpop.f32.mrf.mxu0  ;;  %v1007_v61 = vadd.f32 %v1006_v56, %v6220_v54 }
 0x10c   : > { %v911_v58 = vadd.f32 %v910_v57, %v6217_v52  ;;  %v959_v59 = vpop.f32.mrf.mxu1 }
 0x10d   : > { %v960_v62 = vadd.f32 %v959_v59, %v6215_v51  ;;  %v1110_v4 = vpack.c.bf16 %v1007_v61, %v1007_v61 }
 0x10e   : > { %v1047_v0 = vmul.f32 0.17677669, %v911_v58 }
 0x10f   : > { %v1095_v1 = vpack.c.bf16 %v960_v62, %v960_v62  ;;  %v1456_v11 = vunpack.c.l.b16 %v1110_v4 }
 0x110   : > { %v5058_v2 = vpack.c.bf16 %v1047_v0, %v1046_v63 }
 0x111   : > { %v1199_v5 = vunpack.c.l.b16 %v1095_v1 }
 0x112   : > { %5059 = vst [vmem:[#allocation3 + $0x28] sm:$0xff] %v5058_v2   ;;  %v1008_v6 = vpop.f32.mrf.mxu2 }
 0x113   : > { %v6226_v7 = vpack.c.b16 %v1199_v5, %v1198_v3  ;;  %v1009_v8 = vadd.f32 %v1008_v6, %v6220_v54  ;;  %v913_v9 = vpop.f32.mrf.mxu0 }
 0x114   : > { %v962_v10 = vpop.f32.mrf.mxu1  ;;  %v914_v14 = vadd.f32 %v913_v9, %v6217_v52 }
 0x115   : > { %v1111_v12 = vpack.c.bf16 %v1009_v8, %v1009_v8  ;;  %1939 = vrot.lane.b32.xlu0 %v6226_v7, %s5889_s1  ;;  %1585 = vrot.lane.b32.xlu1 %v6226_v7, %s5890_s2  ;;  %v963_v16 = vadd.f32 %v962_v10, %v6215_v51 }
 0x116   : > { %v1048_v20 = vmul.f32 0.17677669, %v914_v14 }
 0x117   : > { %v1457_v13 = vunpack.c.l.b16 %v1111_v12  ;;  %v1096_v23 = vpack.c.bf16 %v963_v16, %v963_v16 }
 0x119   : > { %v6234_v15 = vpack.c.b16 %v1457_v13, %v1456_v11  ;;  %v6237_v17 = vld [vmem:[#allocation3 + $0x28] sm:$0xff]  ;;  %v1200_v29 = vunpack.c.l.b16 %v1096_v23 }
 0x11a   : > { %v1011_v18 = vpop.f32.mrf.mxu2 }
 0x11b   : > { %1818 = vrot.lane.b32.xlu2 %v6234_v15, %s5890_s2  ;;  %v915_v19 = vpop.f32.mrf.mxu0  ;;  %v1012_v24 = vadd.f32 %v1011_v18, %v6220_v54 }
 0x11c   : > { %v964_v21 = vpop.f32.mrf.mxu1  ;;  %v916_v22 = vadd.f32 %v915_v19, %v6217_v52 }
 0x11d   : > { %v965_v25 = vadd.f32 %v964_v21, %v6215_v51  ;;  %2293 = vrot.lane.b32.xlu1 %v6226_v7, %s5891_s3  ;;  %2277 = vrot.lane.b32.xlu0 %v6237_v17, %s5891_s3  ;;  %v1112_v30 = vpack.c.bf16 %v1012_v24, %v1012_v24 }
 0x11e   : > { %v1049_v26 = vmul.f32 0.17677669, %v916_v22 }
 0x11f   : > { %v1097_v27 = vpack.c.bf16 %v965_v25, %v965_v25  ;;  %v1458_v37 = vunpack.c.l.b16 %v1112_v30 }
 0x120   : > { %v5063_v28 = vpack.c.bf16 %v1049_v26, %v1048_v20 }
 0x121   : > { %v1201_v31 = vunpack.c.l.b16 %v1097_v27 }
 0x122   : > { %v1013_v32 = vpop.f32.mrf.mxu2  ;;  %5135 = vst [vmem:[#allocation3] sm:$0xff] %v5063_v28  }
 0x123   : > { %v6248_v33 = vpack.c.b16 %v1201_v31, %v1200_v29  ;;  %v1014_v34 = vadd.f32 %v1013_v32, %v6220_v54  ;;  %2172 = vrot.lane.b32.xlu2 %v6234_v15, %s5889_s1  ;;  %v918_v35 = vpop.f32.mrf.mxu0 }
 0x124   : > { %v967_v36 = vpop.f32.mrf.mxu1  ;;  %v919_v40 = vadd.f32 %v918_v35, %v6217_v52 }
 0x125   : > { %v1113_v38 = vpack.c.bf16 %v1014_v34, %v1014_v34  ;;  %2526 = vrot.lane.b32.xlu1 %v6234_v15, %s5891_s3  ;;  %1587 = vrot.lane.b32.xlu0 %v6248_v33, %s5890_s2  ;;  %v968_v47 = vadd.f32 %v967_v36, %v6215_v51 }
 0x126   : > { %v1050_v44 = vmul.f32 0.17677669, %v919_v40 }
 0x127   : > { %v1459_v39 = vunpack.c.l.b16 %v1113_v38  ;;  %v1098_v53 = vpack.c.bf16 %v968_v47, %v968_v47 }
 0x129   : > { %v6258_v41 = vpack.c.b16 %v1459_v39, %v1458_v37  ;;  %v6269_v56 = vld [vmem:[#allocation3] sm:$0xff]  ;;  %v1202_v60 = vunpack.c.l.b16 %v1098_v53 }
 0x12a   : > { %v1016_v42 = vpop.f32.mrf.mxu2 }
 0x12b   : > { %1569 = vrot.lane.b32.xlu2 %v6237_v17, %s5890_s2  ;;  %v920_v43 = vpop.f32.mrf.mxu0  ;;  %v1017_v62 = vadd.f32 %v1016_v42, %v6220_v54 }
 0x12c   : > { %v969_v45 = vpop.f32.mrf.mxu1  ;;  %v921_v46 = vadd.f32 %v920_v43, %v6217_v52 }
 0x12d   : > { %v970_v48 = vadd.f32 %v969_v45, %v6215_v51  ;;  %1820 = vrot.lane.b32.xlu1 %v6258_v41, %s5890_s2  ;;  %1941 = vrot.lane.b32.xlu0 %v6248_v33, %s5889_s1  ;;  %v1114_v3 = vpack.c.bf16 %v1017_v62, %v1017_v62 }
 0x12e   : > { %v1051_v49 = vmul.f32 0.17677669, %v921_v46 }
 0x12f   : > { %v1099_v55 = vpack.c.bf16 %v970_v48, %v970_v48  ;;  %v1460_v11 = vunpack.c.l.b16 %v1114_v3 }
 0x130   : > { %v5068_v50 = vpack.c.bf16 %v1051_v49, %v1050_v44 }
 0x131   : > { %v1203_v61 = vunpack.c.l.b16 %v1099_v55 }
 0x132   : > { %v1018_v57 = vpop.f32.mrf.mxu2  ;;  %5136 = vst [vmem:[#allocation3 + $0x10] sm:$0xff] %v5068_v50  }
 0x133   : > { %1923 = vrot.lane.b32.xlu2 %v6237_v17, %s5889_s1  ;;  %v923_v58 = vpop.f32.mrf.mxu0  ;;  %v1019_v63 = vadd.f32 %v1018_v57, %v6220_v54  ;;  %v6280_v1 = vpack.c.b16 %v1203_v61, %v1202_v60 }
 0x134   : > { %v972_v59 = vpop.f32.mrf.mxu1  ;;  %v924_v0 = vadd.f32 %v923_v58, %v6217_v52 }
 0x135   : > { %1925 = vrot.lane.b32.xlu1 %v6269_v56, %s5889_s1  ;;  %2174 = vrot.lane.b32.xlu0 %v6258_v41, %s5889_s1  ;;  %v1115_v4 = vpack.c.bf16 %v1019_v63, %v1019_v63  ;;  %v973_v21 = vadd.f32 %v972_v59, %v6215_v51 }
 0x136   : > { %v1052_v8 = vmul.f32 0.17677669, %v924_v0 }
 0x137   : > { %v1461_v12 = vunpack.c.l.b16 %v1115_v4  ;;  %v1100_v24 = vpack.c.bf16 %v973_v21, %v973_v21 }
 0x139   : > { %v6289_v14 = vld [vmem:[#allocation3 + $0x10] sm:$0xff]  ;;  %v6291_v18 = vpack.c.b16 %v1461_v12, %v1460_v11  ;;  %v1204_v31 = vunpack.c.l.b16 %v1100_v24 }
 0x13a   : > { %v1021_v2 = vpop.f32.mrf.mxu2 }
 0x13b   : > { %2295 = vrot.lane.b32.xlu2 %v6248_v33, %s5891_s3  ;;  %v925_v5 = vpop.f32.mrf.mxu0  ;;  %v1022_v32 = vadd.f32 %v1021_v2, %v6220_v54 }
 0x13c   : > { %v974_v6 = vpop.f32.mrf.mxu1  ;;  %v926_v9 = vadd.f32 %v925_v5, %v6217_v52 }
 0x13d   : > { %1943 = vrot.lane.b32.xlu1 %v6280_v1, %s5889_s1  ;;  %1571 = vrot.lane.b32.xlu0 %v6269_v56, %s5890_s2  ;;  %v975_v22 = vadd.f32 %v974_v6, %v6215_v51  ;;  %v1116_v38 = vpack.c.bf16 %v1022_v32, %v1022_v32 }
 0x13e   : > { %v1053_v10 = vmul.f32 0.17677669, %v926_v9 }
 0x13f   : > { %v1101_v25 = vpack.c.bf16 %v975_v22, %v975_v22  ;;  %v1462_v44 = vunpack.c.l.b16 %v1116_v38 }
 0x140   : > { %v5073_v13 = vpack.c.bf16 %v1053_v10, %v1052_v8 }
 0x141   : > { %v1205_v34 = vunpack.c.l.b16 %v1101_v25 }
 0x142   : > { %v1023_v16 = vpop.f32.mrf.mxu2  ;;  %5137 = vst [vmem:[#allocation3 + $0x20] sm:$0xff] %v5073_v13  }
 0x143   : > { %2528 = vrot.lane.b32.xlu2 %v6258_v41, %s5891_s3  ;;  %v928_v19 = vpop.f32.mrf.mxu0  ;;  %v1024_v35 = vadd.f32 %v1023_v16, %v6220_v54  ;;  %v6311_v39 = vpack.c.b16 %v1205_v34, %v1204_v31 }
 0x144   : > { %v977_v20 = vpop.f32.mrf.mxu1  ;;  %v929_v23 = vadd.f32 %v928_v19, %v6217_v52 }
 0x145   : > { %1573 = vrot.lane.b32.xlu1 %v6289_v14, %s5890_s2  ;;  %1822 = vrot.lane.b32.xlu0 %v6291_v18, %s5890_s2  ;;  %v1117_v40 = vpack.c.bf16 %v1024_v35, %v1024_v35  ;;  %v978_v46 = vadd.f32 %v977_v20, %v6215_v51 }
 0x146   : > { %v1054_v29 = vmul.f32 0.17677669, %v929_v23 }
 0x147   : > { %v1463_v45 = vunpack.c.l.b16 %v1117_v40  ;;  %v1102_v50 = vpack.c.bf16 %v978_v46, %v978_v46 }
 0x149   : > { %v6321_v49 = vpack.c.b16 %v1463_v45, %v1462_v44  ;;  %v1206_v59 = vunpack.c.l.b16 %v1102_v50  ;;  %v6345_v19 = vld [vmem:[#allocation3 + $0x20] sm:$0xff] }
 0x14a   : > { %v1026_v26 = vpop.f32.mrf.mxu2 }
 0x14b   : > { %2279 = vrot.lane.b32.xlu2 %v6269_v56, %s5891_s3  ;;  %v930_v27 = vpop.f32.mrf.mxu0  ;;  %v1027_v60 = vadd.f32 %v1026_v26, %v6220_v54 }
 0x14c   : > { %v979_v28 = vpop.f32.mrf.mxu1  ;;  %v931_v30 = vadd.f32 %v930_v27, %v6217_v52 }
 0x14d   : > { %1927 = vrot.lane.b32.xlu1 %v6289_v14, %s5889_s1  ;;  %2530 = vrot.lane.b32.xlu0 %v6291_v18, %s5891_s3  ;;  %v980_v47 = vadd.f32 %v979_v28, %v6215_v51  ;;  %v1118_v4 = vpack.c.bf16 %v1027_v60, %v1027_v60 }
 0x14e   : > { %v1055_v36 = vmul.f32 0.17677669, %v931_v30 }
 0x14f   : > { %v1103_v53 = vpack.c.bf16 %v980_v47, %v980_v47  ;;  %v1464_v11 = vunpack.c.l.b16 %v1118_v4 }
 0x150   : > { %v5078_v37 = vpack.c.bf16 %v1055_v36, %v1054_v29 }
 0x151   : > { %v1207_v61 = vunpack.c.l.b16 %v1103_v53 }
 0x152   : > { %v1028_v42 = vpop.f32.mrf.mxu2  ;;  %5138 = vst [vmem:[#allocation3 + $0x18] sm:$0xff] %v5078_v37  }
 0x153   : > { %1589 = vrot.lane.b32.xlu2 %v6280_v1, %s5890_s2  ;;  %v933_v48 = vpop.f32.mrf.mxu0  ;;  %v1029_v62 = vadd.f32 %v1028_v42, %v6220_v54  ;;  %v6333_v5 = vpack.c.b16 %v1207_v61, %v1206_v59 }
 0x154   : > { %v982_v43 = vpop.f32.mrf.mxu1  ;;  %v934_v57 = vadd.f32 %v933_v48, %v6217_v52 }
 0x155   : > { %1945 = vrot.lane.b32.xlu1 %v6311_v39, %s5889_s1  ;;  %2281 = vrot.lane.b32.xlu0 %v6289_v14, %s5891_s3  ;;  %v1119_v6 = vpack.c.bf16 %v1029_v62, %v1029_v62  ;;  %v983_v22 = vadd.f32 %v982_v43, %v6215_v51 }
 0x156   : > { %v1056_v0 = vmul.f32 0.17677669, %v934_v57 }
 0x157   : > { %v1465_v12 = vunpack.c.l.b16 %v1119_v6  ;;  %v1104_v25 = vpack.c.bf16 %v983_v22, %v983_v22 }
 0x159   : > { %v6341_v13 = vpack.c.b16 %v1465_v12, %v1464_v11  ;;  %v6354_v27 = vld [vmem:[#allocation3 + $0x18] sm:$0xff]  ;;  %v1208_v34 = vunpack.c.l.b16 %v1104_v25 }
 0x15a   : > { %v1031_v55 = vpop.f32.mrf.mxu2 }
 0x15b   : > { %2297 = vrot.lane.b32.xlu2 %v6280_v1, %s5891_s3  ;;  %v935_v63 = vpop.f32.mrf.mxu0  ;;  %v1032_v47 = vadd.f32 %v1031_v55, %v6220_v54 }
 0x15c   : > { %v984_v58 = vpop.f32.mrf.mxu1  ;;  %v936_v2 = vadd.f32 %v935_v63, %v6217_v52 }
 0x15d   : > { %2178 = vrot.lane.b32.xlu1 %v6321_v49, %s5889_s1  ;;  %2299 = vrot.lane.b32.xlu0 %v6311_v39, %s5891_s3  ;;  %v985_v23 = vadd.f32 %v984_v58, %v6215_v51 }
 0x15e   : > { %v1057_v3 = vmul.f32 0.17677669, %v936_v2 }
 0x15f   : > { %v1105_v26 = vpack.c.bf16 %v985_v23, %v985_v23 }
 0x160   : > { %v5083_v9 = vpack.c.bf16 %v1057_v3, %v1056_v0  ;;  %v1120_v0 = vpack.c.bf16 %v1032_v47, %v1032_v47 }
 0x161   : > { %v1209_v35 = vunpack.c.l.b16 %v1105_v26 }
 0x162   : > { %v1033_v8 = vpop.f32.mrf.mxu2  ;;  %5139 = vst [vmem:[#allocation3 + $0x8] sm:$0xff] %v5083_v9  }
 0x163   : > { %2176 = vrot.lane.b32.xlu2 %v6291_v18, %s5889_s1  ;;  %v938_v20 = vpop.f32.mrf.mxu0  ;;  %v6366_v42 = vpack.c.b16 %v1209_v35, %v1208_v34  ;;  %v1034_v50 = vadd.f32 %v1033_v8, %v6220_v54 }
 0x164   : > { %v987_v10 = vpop.f32.mrf.mxu1  ;;  %v939_v24 = vadd.f32 %v938_v20, %v6217_v52 }
 0x165   : > { %1593 = vrot.lane.b32.xlu1 %v6333_v5, %s5890_s2  ;;  %1824 = vrot.lane.b32.xlu0 %v6321_v49, %s5890_s2  ;;  %v988_v43 = vadd.f32 %v987_v10, %v6215_v51  ;;  %v1121_v2 = vpack.c.bf16 %v1034_v50, %v1034_v50  ;;  %v1251_v50 = vsel %vm1222_vm0, %v6248_v33, 0 }
 0x166   : > { %v1058_v31 = vmul.f32 0.17677669, %v939_v24 }
 0x167   : > { %v1106_v59 = vpack.c.bf16 %v988_v43, %v988_v43  ;;  %v1467_v20 = vunpack.c.l.b16 %v1121_v2 }
 0x169   : > { %v1210_v4 = vunpack.c.l.b16 %v1106_v59 }
 0x16a   : > { %v1036_v16 = vpop.f32.mrf.mxu2 }
 0x16b   : > { %1591 = vrot.lane.b32.xlu2 %v6311_v39, %s5890_s2  ;;  %v940_v29 = vpop.f32.mrf.mxu0  ;;  %v1037_v60 = vadd.f32 %v1036_v16, %v6220_v54  ;;  %v1466_v16 = vunpack.c.l.b16 %v1120_v0 }
 0x16c   : > { %v989_v21 = vpop.f32.mrf.mxu1  ;;  %v941_v32 = vadd.f32 %v940_v29, %v6217_v52 }
 0x16d   : > { %2180 = vrot.lane.b32.xlu1 %v6341_v13, %s5889_s1  ;;  %1929 = vrot.lane.b32.xlu0 %v6345_v19, %s5889_s1  ;;  %v990_v45 = vadd.f32 %v989_v21, %v6215_v51  ;;  %v1122_v6 = vpack.c.bf16 %v1037_v60, %v1037_v60 }
 0x16e   : > { %v1059_v37 = vmul.f32 0.17677669, %v941_v32 }
 0x16f   : > { %v1107_v61 = vpack.c.bf16 %v990_v45, %v990_v45  ;;  %v1260_v45 = vsel %vm1222_vm0, %v6333_v5, 0 }
 0x170   : > { %v5088_v40 = vpack.c.bf16 %v1059_v37, %v1058_v31 }
 0x171   : > { %v1211_v9 = vunpack.c.l.b16 %v1107_v61 }
 0x172   : > { %v1038_v28 = vpop.f32.mrf.mxu2  ;;  %5140 = vst [vmem:[#allocation3 + $0x38] sm:$0xff] %v5088_v40   ;;  %v1263_v40 = vsel %vm1222_vm0, %v6366_v42, 0 }
 0x173   : > { %2532 = vrot.lane.b32.xlu2 %v6321_v49, %s5891_s3  ;;  %v1039_v55 = vadd.f32 %v1038_v28, %v6220_v54  ;;  %v1220_v25 = vpack.c.b16 %v1211_v9, %v1210_v4 }
 0x174   : > { %v992_v30 = vpop.f32.mrf.mxu1 }
 0x175   : > { %v6359_v36 = vpop.permute.xlu2 %1818  ;;  %1577 = vrot.lane.b32.xlu1 %v6354_v27, %s5890_s2  ;;  %2283 = vrot.lane.b32.xlu0 %v6345_v19, %s5891_s3  ;;  %v993_v38 = vadd.f32 %v992_v30, %v6215_v51  ;;  %v1123_v10 = vpack.c.bf16 %v1039_v55, %v1039_v55  ;;  %v1477_v30 = vpack.c.b16 %v1467_v20, %v1466_v16  ;;  %v1266_v34 = vsel %vm1222_vm0, %v1220_v25, 0 }
 0x177   : > { %v1108_v46 = vpack.c.bf16 %v993_v38, %v993_v38  ;;  %v1469_v26 = vunpack.c.l.b16 %v1123_v10  ;;  %v6417_v38 = vld [vmem:[#allocation3 + $0x8] sm:$0xff] }
 0x179   : > { %v1212_v62 = vunpack.c.l.b16 %v1108_v46 }
 0x17a   : > { %v1041_v44 = vpop.f32.mrf.mxu2 }
 0x17b   : > { %1575 = vrot.lane.b32.xlu2 %v6345_v19, %s5890_s2  ;;  %v1042_v53 = vadd.f32 %v1041_v44, %v6220_v54 }
 0x17c   : > { %v994_v48 = vpop.f32.mrf.mxu1 }
 0x17d   : > { %v995_v57 = vadd.f32 %v994_v48, %v6215_v51  ;;  %v6376_v58 = vpop.permute.xlu2 %2172  ;;  %1595 = vrot.lane.b32.xlu1 %v6366_v42, %s5890_s2  ;;  %2301 = vrot.lane.b32.xlu0 %v6333_v5, %s5891_s3  ;;  %v1124_v3 = vpack.c.bf16 %v1042_v53, %v1042_v53 }
 0x17f   : > { %v1109_v63 = vpack.c.bf16 %v995_v57, %v995_v57  ;;  %v1470_v21 = vunpack.c.l.b16 %v1124_v3  ;;  %v1248_v57 = vsel %vm1222_vm0, %v6226_v7, 0 }
 0x181   : > { %v1213_v51 = vunpack.c.l.b16 %v1109_v63 }
 0x182   : > { %v1043_v8 = vpop.f32.mrf.mxu2 }
 0x183   : > { %v6384_v11 = vpack.c.b16 %v1213_v51, %v1212_v62  ;;  %v1044_v12 = vadd.f32 %v1043_v8, %v6220_v54  ;;  %1947 = vrot.lane.b32.xlu2 %v6333_v5, %s5889_s1  ;;  %v1468_v54 = vunpack.c.l.b16 %v1122_v6 }
 0x185   : > { %v1125_v22 = vpack.c.bf16 %v1044_v12, %v1044_v12  ;;  %2303 = vrot.lane.b32.xlu1 %v6366_v42, %s5891_s3  ;;  %1931 = vrot.lane.b32.xlu0 %v6354_v27, %s5889_s1  ;;  %v6393_v23 = vpop.permute.xlu2 %1569  ;;  %v1269_v24 = vsel %vm1222_vm0, %v6384_v11, 0  ;;  %v6401_v32 = vpack.c.b16 %v1469_v26, %v1468_v54 }
 0x186   : > { %1271 = vmatpush.bf16.xpose.msra.mxu3 %v1269_v24 }
 0x187   : > { %v1471_v28 = vunpack.c.l.b16 %v1125_v22  ;;  %v6397_v29 = vpop.permute.xlu0 %1939  ;;  %v6452_v5 = vpop.permute.xlu1 %1585 }
 0x189   : > { %v6399_v31 = vpack.c.b16 %v1471_v28, %v1470_v21 }
 0x18b   : > { %1488 = vmatpush.bf16.msrb.mxu0 %v6399_v31  ;;  %1826 = vrot.lane.b32.xlu2 %v6341_v13, %s5890_s2 }
 0x18d   : > { %1828 = vrot.lane.b32.xlu1 %v1477_v30, %s5890_s2  ;;  %2285 = vrot.lane.b32.xlu0 %v6354_v27, %s5891_s3  ;;  %v6410_v35 = vpop.permute.xlu2 %1923 }
 0x18e   : > { %1272 = vmatpush.bf16.xpose.msra.mxu3 %v1266_v34 }
 0x18f   : > { %1489 = vmatpush.bf16.msrb.mxu0 %v6401_v32  ;;  %v6413_v37 = vpop.permute.xlu0 %2277 }
 0x193   : > { %1490 = vmatpush.bf16.msrb.mxu0 %v1477_v30  ;;  %2534 = vrot.lane.b32.xlu2 %v6341_v13, %s5891_s3 }
 0x195   : > { %2287 = vrot.lane.b32.xlu1 %v6417_v38, %s5891_s3  ;;  %1579 = vrot.lane.b32.xlu0 %v6417_v38, %s5890_s2  ;;  %v6425_v43 = vpop.permute.xlu2 %2295 }
 0x196   : > { %1273 = vmatpush.bf16.xpose.msra.mxu3 %v1263_v40 }
 0x197   : > { %1491 = vmatpush.bf16.msrb.mxu0 %v6341_v13  ;;  %v6428_v44 = vpop.permute.xlu0 %1587 }
 0x19b   : > { %1492 = vmatpush.bf16.msrb.mxu0 %v6321_v49  ;;  %1949 = vrot.lane.b32.xlu2 %v6366_v42, %s5889_s1  ;;  %v1257_v49 = vsel %vm1222_vm0, %v6311_v39, 0  ;;  %v1254_v39 = vsel %vm1222_vm0, %v6280_v1, 0 }
 0x19d   : > { %2305 = vrot.lane.b32.xlu1 %v1220_v25, %s5891_s3  ;;  %1597 = vrot.lane.b32.xlu0 %v1220_v25, %s5890_s2  ;;  %v6440_v13 = vpop.permute.xlu2 %2528 }
 0x19e   : > { %1274 = vmatpush.bf16.xpose.msra.mxu3 %v1260_v45 }
 0x19f   : > { %1493 = vmatpush.bf16.msrb.mxu0 %v6291_v18  ;;  %v6438_v46 = vpop.permute.xlu0 %1941 }
 0x1a3   : > { %1494 = vmatpush.bf16.msrb.mxu0 %v6258_v41  ;;  %2536 = vrot.lane.b32.xlu2 %v1477_v30, %s5891_s3  ;;  %v6457_v41 = vld [vmem:[#allocation3 + $0x38] sm:$0xff] }
 0x1a5   : > { %1951 = vrot.lane.b32.xlu0 %v1220_v25, %s5889_s1  ;;  %2540 = vrot.lane.b32.xlu1 %v6399_v31, %s5891_s3  ;;  %v6454_v42 = vpop.permute.xlu2 %2279 }
 0x1a6   : > { %1275 = vmatpush.bf16.xpose.msra.mxu3 %v1257_v49 }
 0x1a7   : > { %1495 = vmatpush.bf16.msrb.mxu0 %v6234_v15  ;;  %v6450_v18 = vpop.permute.xlu0 %2174  ;;  %v6465_v15 = vpop.permute.xlu1 %2293 }
 0x1ab   : > { %2182 = vrot.lane.b32.xlu2 %v1477_v30, %s5889_s1 }
 0x1ad   : > { %1935 = vrot.lane.b32.xlu0 %v6457_v41, %s5889_s1  ;;  %v6469_v48 = vpop.permute.xlu2 %1589 }
 0x1ae   : > { %1276 = vmatpush.bf16.xpose.msra.mxu3 %v1254_v39 }
 0x1af   : > { %v6463_v47 = vpop.permute.xlu0 %1571  ;;  %v6479_v1 = vpop.permute.xlu1 %2526 }
 0x1b3   : > { %1933 = vrot.lane.b32.xlu2 %v6417_v38, %s5889_s1 }
 0x1b5   : > { %2289 = vrot.lane.b32.xlu0 %v6457_v41, %s5891_s3  ;;  %v6485_v59 = vpop.permute.xlu2 %2297 }
 0x1b6   : > { %1277 = vmatpush.bf16.xpose.msra.mxu3 %v1251_v50 }
 0x1b7   : > { %v6475_v53 = vpop.permute.xlu0 %1822  ;;  %v6495_v33 = vpop.permute.xlu1 %1820 }
 0x1bb   : > { %1830 = vrot.lane.b32.xlu2 %v6401_v32, %s5890_s2 }
 0x1bd   : > { %1599 = vrot.lane.b32.xlu0 %v6384_v11, %s5890_s2  ;;  %v6499_v55 = vpop.permute.xlu2 %2176 }
 0x1be   : > { %1278 = vmatpush.bf16.xpose.msra.mxu3 %v1248_v57 }
 0x1bf   : > { %v6487_v60 = vpop.permute.xlu0 %2530  ;;  %v6507_v62 = vpop.permute.xlu1 %1925 }
 0x1c3   : > { %2538 = vrot.lane.b32.xlu2 %v6401_v32, %s5891_s3 }
 0x1c5   : > { %1953 = vrot.lane.b32.xlu0 %v6384_v11, %s5889_s1  ;;  %4740 = vmatmul.msk.bf16.vlgmr.msra.gmra.mxu3 %vm1222_vm0, %v6237_v17  ;;  %v6509_v63 = vpop.permute.xlu2 %1591 }
 0x1c7   : > { %v6497_v61 = vpop.permute.xlu0 %2281  ;;  %v6519_v0 = vpop.permute.xlu1 %1943 }
 0x1c8   : > { %8294 = vst [vmem:[#allocation26_spill] sm:$0xff] %v6497_v61 }
 0x1cb   : > { %2184 = vrot.lane.b32.xlu2 %v6401_v32, %s5889_s1 }
 0x1cd   : > { %1832 = vrot.lane.b32.xlu0 %v6399_v31, %s5890_s2  ;;  %v6523_v2 = vpop.permute.xlu2 %2532 }
 0x1cf   : > { %v6505_v7 = vpop.permute.xlu0 %2299  ;;  %v6527_v51 = vpop.permute.xlu1 %1573 }
 0x1d3   : > { %1581 = vrot.lane.b32.xlu2 %v6457_v41, %s5890_s2 }
 0x1d5   : > { %2186 = vrot.lane.b32.xlu0 %v6399_v31, %s5889_s1  ;;  %4741 = vmatmul.msk.bf16.gmra.mxu3 %vm1222_vm0, %v6269_v56  ;;  %v6531_v4 = vpop.permute.xlu2 %1575  ;;  %v943_v56 = vpop.f32.mrf.mxu0 }
 0x1d7   : > { %v6517_v17 = vpop.permute.xlu0 %1824  ;;  %v6535_v8 = vpop.permute.xlu1 %1927 }
 0x1db   : > { %2307 = vrot.lane.b32.xlu2 %v6384_v11, %s5891_s3  ;;  %v944_v11 = vadd.f32 %v943_v56, %v6217_v52 }
 0x1dd   : > { %v6539_v10 = vpop.permute.xlu2 %1947  ;;  %v945_v12 = vpop.f32.mrf.mxu0  ;;  %v1060_v16 = vmul.f32 0.17677669, %v944_v11 }
 0x1df   : > { %v6525_v3 = vpop.permute.xlu0 %1929  ;;  %v6547_v21 = vpop.permute.xlu1 %1945 }
 0x1e5   : > { %4742 = vmatmul.msk.bf16.gmra.mxu3 %vm1222_vm0, %v6289_v14  ;;  %v946_v14 = vadd.f32 %v945_v12, %v6217_v52  ;;  %v1827_v54 = vpop.permute.xlu2 %1826 }
 0x1e7   : > { %v6533_v6 = vpop.permute.xlu0 %2283  ;;  %v1061_v22 = vmul.f32 0.17677669, %v946_v14  ;;  %v6551_v26 = vpop.permute.xlu1 %2178 }
 0x1e8   : > { %8295 = vst [vmem:[#allocation27_spill] sm:$0xff] %v6533_v6 }
 0x1e9   : > { %v5093_v24 = vpack.c.bf16 %v1061_v22, %v1060_v16 }
 0x1eb   : > { %5141 = vst [vmem:[#allocation3 + $0x30] sm:$0xff] %v5093_v24  }
 0x1ed   : > { %v6553_v28 = vpop.permute.xlu2 %2534 }
 0x1ef   : > { %v6537_v9 = vpop.permute.xlu0 %2301  ;;  %v1594_v52 = vpop.permute.xlu1 %1593 }
 0x1f5   : > { %4743 = vmatmul.msk.bf16.gmra.mxu3 %vm1222_vm0, %v6345_v19  ;;  %v5005_v19 = vld [vmem:[#allocation3 + $0x30] sm:$0xff]  ;;  %v1950_v31 = vpop.permute.xlu2 %1949 }
 0x1f6   : > { %2291 = vrot.lane.b32.xlu2 %v5005_v19, %s5891_s3  ;;  %1583 = vrot.lane.b32.xlu1 %v5005_v19, %s5890_s2 }
 0x1f7   : > { %v6545_v20 = vpop.permute.xlu0 %1931  ;;  %v2181_v34 = vpop.permute.xlu1 %2180 }
 0x1fd   : > { %v6564_v45 = vpop.permute.xlu2 %2536 }
 0x1fe   : > { %1937 = vrot.lane.b32.xlu1 %v5005_v19, %s5889_s1 }
 0x1ff   : > { %v6549_v25 = vpop.permute.xlu0 %2285  ;;  %v6568_v49 = vpop.permute.xlu1 %1577 }
 0x200   : > { %8296 = vst [vmem:[#allocation28_spill] sm:$0xff] %v6549_v25 }
 0x205   : > { %4744 = vmatmul.msk.bf16.gmra.mxu3 %vm1222_vm0, %v6354_v27  ;;  %v2183_v39 = vpop.permute.xlu2 %2182 }
 0x207   : > { %v6557_v30 = vpop.permute.xlu0 %1579  ;;  %v1596_v57 = vpop.permute.xlu1 %1595 }
 0x208   : > { %v1641_v25 = vsel %vm1222_vm0, %v1596_v57, 0 }
 0x20d   : > { %v6574_v56 = vpop.permute.xlu2 %1933 }
 0x20f   : > { %v1598_v32 = vpop.permute.xlu0 %1597  ;;  %v6577_v12 = vpop.permute.xlu1 %2303 }
 0x210   : > { %v1644_v22 = vsel %vm1222_vm0, %v1598_v32, 0  ;;  %v1638_v32 = vsel %vm1222_vm0, %v1594_v52, 0  ;;  %v1992_v52 = vsel %vm1222_vm0, %v6539_v10, 0 }
 0x215   : > { %4745 = vmatmul.msk.bf16.gmra.mxu3 %vm1222_vm0, %v6417_v38  ;;  %v1831_v16 = vpop.permute.xlu2 %1830 }
 0x217   : > { %v1952_v40 = vpop.permute.xlu0 %1951 }
 0x21f   : > { %v6566_v27 = vpop.permute.xlu0 %1935 }
 0x225   : > { %4746 = vmatmul.msk.bf16.gmra.mxu3 %vm1222_vm0, %v6457_v41  ;;  %v1829_v41 = vpop.permute.xlu1 %1828 }
 0x227   : > { %v6572_v50 = vpop.permute.xlu0 %2289 }
 0x228   : > { %8297 = vst [vmem:[#allocation29_spill] sm:$0xff] %v6572_v50 }
 0x22d   : > { %v6584_v6 = vpop.permute.xlu1 %2287 }
 0x22f   : > { %v1600_v11 = vpop.permute.xlu0 %1599 }
 0x230   : > { %v1647_v38 = vsel %vm1222_vm0, %v1600_v11, 0  ;;  %v1998_v11 = vsel %vm1222_vm0, %v1952_v40, 0 }
 0x231   : > { %1649 = vmatpush.bf16.xpose.msrb.mxu1 %v1647_v38  ;;  %v2539_v38 = vpop.permute.xlu2 %2538 }
 0x235   : > { %4747 = vmatmul.msk.bf16.gmra.mxu3 %vm1222_vm0, %v5005_v19 }
 0x237   : > { %v1954_v14 = vpop.permute.xlu0 %1953 }
 0x238   : > { %v2001_v24 = vsel %vm1222_vm0, %v1954_v14, 0  ;;  %v1995_v14 = vsel %vm1222_vm0, %v1950_v31, 0  ;;  %v2306_v31 = vpop.permute.xlu1 %2305 }
 0x239   : > { %1650 = vmatpush.bf16.xpose.msrb.mxu1 %v1644_v22  ;;  %2003 = vmatpush.bf16.xpose.msrb.mxu3 %v2001_v24  ;;  %v2185_v40 = vpop.permute.xlu2 %2184 }
 0x23f   : > { %v1833_v50 = vpop.permute.xlu0 %1832 }
 0x240   : > { %1842 = vmatpush.bf16.msrb.mxu2 %v1833_v50  ;;  %v1635_v50 = vsel %vm1222_vm0, %v6509_v63, 0  ;;  %v1632_v63 = vsel %vm1222_vm0, %v6469_v48, 0  ;;  %v2541_v10 = vpop.permute.xlu1 %2540  ;;  %v1629_v48 = vsel %vm1222_vm0, %v6428_v44, 0  ;;  %v1983_v44 = vsel %vm1222_vm0, %v6438_v46, 0 }
 0x241   : > { %1651 = vmatpush.bf16.xpose.msrb.mxu1 %v1641_v25  ;;  %2004 = vmatpush.bf16.xpose.msrb.mxu3 %v1998_v11  ;;  %v2352_v46 = vsel %vm1222_vm0, %v2306_v31, 0 }
 0x244   : > { %1843 = vmatpush.bf16.msrb.mxu2 %v1831_v16 }
 0x247   : > { %v2187_v19 = vpop.permute.xlu0 %2186 }
 0x248   : > { %v6586_v61 = vpop.f32.mrf.mxu3  ;;  %1844 = vmatpush.bf16.msrb.mxu2 %v1829_v41  ;;  %2196 = vmatpush.bf16.msra.mxu0 %v2187_v19 }
 0x249   : > { %1652 = vmatpush.bf16.xpose.msrb.mxu1 %v1638_v32  ;;  %2005 = vmatpush.bf16.xpose.msrb.mxu3 %v1995_v14 }
 0x24a   : > { %1320 = vmax.xlane.f32.xlu0 %v6586_v61 }
 0x24c   : > { %1845 = vmatpush.bf16.msrb.mxu2 %v1827_v54  ;;  %2197 = vmatpush.bf16.msra.mxu0 %v2185_v40 }
 0x250   : > { %v6591_v25 = vpop.f32.mrf.mxu3  ;;  %1846 = vmatpush.bf16.msrb.mxu2 %v6517_v17  ;;  %2198 = vmatpush.bf16.msra.mxu0 %v2183_v39  ;;  %v1989_v17 = vsel %vm1222_vm0, %v6547_v21, 0  ;;  %v1986_v21 = vsel %vm1222_vm0, %v6519_v0, 0 }
 0x251   : > { %1653 = vmatpush.bf16.xpose.msrb.mxu1 %v1635_v50  ;;  %2006 = vmatpush.bf16.xpose.msrb.mxu3 %v1992_v52 }
 0x252   : > { %1322 = vmax.xlane.f32.xlu2 %v6591_v25 }
 0x254   : > { %1847 = vmatpush.bf16.msrb.mxu2 %v6475_v53  ;;  %2199 = vmatpush.bf16.msra.mxu0 %v2181_v34  ;;  %v6611_v53 = vpop.permute.xlu2 %1581 }
 0x258   : > { %v6600_v54 = vpop.f32.mrf.mxu3  ;;  %1848 = vmatpush.bf16.msrb.mxu2 %v6495_v33  ;;  %2200 = vmatpush.bf16.msra.mxu0 %v6551_v26 }
 0x259   : > { %1654 = vmatpush.bf16.xpose.msrb.mxu1 %v1632_v63  ;;  %2007 = vmatpush.bf16.xpose.msrb.mxu3 %v1989_v17 }
 0x25a   : > { %1324 = vmax.xlane.f32.xlu0 %v6600_v54 }
 0x25c   : > { %1849 = vmatpush.bf16.msrb.mxu2 %v6359_v36  ;;  %2201 = vmatpush.bf16.msra.mxu0 %v6499_v55  ;;  %v2308_v36 = vpop.permute.xlu2 %2307 }
 0x25d   : > { %v2355_v0 = vsel %vm1222_vm0, %v2308_v36, 0 }
 0x260   : > { %2550 = vmatpush.bf16.msra.mxu2 %v2541_v10  ;;  %v6613_v33 = vpop.f32.mrf.mxu3  ;;  %2202 = vmatpush.bf16.msra.mxu0 %v6450_v18  ;;  %v1626_v18 = vsel %vm1222_vm0, %v6452_v5, 0  ;;  %v1980_v5 = vsel %vm1222_vm0, %v6397_v29, 0 }
 0x261   : > { %1655 = vmatpush.bf16.xpose.msrb.mxu1 %v1629_v48  ;;  %2008 = vmatpush.bf16.xpose.msrb.mxu3 %v1986_v21 }
 0x262   : > { %1326 = vmax.xlane.f32.xlu1 %v6613_v33 }
 0x264   : > { %2551 = vmatpush.bf16.msra.mxu2 %v2539_v38  ;;  %2203 = vmatpush.bf16.msra.mxu0 %v6376_v58 }
 0x268   : > { %2552 = vmatpush.bf16.msra.mxu2 %v6564_v45  ;;  %v6623_v55 = vpop.f32.mrf.mxu3 }
 0x269   : > { %1656 = vmatpush.bf16.xpose.msrb.mxu1 %v1626_v18  ;;  %2009 = vmatpush.bf16.xpose.msrb.mxu3 %v1983_v44 }
 0x26a   : > { %1328 = vmax.xlane.f32.xlu0 %v6623_v55 }
 0x26c   : > { %2553 = vmatpush.bf16.msra.mxu2 %v6553_v28  ;;  %v1584_v28 = vpop.permute.xlu1 %1583 }
 0x270   : > { %2554 = vmatpush.bf16.msra.mxu2 %v6523_v2  ;;  %v6633_v58 = vpop.f32.mrf.mxu3  ;;  %4748 = vmatmul.msk.bf16.vlgmr.msrb.gmra.mxu1 %vm1222_vm0, %v6393_v23  ;;  %v2349_v23 = vsel %vm1222_vm0, %v6577_v12, 0 }
 0x271   : > { %2357 = vmatpush.bf16.xpose.msra.mxu1 %v2355_v0  ;;  %2010 = vmatpush.bf16.xpose.msrb.mxu3 %v1980_v5 }
 0x272   : > { %1330 = vmax.xlane.f32.xlu2 %v6633_v58 }
 0x274   : > { %2555 = vmatpush.bf16.msra.mxu2 %v6487_v60 }
 0x278   : > { %2556 = vmatpush.bf16.msra.mxu2 %v6440_v13  ;;  %v6643_v26 = vpop.f32.mrf.mxu3  ;;  %4756 = vmatmul.msk.bf16.vlgmr.msrb.gmra.mxu3 %vm1222_vm0, %v6410_v35  ;;  %v2346_v13 = vsel %vm1222_vm0, %v6537_v9, 0 }
 0x279   : > { %2358 = vmatpush.bf16.xpose.msra.mxu1 %v2352_v46 }
 0x27a   : > { %1332 = vmax.xlane.f32.xlu2 %v6643_v26 }
 0x27c   : > { %2557 = vmatpush.bf16.msra.mxu2 %v6479_v1  ;;  %v2343_v1 = vsel %vm1222_vm0, %v6505_v7, 0  ;;  %v2337_v7 = vsel %vm1222_vm0, %v6425_v43, 0 }
 0x280   : > { %v6651_v29 = vpop.f32.mrf.mxu3  ;;  %4749 = vmatmul.msk.bf16.gmra.mxu1 %vm1222_vm0, %v6463_v47  ;;  %v2340_v47 = vsel %vm1222_vm0, %v6485_v59, 0  ;;  %v2334_v59 = vsel %vm1222_vm0, %v6465_v15, 0  ;;  %v6700_v15 = vpop.permute.xlu2 %2291 }
 0x281   : > { %2359 = vmatpush.bf16.xpose.msra.mxu1 %v2349_v23  ;;  %1334 = vmax.xlane.f32.xlu0 %v6651_v29 }
 0x288   : > { %v6658_v35 = vpop.f32.mrf.mxu3  ;;  %4757 = vmatmul.msk.bf16.gmra.mxu3 %vm1222_vm0, %v6507_v62 }
 0x289   : > { %2360 = vmatpush.bf16.xpose.msra.mxu1 %v2346_v13  ;;  %1336 = vmax.xlane.f32.xlu1 %v6658_v35 }
 0x290   : > { %v6665_v60 = vpop.f32.mrf.mxu3  ;;  %4750 = vmatmul.msk.bf16.gmra.mxu1 %vm1222_vm0, %v6527_v51 }
 0x291   : > { %2361 = vmatpush.bf16.xpose.msra.mxu1 %v2343_v1  ;;  %1338 = vmax.xlane.f32.xlu2 %v6665_v60 }
 0x298   : > { %v6672_v2 = vpop.f32.mrf.mxu3  ;;  %4758 = vmatmul.msk.bf16.gmra.mxu3 %vm1222_vm0, %v6535_v8 }
 0x299   : > { %2362 = vmatpush.bf16.xpose.msra.mxu1 %v2340_v47  ;;  %1340 = vmax.xlane.f32.xlu0 %v6672_v2 }
 0x2a0   : > { %v6679_v62 = vpop.f32.mrf.mxu3  ;;  %4751 = vmatmul.msk.bf16.gmra.mxu1 %vm1222_vm0, %v6531_v4 }
 0x2a1   : > { %2363 = vmatpush.bf16.xpose.msra.mxu1 %v2337_v7  ;;  %1342 = vmax.xlane.f32.xlu0 %v6679_v62 }
 0x2a8   : > { %v6686_v51 = vpop.f32.mrf.mxu3  ;;  %4759 = vmatmul.msk.bf16.gmra.mxu3 %vm1222_vm0, %v6525_v3 }
 0x2a9   : > { %2364 = vmatpush.bf16.xpose.msra.mxu1 %v2334_v59  ;;  %1344 = vmax.xlane.f32.xlu2 %v6686_v51 }
 0x2b0   : > { %v6691_v43 = vpop.f32.mrf.mxu3  ;;  %4752 = vmatmul.msk.bf16.gmra.mxu1 %vm1222_vm0, %v6568_v49 }
 0x2b1   : > { %1346 = vmax.xlane.f32.xlu0 %v6691_v43 }
 0x2b8   : > { %v6696_v4 = vpop.f32.mrf.mxu3  ;;  %4760 = vmatmul.msk.bf16.gmra.mxu3 %vm1222_vm0, %v6545_v20  ;;  %v1938_v20 = vpop.permute.xlu1 %1937 }
 0x2bd   : > { %v1321_v8 = vpop.xlane.xlu0 %1320 }
 0x2be   : > { %v1352_v3 = vsub.f32 %v6586_v61, %v1321_v8  ;;  %v8298_v8 = vld [vmem:[#allocation26_spill] sm:$0xff] }
 0x2c0   : > { %v6702_v9 = vpop.f32.mrf.mxu3  ;;  %4753 = vmatmul.msk.bf16.gmra.mxu1 %vm1222_vm0, %v6557_v30  ;;  %v1368_v34 = vmul.f32 1.442695, %v1352_v3 }
 0x2c1   : > { %1350 = vmax.xlane.f32.xlu0 %v6702_v9 }
 0x2c2   : > { %5395 = vpow2.f32 %v1368_v34 }
 0x2c5   : > { %v1323_v45 = vpop.xlane.xlu2 %1322 }
 0x2c6   : > { %v1353_v49 = vsub.f32 %v6591_v25, %v1323_v45 }
 0x2c8   : > { %v1370_v39 = vmul.f32 1.442695, %v1353_v49  ;;  %4761 = vmatmul.msk.bf16.gmra.mxu3 %vm1222_vm0, %v6574_v56  ;;  %v5396_v12 = vpop.eup %5395 }
 0x2ca   : > { %5397 = vpow2.f32 %v1370_v39 }
 0x2cd   : > { %v1325_v57 = vpop.xlane.xlu0 %1324 }
 0x2ce   : > { %v1354_v61 = vsub.f32 %v6600_v54, %v1325_v57 }
 0x2d0   : > { %v5398_v16 = vpop.eup %5397  ;;  %4754 = vmatmul.msk.bf16.gmra.mxu1 %vm1222_vm0, %v6611_v53  ;;  %v1372_v22 = vmul.f32 1.442695, %v1354_v61 }
 0x2d1   : > { %1402 = vadd.xlane.f32.xlu0 %v5398_v16  ;;  %v1432_v30 = vpack.c.bf16 %v5398_v16, %v5396_v12 }
 0x2d2   : > { %5399 = vpow2.f32 %v1372_v22 }
 0x2d3   : > { %1496 = vmatmul.bf16.vlgmr.msrb.gmra.mxu0 %v1432_v30  ;;  %v8300_v30 = vld [vmem:[#allocation27_spill] sm:$0xff] }
 0x2d5   : > { %v1327_v24 = vpop.xlane.xlu1 %1326 }
 0x2d6   : > { %v1355_v41 = vsub.f32 %v6613_v33, %v1327_v24 }
 0x2d8   : > { %v1374_v11 = vmul.f32 1.442695, %v1355_v41  ;;  %4762 = vmatmul.msk.bf16.gmra.mxu3 %vm1222_vm0, %v6566_v27  ;;  %v6717_v38 = vpop.eup %5399 }
 0x2da   : > { %5401 = vpow2.f32 %v1374_v11 }
 0x2dd   : > { %v1329_v56 = vpop.xlane.xlu0 %1328 }
 0x2de   : > { %v1356_v32 = vsub.f32 %v6623_v55, %v1329_v56 }
 0x2e0   : > { %v5402_v19 = vpop.eup %5401  ;;  %4755 = vmatmul.msk.bf16.gmra.mxu1 %vm1222_vm0, %v1584_v28  ;;  %v1376_v40 = vmul.f32 1.442695, %v1356_v32 }
 0x2e1   : > { %v1433_v14 = vpack.c.bf16 %v5402_v19, %v6717_v38 }
 0x2e2   : > { %5403 = vpow2.f32 %v1376_v40  ;;  %v8303_v40 = vld [vmem:[#allocation28_spill] sm:$0xff] }
 0x2e3   : > { %1501 = vmatmul.bf16.gmra.mxu0 %v1433_v14 }
 0x2e5   : > { %v1331_v25 = vpop.xlane.xlu2 %1330 }
 0x2e6   : > { %v1357_v50 = vsub.f32 %v6633_v58, %v1331_v25 }
 0x2e8   : > { %v1378_v52 = vmul.f32 1.442695, %v1357_v50  ;;  %4763 = vmatmul.msk.bf16.gmra.mxu3 %vm1222_vm0, %v1938_v20  ;;  %v5404_v54 = vpop.eup %5403 }
 0x2ea   : > { %5405 = vpow2.f32 %v1378_v52 }
 0x2ed   : > { %v1333_v27 = vpop.xlane.xlu2 %1332  ;;  %v6724_v31 = vpop.f32.mrf.mxu1 }
 0x2ee   : > { %1698 = vmax.xlane.f32.xlu1 %v6724_v31  ;;  %v1358_v17 = vsub.f32 %v6643_v26, %v1333_v27 }
 0x2f0   : > { %v6727_v63 = vpop.eup %5405  ;;  %4764 = vmatmul.msk.bf16.vlgmr.msra.gmra.mxu1 %vm1222_vm0, %v6413_v37  ;;  %v1380_v53 = vmul.f32 1.442695, %v1358_v17 }
 0x2f1   : > { %v1434_v10 = vpack.c.bf16 %v6727_v63, %v5404_v54 }
 0x2f2   : > { %5407 = vpow2.f32 %v1380_v53 }
 0x2f3   : > { %1506 = vmatmul.bf16.gmra.mxu0 %v1434_v10 }
 0x2f4   : > { %v1335_v33 = vpop.xlane.xlu0 %1334 }
 0x2f5   : > { %v1359_v48 = vsub.f32 %v6651_v29, %v1335_v33  ;;  %v6734_v21 = vpop.f32.mrf.mxu1  ;;  %v8304_v33 = vld [vmem:[#allocation29_spill] sm:$0xff] }
 0x2f6   : > { %1700 = vmax.xlane.f32.xlu2 %v6734_v21  ;;  %1348 = vmax.xlane.f32.xlu1 %v6696_v4 }
 0x2f7   : > { %v1382_v36 = vmul.f32 1.442695, %v1359_v48 }
 0x2f8   : > { %v6742_v44 = vpop.eup %5407 }
 0x2f9   : > { %5409 = vpow2.f32 %v1382_v36 }
 0x2fb   : > { %v6738_v55 = vpop.f32.mrf.mxu3 }
 0x2fc   : > { %v1337_v18 = vpop.xlane.xlu1 %1336 }
 0x2fd   : > { %v6740_v37 = vpop.f32.mrf.mxu1  ;;  %v1360_v58 = vsub.f32 %v6658_v35, %v1337_v18 }
 0x2fe   : > { %1400 = vadd.xlane.f32.xlu2 %v5396_v12  ;;  %1702 = vmax.xlane.f32.xlu1 %v6740_v37 }
 0x2ff   : > { %v6745_v0 = vpop.eup %5409  ;;  %v1384_v26 = vmul.f32 1.442695, %v1360_v58 }
 0x300   : > { %4765 = vmatmul.msk.bf16.gmra.mxu1 %vm1222_vm0, %v6454_v42  ;;  %v1435_v5 = vpack.c.bf16 %v6745_v0, %v6742_v44 }
 0x301   : > { %5411 = vpow2.f32 %v1384_v26 }
 0x303   : > { %1511 = vmatmul.bf16.gmra.mxu0 %v1435_v5  ;;  %v6752_v46 = vpop.f32.mrf.mxu3 }
 0x304   : > { %v1339_v23 = vpop.xlane.xlu2 %1338  ;;  %2054 = vmax.xlane.f32.xlu0 %v6752_v46 }
 0x305   : > { %v1361_v29 = vsub.f32 %v6665_v60, %v1339_v23  ;;  %v6756_v13 = vpop.f32.mrf.mxu1 }
 0x306   : > { %1704 = vmax.xlane.f32.xlu2 %v6756_v13  ;;  %2052 = vmax.xlane.f32.xlu1 %v6738_v55 }
 0x307   : > { %v1386_v35 = vmul.f32 1.442695, %v1361_v29  ;;  %v6764_v7 = vpop.eup %5411 }
 0x309   : > { %5413 = vpow2.f32 %v1386_v35 }
 0x30b   : > { %v6760_v42 = vpop.f32.mrf.mxu3 }
 0x30c   : > { %v1341_v1 = vpop.xlane.xlu0 %1340  ;;  %1406 = vadd.xlane.f32.xlu0 %v5402_v19 }
 0x30d   : > { %v6762_v47 = vpop.f32.mrf.mxu1  ;;  %v1362_v59 = vsub.f32 %v6672_v2, %v1341_v1 }
 0x30e   : > { %1706 = vmax.xlane.f32.xlu2 %v6762_v47  ;;  %2056 = vmax.xlane.f32.xlu1 %v6760_v42 }
 0x30f   : > { %v6768_v60 = vpop.eup %5413  ;;  %v1388_v34 = vmul.f32 1.442695, %v1362_v59 }
 0x310   : > { %4766 = vmatmul.msk.bf16.gmra.mxu1 %vm1222_vm0, %v8298_v8  ;;  %v1436_v3 = vpack.c.bf16 %v6768_v60, %v6764_v7 }
 0x311   : > { %5415 = vpow2.f32 %v1388_v34 }
 0x313   : > { %1516 = vmatmul.bf16.gmra.mxu0 %v1436_v3  ;;  %v6775_v28 = vpop.f32.mrf.mxu3 }
 0x314   : > { %v1343_v45 = vpop.xlane.xlu0 %1342  ;;  %1408 = vadd.xlane.f32.xlu0 %v5404_v54 }
 0x315   : > { %v1363_v49 = vsub.f32 %v6679_v62, %v1343_v45  ;;  %v6778_v39 = vpop.f32.mrf.mxu1 }
 0x316   : > { %1404 = vadd.xlane.f32.xlu2 %v6717_v38  ;;  %1708 = vmax.xlane.f32.xlu1 %v6778_v39 }
 0x317   : > { %v1390_v2 = vmul.f32 1.442695, %v1363_v49  ;;  %v6786_v16 = vpop.eup %5415 }
 0x319   : > { %5417 = vpow2.f32 %v1390_v2 }
 0x31b   : > { %v6782_v20 = vpop.f32.mrf.mxu3 }
 0x31c   : > { %v1345_v57 = vpop.xlane.xlu2 %1344 }
 0x31d   : > { %v6784_v12 = vpop.f32.mrf.mxu1  ;;  %v1364_v61 = vsub.f32 %v6686_v51, %v1345_v57 }
 0x31e   : > { %1710 = vmax.xlane.f32.xlu1 %v6784_v12  ;;  %2058 = vmax.xlane.f32.xlu2 %v6775_v28 }
 0x31f   : > { %v6790_v62 = vpop.eup %5417  ;;  %v1392_v41 = vmul.f32 1.442695, %v1364_v61 }
 0x320   : > { %8299 = vst [vmem:[#allocation26_spill] sm:$0xff] %v6790_v62  ;;  %4767 = vmatmul.msk.bf16.gmra.mxu1 %vm1222_vm0, %v8300_v30  ;;  %v1437_v22 = vpack.c.bf16 %v6790_v62, %v6786_v16 }
 0x321   : > { %5419 = vpow2.f32 %v1392_v41 }
 0x323   : > { %1521 = vmatmul.bf16.gmra.mxu0 %v1437_v22  ;;  %v6797_v24 = vpop.f32.mrf.mxu3 }
 0x324   : > { %v1347_v11 = vpop.xlane.xlu0 %1346 }
 0x325   : > { %v1365_v56 = vsub.f32 %v6691_v43, %v1347_v11  ;;  %v6800_v38 = vpop.f32.mrf.mxu1 }
 0x326   : > { %1712 = vmax.xlane.f32.xlu0 %v6800_v38  ;;  %1410 = vadd.xlane.f32.xlu2 %v6727_v63 }
 0x327   : > { %v1394_v51 = vmul.f32 1.442695, %v1365_v56  ;;  %2060 = vmax.xlane.f32.xlu1 %v6782_v20  ;;  %v6809_v14 = vpop.eup %5419 }
 0x328   : > { %8301 = vst [vmem:[#allocation27_spill] sm:$0xff] %v6809_v14 }
 0x329   : > { %5421 = vpow2.f32 %v1394_v51 }
 0x32b   : > { %v6805_v19 = vpop.f32.mrf.mxu3 }
 0x32d   : > { %v6807_v32 = vpop.f32.mrf.mxu1 }
 0x32e   : > { %2062 = vmax.xlane.f32.xlu2 %v6797_v24 }
 0x32f   : > { %v6812_v43 = vpop.eup %5421  ;;  %1714 = vmax.xlane.f32.xlu1 %v6807_v32 }
 0x330   : > { %8302 = vst [vmem:[#allocation30_spill] sm:$0xff] %v6812_v43  ;;  %4768 = vmatmul.msk.bf16.gmra.mxu1 %vm1222_vm0, %v8303_v40  ;;  %v1438_v25 = vpack.c.bf16 %v6812_v43, %v6809_v14 }
 0x333   : > { %1526 = vmatmul.bf16.gmra.mxu0 %v1438_v25  ;;  %v6819_v50 = vpop.f32.mrf.mxu3 }
 0x334   : > { %2066 = vmax.xlane.f32.xlu0 %v6819_v50  ;;  %v1351_v5 = vpop.xlane.xlu0 %1350 }
 0x335   : > { %v6822_v52 = vpop.f32.mrf.mxu1  ;;  %v1367_v35 = vsub.f32 %v6702_v9, %v1351_v5 }
 0x336   : > { %2064 = vmax.xlane.f32.xlu2 %v6805_v19 }
 0x337   : > { %v1398_v59 = vmul.f32 1.442695, %v1367_v35 }
 0x33b   : > { %v6825_v27 = vpop.f32.mrf.mxu3 }
 0x33d   : > { %v6827_v54 = vpop.f32.mrf.mxu1 }
 0x33e   : > { %1716 = vmax.xlane.f32.xlu2 %v6822_v52  ;;  %1718 = vmax.xlane.f32.xlu0 %v6827_v54 }
 0x340   : > { %4769 = vmatmul.msk.bf16.gmra.mxu1 %vm1222_vm0, %v6584_v6 }
 0x343   : > { %v6833_v63 = vpop.f32.mrf.mxu3 }
 0x344   : > { %2070 = vmax.xlane.f32.xlu1 %v6833_v63  ;;  %v6878_v61 = vpop.xlane.xlu0 %1402 }
 0x345   : > { %v6836_v17 = vpop.f32.mrf.mxu1  ;;  %8305 = vst [vmem:[#allocation28_spill] sm:$0xff] %v6878_v61 }
 0x346   : > { %2068 = vmax.xlane.f32.xlu0 %v6825_v27 }
 0x34b   : > { %v6839_v10 = vpop.f32.mrf.mxu3 }
 0x34c   : > { %2072 = vmax.xlane.f32.xlu1 %v6839_v10 }
 0x34d   : > { %v6842_v53 = vpop.f32.mrf.mxu1 }
 0x34e   : > { %1720 = vmax.xlane.f32.xlu0 %v6836_v17 }
 0x350   : > { %4770 = vmatmul.msk.bf16.gmra.mxu1 %vm1222_vm0, %v8304_v33  ;;  %v6873_v49 = vpop.f32.mrf.mxu0 }
 0x353   : > { %v6847_v6 = vpop.f32.mrf.mxu3 }
 0x354   : > { %2074 = vmax.xlane.f32.xlu2 %v6847_v6 }
 0x355   : > { %v6850_v48 = vpop.f32.mrf.mxu1 }
 0x356   : > { %1722 = vmax.xlane.f32.xlu0 %v6842_v53  ;;  %1724 = vmax.xlane.f32.xlu1 %v6850_v48 }
 0x358   : > { %v6892_v33 = vpop.f32.mrf.mxu0 }
 0x359   : > { %8308 = vst [vmem:[#allocation32_spill] sm:$0xff] %v6892_v33 }
 0x35b   : > { %v6854_v36 = vpop.f32.mrf.mxu3 }
 0x35d   : > { %v6856_v18 = vpop.f32.mrf.mxu1 }
 0x35e   : > { %1726 = vmax.xlane.f32.xlu2 %v6856_v18 }
 0x360   : > { %4771 = vmatmul.msk.bf16.gmra.mxu1 %vm1222_vm0, %v6700_v15 }
 0x361   : > { %v1699_v58 = vpop.xlane.xlu1 %1698 }
 0x362   : > { %v1730_v26 = vsub.f32 %v6724_v31, %v1699_v58 }
 0x363   : > { %v6862_v23 = vpop.f32.mrf.mxu3 }
 0x364   : > { %v1746_v29 = vmul.f32 1.442695, %v1730_v26 }
 0x365   : > { %v6865_v1 = vpop.f32.mrf.mxu1 }
 0x366   : > { %5423 = vpow2.f32 %v1746_v29  ;;  %1728 = vmax.xlane.f32.xlu0 %v6865_v1  ;;  %2076 = vmax.xlane.f32.xlu2 %v6854_v36 }
 0x367   : > { %5425 = vpow2.f32 %v1398_v59 }
 0x369   : > { %v1701_v8 = vpop.xlane.xlu2 %1700  ;;  %v1349_v3 = vpop.xlane.xlu1 %1348 }
 0x36a   : > { %v1731_v15 = vsub.f32 %v6734_v21, %v1701_v8  ;;  %v1366_v34 = vsub.f32 %v6696_v4, %v1349_v3 }
 0x36b   : > { %v6871_v31 = vpop.f32.mrf.mxu3 }
 0x36c   : > { %v5424_v45 = vpop.eup %5423  ;;  %v1748_v9 = vmul.f32 1.442695, %v1731_v15  ;;  %v1396_v2 = vmul.f32 1.442695, %v1366_v34 }
 0x36d   : > { %v6875_v57 = vpop.f32.mrf.mxu1  ;;  %v6883_v22 = vpop.eup %5425 }
 0x36e   : > { %5427 = vpow2.f32 %v1748_v9  ;;  %1778 = vadd.xlane.f32.xlu2 %v5424_v45  ;;  %2078 = vmax.xlane.f32.xlu0 %v6862_v23  ;;  %8306 = vst [vmem:[#allocation29_spill] sm:$0xff] %v6883_v22  ;;  %v6904_v9 = vpop.f32.mrf.mxu0 }
 0x36f   : > { %5429 = vpow2.f32 %v1396_v2 }
 0x371   : > { %v6880_v21 = vpop.xlane.xlu2 %1400  ;;  %v1703_v4 = vpop.xlane.xlu1 %1702 }
 0x372   : > { %v1732_v30 = vsub.f32 %v6740_v37, %v1703_v4 }
 0x373   : > { %v6885_v41 = vpop.f32.mrf.mxu3 }
 0x374   : > { %v5428_v11 = vpop.eup %5427  ;;  %v1750_v56 = vmul.f32 1.442695, %v1732_v30  ;;  %2082 = vmax.xlane.f32.xlu1 %v6885_v41 }
 0x375   : > { %v6888_v51 = vpop.eup %5429  ;;  %v6890_v40 = vpop.f32.mrf.mxu1  ;;  %v1810_v25 = vpack.c.bf16 %v5428_v11, %v5424_v45 }
 0x376   : > { %8307 = vst [vmem:[#allocation31_spill] sm:$0xff] %v6888_v51  ;;  %5431 = vpow2.f32 %v1750_v56  ;;  %2408 = vmax.xlane.f32.xlu2 %v6890_v40  ;;  %2406 = vmax.xlane.f32.xlu0 %v6875_v57  ;;  %v1439_v37 = vpack.c.bf16 %v6883_v22, %v6888_v51 }
 0x377   : > { %1850 = vmatmul.bf16.vlgmr.msrb.gmra.mxu2 %v1810_v25  ;;  %v2055_v58 = vpop.xlane.xlu0 %2054 }
 0x378   : > { %1531 = vmatmul.bf16.gmra.mxu0 %v1439_v37  ;;  %v2085_v5 = vsub.f32 %v6752_v46, %v2055_v58 }
 0x379   : > { %v1705_v26 = vpop.xlane.xlu2 %1704  ;;  %v2053_v29 = vpop.xlane.xlu1 %2052 }
 0x37a   : > { %v2102_v35 = vmul.f32 1.442695, %v2085_v5  ;;  %v1733_v59 = vsub.f32 %v6756_v13, %v1705_v26  ;;  %v2084_v8 = vsub.f32 %v6738_v55, %v2053_v29 }
 0x37c   : > { %v5432_v3 = vpop.eup %5431  ;;  %v1752_v15 = vmul.f32 1.442695, %v1733_v59  ;;  %v2100_v34 = vmul.f32 1.442695, %v2084_v8  ;;  %5433 = vpow2.f32 %v2102_v35  ;;  %v6915_v59 = vpop.f32.mrf.mxu0 }
 0x37d   : > { %v6901_v45 = vpop.f32.mrf.mxu1 }
 0x37e   : > { %5435 = vpow2.f32 %v1752_v15  ;;  %1782 = vadd.xlane.f32.xlu2 %v5432_v3  ;;  %2080 = vmax.xlane.f32.xlu0 %v6871_v31 }
 0x37f   : > { %5437 = vpow2.f32 %v2100_v34  ;;  %v6910_v26 = vpop.xlane.xlu0 %1406 }
 0x381   : > { %v1707_v46 = vpop.xlane.xlu2 %1706  ;;  %v2057_v2 = vpop.xlane.xlu1 %2056 }
 0x382   : > { %v2086_v4 = vsub.f32 %v6760_v42, %v2057_v2  ;;  %v5434_v13 = vpop.eup %5433  ;;  %v1734_v25 = vsub.f32 %v6762_v47, %v1707_v46 }
 0x384   : > { %v5436_v30 = vpop.eup %5435  ;;  %v2104_v55 = vmul.f32 1.442695, %v2086_v4  ;;  %v1754_v42 = vmul.f32 1.442695, %v1734_v25 }
 0x385   : > { %v5438_v56 = vpop.eup %5437  ;;  %v6908_v37 = vpop.f32.mrf.mxu1  ;;  %v1811_v58 = vpack.c.bf16 %v5436_v30, %v5432_v3 }
 0x386   : > { %v2164_v5 = vpack.c.bf16 %v5434_v13, %v5438_v56  ;;  %2132 = vadd.xlane.f32.xlu1 %v5438_v56  ;;  %2410 = vmax.xlane.f32.xlu2 %v6901_v45  ;;  %5439 = vpow2.f32 %v2104_v55 }
 0x387   : > { %1780 = vadd.xlane.f32.xlu0 %v5428_v11  ;;  %1855 = vmatmul.bf16.gmra.mxu2 %v1811_v58  ;;  %5441 = vpow2.f32 %v1754_v42  ;;  %v6920_v11 = vpop.xlane.xlu0 %1408 }
 0x388   : > { %2204 = vmatmul.bf16.vlgmr.msra.gmra.mxu0 %v2164_v5 }
 0x389   : > { %v6913_v29 = vpop.xlane.xlu2 %1404  ;;  %v1709_v35 = vpop.xlane.xlu1 %1708 }
 0x38a   : > { %v1735_v47 = vsub.f32 %v6778_v39, %v1709_v35  ;;  %v6924_v39 = vpop.f32.mrf.mxu0 }
 0x38c   : > { %v1756_v8 = vmul.f32 1.442695, %v1735_v47  ;;  %v5440_v3 = vpop.eup %5439 }
 0x38d   : > { %v6918_v15 = vpop.f32.mrf.mxu1  ;;  %v5442_v55 = vpop.eup %5441 }
 0x38e   : > { %5443 = vpow2.f32 %v1756_v8  ;;  %2136 = vadd.xlane.f32.xlu1 %v5440_v3  ;;  %2134 = vadd.xlane.f32.xlu2 %v5434_v13 }
 0x38f   : > { %1784 = vadd.xlane.f32.xlu0 %v5436_v30 }
 0x391   : > { %v1711_v34 = vpop.xlane.xlu1 %1710  ;;  %v2059_v46 = vpop.xlane.xlu2 %2058 }
 0x392   : > { %v1736_v2 = vsub.f32 %v6784_v12, %v1711_v34  ;;  %v2087_v4 = vsub.f32 %v6775_v28, %v2059_v46 }
 0x394   : > { %v5444_v56 = vpop.eup %5443  ;;  %v1758_v25 = vmul.f32 1.442695, %v1736_v2  ;;  %v2106_v58 = vmul.f32 1.442695, %v2087_v4  ;;  %v6935_v4 = vpop.f32.mrf.mxu0 }
 0x395   : > { %v6926_v5 = vpop.f32.mrf.mxu1  ;;  %v1812_v42 = vpack.c.bf16 %v5444_v56, %v5442_v55 }
 0x396   : > { %5445 = vpow2.f32 %v1758_v25  ;;  %1786 = vadd.xlane.f32.xlu2 %v5442_v55 }
 0x397   : > { %5447 = vpow2.f32 %v2106_v58  ;;  %2412 = vmax.xlane.f32.xlu0 %v6908_v37  ;;  %1860 = vmatmul.bf16.gmra.mxu2 %v1812_v42 }
 0x399   : > { %v1713_v13 = vpop.xlane.xlu0 %1712  ;;  %v6929_v30 = vpop.xlane.xlu2 %1410 }
 0x39a   : > { %v1737_v28 = vsub.f32 %v6800_v38, %v1713_v13  ;;  %v2061_v12 = vpop.xlane.xlu1 %2060 }
 0x39b   : > { %v2088_v35 = vsub.f32 %v6782_v20, %v2061_v12 }
 0x39c   : > { %v5446_v47 = vpop.eup %5445  ;;  %v1760_v8 = vmul.f32 1.442695, %v1737_v28 }
 0x39d   : > { %v5448_v34 = vpop.eup %5447  ;;  %v2108_v46 = vmul.f32 1.442695, %v2088_v35  ;;  %v6933_v2 = vpop.f32.mrf.mxu1  ;;  %1790 = vadd.xlane.f32.xlu1 %v5446_v47 }
 0x39e   : > { %5449 = vpow2.f32 %v1760_v8  ;;  %2414 = vmax.xlane.f32.xlu2 %v6918_v15  ;;  %v2165_v55 = vpack.c.bf16 %v5448_v34, %v5440_v3  ;;  %v6943_v3 = vpop.f32.mrf.mxu0 }
 0x39f   : > { %5451 = vpow2.f32 %v2108_v46  ;;  %1788 = vadd.xlane.f32.xlu0 %v5444_v56 }
 0x3a0   : > { %2209 = vmatmul.bf16.gmra.mxu0 %v2165_v55 }
 0x3a1   : > { %v2063_v38 = vpop.xlane.xlu2 %2062 }
 0x3a2   : > { %v2089_v25 = vsub.f32 %v6797_v24, %v2063_v38  ;;  %v1715_v58 = vpop.xlane.xlu1 %1714 }
 0x3a3   : > { %v1738_v35 = vsub.f32 %v6807_v32, %v1715_v58 }
 0x3a4   : > { %v5450_v20 = vpop.eup %5449  ;;  %v2110_v42 = vmul.f32 1.442695, %v2089_v25 }
 0x3a5   : > { %v5452_v13 = vpop.eup %5451  ;;  %v6939_v28 = vpop.f32.mrf.mxu1  ;;  %v1813_v12 = vpack.c.bf16 %v5450_v20, %v5446_v47  ;;  %v1762_v46 = vmul.f32 1.442695, %v1738_v35 }
 0x3a6   : > { %5453 = vpow2.f32 %v2110_v42  ;;  %2140 = vadd.xlane.f32.xlu1 %v5452_v13  ;;  %2138 = vadd.xlane.f32.xlu2 %v5448_v34  ;;  %v6952_v42 = vpop.f32.mrf.mxu0 }
 0x3a7   : > { %2416 = vmax.xlane.f32.xlu0 %v6926_v5  ;;  %1865 = vmatmul.bf16.gmra.mxu2 %v1813_v12  ;;  %v2067_v56 = vpop.xlane.xlu0 %2066 }
 0x3a8   : > { %v2091_v32 = vsub.f32 %v6819_v50, %v2067_v56 }
 0x3a9   : > { %v2065_v8 = vpop.xlane.xlu2 %2064 }
 0x3aa   : > { %v2090_v24 = vsub.f32 %v6805_v19, %v2065_v8  ;;  %v2114_v12 = vmul.f32 1.442695, %v2091_v32 }
 0x3ac   : > { %v5454_v55 = vpop.eup %5453  ;;  %v2112_v38 = vmul.f32 1.442695, %v2090_v24 }
 0x3ad   : > { %v6946_v25 = vpop.f32.mrf.mxu1  ;;  %v2166_v47 = vpack.c.bf16 %v5454_v55, %v5452_v13 }
 0x3ae   : > { %5455 = vpow2.f32 %v2112_v38  ;;  %2420 = vmax.xlane.f32.xlu1 %v6939_v28  ;;  %1792 = vadd.xlane.f32.xlu2 %v5450_v20 }
 0x3af   : > { %5457 = vpow2.f32 %v1762_v46  ;;  %2418 = vmax.xlane.f32.xlu0 %v6933_v2 }
 0x3b0   : > { %2214 = vmatmul.bf16.gmra.mxu0 %v2166_v47  ;;  %v6957_v47 = vpop.f32.mrf.mxu0 }
 0x3b1   : > { %v1717_v34 = vpop.xlane.xlu2 %1716  ;;  %v1719_v58 = vpop.xlane.xlu0 %1718  ;;  %8309 = vst [vmem:[#allocation33_spill] sm:$0xff] %v6957_v47 }
 0x3b2   : > { %v1739_v19 = vsub.f32 %v6822_v52, %v1717_v34  ;;  %v1740_v32 = vsub.f32 %v6827_v54, %v1719_v58 }
 0x3b4   : > { %v5456_v35 = vpop.eup %5455  ;;  %v1764_v8 = vmul.f32 1.442695, %v1739_v19 }
 0x3b5   : > { %v5458_v13 = vpop.eup %5457  ;;  %v6954_v24 = vpop.f32.mrf.mxu1 }
 0x3b6   : > { %5459 = vpow2.f32 %v1764_v8  ;;  %1794 = vadd.xlane.f32.xlu1 %v5458_v13  ;;  %2142 = vadd.xlane.f32.xlu2 %v5454_v55 }
 0x3b7   : > { %5461 = vpow2.f32 %v2114_v12  ;;  %2144 = vadd.xlane.f32.xlu0 %v5456_v35  ;;  %v2071_v50 = vpop.xlane.xlu1 %2070 }
 0x3b8   : > { %v2093_v12 = vsub.f32 %v6833_v63, %v2071_v50 }
 0x3b9   : > { %v2069_v20 = vpop.xlane.xlu0 %2068 }
 0x3ba   : > { %v2092_v56 = vsub.f32 %v6825_v27, %v2069_v20  ;;  %v1766_v27 = vmul.f32 1.442695, %v1740_v32  ;;  %v2118_v47 = vmul.f32 1.442695, %v2093_v12 }
 0x3bc   : > { %v5460_v46 = vpop.eup %5459  ;;  %v2116_v38 = vmul.f32 1.442695, %v2092_v56 }
 0x3bd   : > { %v5462_v52 = vpop.eup %5461  ;;  %v6960_v34 = vpop.f32.mrf.mxu1  ;;  %v1814_v19 = vpack.c.bf16 %v5460_v46, %v5458_v13 }
 0x3be   : > { %5463 = vpow2.f32 %v2116_v38  ;;  %2422 = vmax.xlane.f32.xlu1 %v6946_v25  ;;  %1796 = vadd.xlane.f32.xlu2 %v5460_v46  ;;  %v2167_v55 = vpack.c.bf16 %v5462_v52, %v5456_v35  ;;  %v6968_v35 = vpop.f32.mrf.mxu0 }
 0x3bf   : > { %1870 = vmatmul.bf16.gmra.mxu2 %v1814_v19  ;;  %v2073_v8 = vpop.xlane.xlu1 %2072  ;;  %5465 = vpow2.f32 %v1766_v27  ;;  %8310 = vst [vmem:[#allocation34_spill] sm:$0xff] %v6968_v35 }
 0x3c0   : > { %2219 = vmatmul.bf16.gmra.mxu0 %v2167_v55  ;;  %v2094_v27 = vsub.f32 %v6839_v10, %v2073_v8 }
 0x3c1   : > { %v1721_v20 = vpop.xlane.xlu0 %1720 }
 0x3c2   : > { %v1741_v56 = vsub.f32 %v6836_v17, %v1721_v20 }
 0x3c4   : > { %v5464_v51 = vpop.eup %5463  ;;  %v1768_v54 = vmul.f32 1.442695, %v1741_v56 }
 0x3c5   : > { %v6965_v58 = vpop.f32.mrf.mxu1  ;;  %2148 = vadd.xlane.f32.xlu0 %v5464_v51  ;;  %v5466_v46 = vpop.eup %5465 }
 0x3c6   : > { %5467 = vpow2.f32 %v1768_v54  ;;  %2146 = vadd.xlane.f32.xlu1 %v5462_v52  ;;  %2424 = vmax.xlane.f32.xlu2 %v6954_v24 }
 0x3c7   : > { %5469 = vpow2.f32 %v2118_v47  ;;  %v2075_v63 = vpop.xlane.xlu2 %2074 }
 0x3c8   : > { %v2095_v55 = vsub.f32 %v6847_v6, %v2075_v63 }
 0x3c9   : > { %v1723_v13 = vpop.xlane.xlu0 %1722  ;;  %v1725_v50 = vpop.xlane.xlu1 %1724 }
 0x3ca   : > { %v1742_v17 = vsub.f32 %v6842_v53, %v1723_v13  ;;  %v1743_v32 = vsub.f32 %v6850_v48, %v1725_v50  ;;  %v6977_v53 = vpop.f32.mrf.mxu0  ;;  %v2122_v48 = vmul.f32 1.442695, %v2095_v55  ;;  %v2120_v13 = vmul.f32 1.442695, %v2094_v27 }
 0x3cb   : > { %8311 = vst [vmem:[#allocation35_spill] sm:$0xff] %v6977_v53 }
 0x3cc   : > { %v5468_v38 = vpop.eup %5467  ;;  %v1770_v20 = vmul.f32 1.442695, %v1742_v17  ;;  %v1772_v56 = vmul.f32 1.442695, %v1743_v32 }
 0x3cd   : > { %v5470_v19 = vpop.eup %5469  ;;  %v6973_v12 = vpop.f32.mrf.mxu1  ;;  %1800 = vadd.xlane.f32.xlu0 %v5468_v38  ;;  %v1815_v52 = vpack.c.bf16 %v5468_v38, %v5466_v46 }
 0x3ce   : > { %1798 = vadd.xlane.f32.xlu1 %v5466_v46  ;;  %2426 = vmax.xlane.f32.xlu2 %v6960_v34  ;;  %v2168_v47 = vpack.c.bf16 %v5470_v19, %v5464_v51  ;;  %5471 = vpow2.f32 %v1770_v20 }
 0x3cf   : > { %1875 = vmatmul.bf16.gmra.mxu2 %v1815_v52  ;;  %5473 = vpow2.f32 %v1772_v56 }
 0x3d0   : > { %2224 = vmatmul.bf16.gmra.mxu0 %v2168_v47  ;;  %5475 = vpow2.f32 %v2122_v48 }
 0x3d1   : > { %v1727_v54 = vpop.xlane.xlu2 %1726  ;;  %5477 = vpow2.f32 %v2120_v13 }
 0x3d2   : > { %v6987_v46 = vpop.f32.mrf.mxu0  ;;  %v1744_v17 = vsub.f32 %v6856_v18, %v1727_v54 }
 0x3d3   : > { %8312 = vst [vmem:[#allocation36_spill] sm:$0xff] %v6987_v46 }
 0x3d4   : > { %v6983_v10 = vpop.eup %5471  ;;  %v1774_v47 = vmul.f32 1.442695, %v1744_v17 }
 0x3d5   : > { %v6979_v6 = vpop.f32.mrf.mxu1  ;;  %2428 = vmax.xlane.f32.xlu0 %v6965_v58  ;;  %v6985_v63 = vpop.eup %5473 }
 0x3d6   : > { %1412 = vadd.xlane.f32.xlu1 %v6742_v44  ;;  %2150 = vadd.xlane.f32.xlu2 %v5470_v19  ;;  %v5476_v50 = vpop.eup %5475  ;;  %v1816_v44 = vpack.c.bf16 %v6985_v63, %v6983_v10  ;;  %5479 = vpow2.f32 %v1774_v47 }
 0x3d7   : > { %v5478_v32 = vpop.eup %5477 }
 0x3d8   : > { %v2169_v19 = vpack.c.bf16 %v5476_v50, %v5478_v32 }
 0x3d9   : > { %v1729_v51 = vpop.xlane.xlu0 %1728  ;;  %v2077_v8 = vpop.xlane.xlu2 %2076 }
 0x3da   : > { %v1745_v38 = vsub.f32 %v6865_v1, %v1729_v51  ;;  %v2096_v55 = vsub.f32 %v6854_v36, %v2077_v8  ;;  %v6999_v48 = vpop.f32.mrf.mxu0 }
 0x3db   : > { %8313 = vst [vmem:[#allocation37_spill] sm:$0xff] %v6999_v48 }
 0x3dc   : > { %v1776_v27 = vmul.f32 1.442695, %v1745_v38  ;;  %v2124_v18 = vmul.f32 1.442695, %v2096_v55  ;;  %v7005_v13 = vpop.eup %5479 }
 0x3dd   : > { %v6992_v52 = vpop.f32.mrf.mxu1  ;;  %2430 = vmax.xlane.f32.xlu0 %v6973_v12 }
 0x3de   : > { %2432 = vmax.xlane.f32.xlu1 %v6979_v6  ;;  %2154 = vadd.xlane.f32.xlu2 %v5476_v50  ;;  %5481 = vpow2.f32 %v1776_v27 }
 0x3df   : > { %1880 = vmatmul.bf16.gmra.mxu2 %v1816_v44  ;;  %5483 = vpow2.f32 %v2124_v18 }
 0x3e0   : > { %2229 = vmatmul.bf16.gmra.mxu0 %v2169_v19 }
 0x3e1   : > { %v1779_v1 = vpop.xlane.xlu2 %1778  ;;  %v2079_v20 = vpop.xlane.xlu0 %2078 }
 0x3e2   : > { %v2097_v36 = vsub.f32 %v6862_v23, %v2079_v20  ;;  %v7020_v20 = vpop.f32.mrf.mxu0 }
 0x3e3   : > { %8314 = vst [vmem:[#allocation38_spill] sm:$0xff] %v7020_v20 }
 0x3e4   : > { %v2126_v56 = vmul.f32 1.442695, %v2097_v36  ;;  %v7007_v50 = vpop.eup %5481 }
 0x3e5   : > { %v7001_v54 = vpop.f32.mrf.mxu1  ;;  %2152 = vadd.xlane.f32.xlu0 %v5478_v32  ;;  %v7011_v55 = vpop.eup %5483  ;;  %v1817_v27 = vpack.c.bf16 %v7007_v50, %v7005_v13 }
 0x3e6   : > { %5485 = vpow2.f32 %v2126_v56  ;;  %2434 = vmax.xlane.f32.xlu1 %v6992_v52  ;;  %2436 = vmax.xlane.f32.xlu2 %v7001_v54 }
 0x3e7   : > { %v2083_v23 = vpop.xlane.xlu1 %2082 }
 0x3e8   : > { %v2099_v47 = vsub.f32 %v6885_v41, %v2083_v23 }
 0x3e9   : > { %v2409_v51 = vpop.xlane.xlu2 %2408  ;;  %v2407_v8 = vpop.xlane.xlu0 %2406 }
 0x3ea   : > { %v2439_v17 = vsub.f32 %v6890_v40, %v2409_v51  ;;  %v2438_v38 = vsub.f32 %v6875_v57, %v2407_v8  ;;  %v2130_v57 = vmul.f32 1.442695, %v2099_v47 }
 0x3ec   : > { %v7013_v44 = vpop.eup %5485  ;;  %v2456_v32 = vmul.f32 1.442695, %v2439_v17  ;;  %v2454_v19 = vmul.f32 1.442695, %v2438_v38 }
 0x3ed   : > { %v2170_v18 = vpack.c.bf16 %v7013_v44, %v7011_v55 }
 0x3ee   : > { %5487 = vpow2.f32 %v2456_v32 }
 0x3ef   : > { %5489 = vpow2.f32 %v2454_v19  ;;  %1885 = vmatmul.bf16.gmra.mxu2 %v1817_v27 }
 0x3f0   : > { %2234 = vmatmul.bf16.gmra.mxu0 %v2170_v18  ;;  %5491 = vpow2.f32 %v2130_v57 }
 0x3f1   : > { %v7022_v40 = vpop.xlane.xlu2 %1782  ;;  %v2081_v36 = vpop.xlane.xlu0 %2080 }
 0x3f2   : > { %v2098_v56 = vsub.f32 %v6871_v31, %v2081_v36 }
 0x3f4   : > { %v5488_v51 = vpop.eup %5487  ;;  %v2128_v41 = vmul.f32 1.442695, %v2098_v56 }
 0x3f5   : > { %v5490_v8 = vpop.eup %5489  ;;  %2488 = vadd.xlane.f32.xlu1 %v5488_v51  ;;  %v7025_v23 = vpop.f32.mrf.mxu0 }
 0x3f6   : > { %5493 = vpow2.f32 %v2128_v41  ;;  %2486 = vadd.xlane.f32.xlu0 %v5490_v8  ;;  %8315 = vst [vmem:[#allocation39_spill] sm:$0xff] %v7025_v23  ;;  %v7028_v47 = vpop.eup %5491  ;;  %v2518_v18 = vpack.c.bf16 %v5488_v51, %v5490_v8 }
 0x3f7   : > { %5495 = vrcp.f32 %v1779_v1 }
 0x3f9   : > { %v2411_v17 = vpop.xlane.xlu2 %2410  ;;  %v2133_v36 = vpop.xlane.xlu1 %2132 }
 0x3fa   : > { %v2440_v38 = vsub.f32 %v6901_v45, %v2411_v17  ;;  %v1781_v32 = vpop.xlane.xlu0 %1780  ;;  %v1851_v19 = vpop.f32.mrf.mxu2 }
 0x3fb   : > { %5497 = vrcp.f32 %v1781_v32 }
 0x3fc   : > { %v7030_v27 = vpop.eup %5493  ;;  %v2458_v31 = vmul.f32 1.442695, %v2440_v38 }
 0x3fd   : > { %v2171_v57 = vpack.c.bf16 %v7028_v47, %v7030_v27  ;;  %v5496_v56 = vpop.eup %5495  ;;  %v7034_v41 = vpop.f32.mrf.mxu0 }
 0x3fe   : > { %5499 = vpow2.f32 %v2458_v31  ;;  %8316 = vst [vmem:[#allocation40_spill] sm:$0xff] %v7034_v41  ;;  %v1907_v1 = vmul.f32 %v5496_v56, %v1851_v19 }
 0x3ff   : > { %2558 = vmatmul.bf16.vlgmr.msra.gmra.mxu2 %v2518_v18 }
 0x400   : > { %2239 = vmatmul.bf16.gmra.mxu0 %v2171_v57 }
 0x401   : > { %v2135_v45 = vpop.xlane.xlu2 %2134  ;;  %v5498_v17 = vpop.eup %5497 }
 0x402   : > { %v1785_v23 = vpop.xlane.xlu0 %1784  ;;  %v1853_v48 = vpop.f32.mrf.mxu2 }
 0x403   : > { %v1908_v20 = vmul.f32 %v5498_v17, %v1853_v48  ;;  %v7037_v51 = vpop.xlane.xlu1 %2136 }
 0x404   : > { %v5500_v46 = vpop.eup %5499 }
 0x405   : > { %v5269_v38 = vpack.i.bf16 %v1908_v20, %v1907_v1  ;;  %2490 = vadd.xlane.f32.xlu0 %v5500_v46  ;;  %v2205_v18 = vpop.f32.mrf.mxu0 }
 0x407   : > { %5270 = vrot.lane.b32.xlu2 %v5269_v38, %s5891_s3 }
 0x409   : > { %v1787_v8 = vpop.xlane.xlu2 %1786 }
 0x40a   : > { %v2413_v32 = vpop.xlane.xlu0 %2412  ;;  %v7039_v31 = vpop.f32.mrf.mxu2 }
 0x40b   : > { %v2441_v57 = vsub.f32 %v6908_v37, %v2413_v32 }
 0x40d   : > { %v2460_v41 = vmul.f32 1.442695, %v2441_v57  ;;  %v2207_v38 = vpop.f32.mrf.mxu0 }
 0x40f   : > { %5501 = vpow2.f32 %v2460_v41 }
 0x410   : > { %v7042_v53 = vpop.xlane.xlu1 %1790  ;;  %5503 = vrcp.f32 %v1787_v8 }
 0x411   : > { %v2415_v19 = vpop.xlane.xlu2 %2414 }
 0x412   : > { %v2442_v48 = vsub.f32 %v6918_v15, %v2415_v19  ;;  %v7045_v20 = vpop.xlane.xlu0 %1788  ;;  %v1858_v56 = vpop.f32.mrf.mxu2 }
 0x414   : > { %v2462_v17 = vmul.f32 1.442695, %v2442_v48 }
 0x415   : > { %v5502_v1 = vpop.eup %5501 }
 0x416   : > { %5505 = vpow2.f32 %v2462_v17  ;;  %2492 = vadd.xlane.f32.xlu1 %v5502_v1  ;;  %v2519_v35 = vpack.c.bf16 %v5502_v1, %v5500_v46  ;;  %v5504_v32 = vpop.eup %5503 }
 0x418   : > { %2563 = vmatmul.bf16.gmra.mxu2 %v2519_v35 }
 0x419   : > { %v2141_v22 = vpop.xlane.xlu1 %2140  ;;  %v2139_v37 = vpop.xlane.xlu2 %2138 }
 0x41a   : > { %v2417_v41 = vpop.xlane.xlu0 %2416  ;;  %v1861_v57 = vpop.f32.mrf.mxu2 }
 0x41b   : > { %v2443_v14 = vsub.f32 %v6926_v5, %v2417_v41  ;;  %v7048_v62 = vmul.f32 %v5504_v32, %v1861_v57 }
 0x41c   : > { %v5506_v15 = vpop.eup %5505 }
 0x41d   : > { %v2464_v19 = vmul.f32 1.442695, %v2443_v14  ;;  %v7050_v33 = vpop.f32.mrf.mxu0  ;;  %2494 = vadd.xlane.f32.xlu0 %v5506_v15 }
 0x41f   : > { %5507 = vpow2.f32 %v2464_v19 }
 0x420   : > { %5509 = vrcp.f32 %v2135_v45 }
 0x421   : > { %v2421_v8 = vpop.xlane.xlu1 %2420  ;;  %v7052_v48 = vpop.xlane.xlu2 %1792  ;;  %5511 = vrcp.f32 %v2133_v36 }
 0x422   : > { %v2419_v46 = vpop.xlane.xlu0 %2418  ;;  %v2445_v35 = vsub.f32 %v6939_v28, %v2421_v8  ;;  %v7056_v5 = vpop.f32.mrf.mxu2  ;;  %5513 = vrcp.f32 %v7022_v40 }
 0x423   : > { %v2444_v1 = vsub.f32 %v6933_v2, %v2419_v46  ;;  %5515 = vrcp.f32 %v1785_v23 }
 0x424   : > { %v2468_v32 = vmul.f32 1.442695, %v2445_v35 }
 0x425   : > { %v5508_v17 = vpop.eup %5507  ;;  %v2212_v61 = vpop.f32.mrf.mxu0  ;;  %v2466_v41 = vmul.f32 1.442695, %v2444_v1 }
 0x426   : > { %2496 = vadd.xlane.f32.xlu1 %v5508_v17  ;;  %v2520_v14 = vpack.c.bf16 %v5508_v17, %v5506_v15  ;;  %v5510_v43 = vpop.eup %5509  ;;  %5517 = vpow2.f32 %v2468_v32 }
 0x427   : > { %v2262_v45 = vmul.f32 %v5510_v43, %v2207_v38  ;;  %v5512_v28 = vpop.eup %5511  ;;  %5519 = vpow2.f32 %v2466_v41 }
 0x428   : > { %2568 = vmatmul.bf16.gmra.mxu2 %v2520_v14  ;;  %v2261_v8 = vmul.f32 %v5512_v28, %v2205_v18  ;;  %5521 = vrcp.f32 %v2141_v22  ;;  %v5514_v46 = vpop.eup %5513 }
 0x429   : > { %v1795_v57 = vpop.xlane.xlu1 %1794  ;;  %v2143_v19 = vpop.xlane.xlu2 %2142  ;;  %v1909_v38 = vmul.f32 %v5514_v46, %v7039_v31 }
 0x42a   : > { %v5274_v36 = vpack.i.bf16 %v2262_v45, %v2261_v8  ;;  %5523 = vrcp.f32 %v2143_v19  ;;  %v2145_v15 = vpop.xlane.xlu0 %2144  ;;  %v7059_v35 = vpop.f32.mrf.mxu2 }
 0x42b   : > { %v5516_v17 = vpop.eup %5515  ;;  %5525 = vrcp.f32 %v2139_v37 }
 0x42c   : > { %v7062_v40 = vpop.eup %5517  ;;  %v1910_v23 = vmul.f32 %v5516_v17, %v1858_v56  ;;  %5527 = vrcp.f32 %v7037_v51 }
 0x42d   : > { %v2215_v2 = vpop.f32.mrf.mxu0  ;;  %v7064_v43 = vpop.eup %5519  ;;  %5529 = vrcp.f32 %v1795_v57 }
 0x42e   : > { %v5522_v18 = vpop.eup %5521  ;;  %v2521_v28 = vpack.c.bf16 %v7062_v40, %v7064_v43  ;;  %v5279_v37 = vpack.i.bf16 %v1910_v23, %v1909_v38  ;;  %5531 = vrcp.f32 %v2145_v15 }
 0x42f   : > { %v7069_v19 = vmul.f32 %v5522_v18, %v2215_v2 }
 0x430   : > { %v5524_v22 = vpop.eup %5523 }
 0x431   : > { %v2423_v1 = vpop.xlane.xlu1 %2422  ;;  %v1797_v14 = vpop.xlane.xlu2 %1796  ;;  %5275 = vrot.lane.b32.xlu0 %v5274_v36, %s5889_s1 }
 0x432   : > { %v2446_v32 = vsub.f32 %v6946_v25, %v2423_v1  ;;  %v5526_v8 = vpop.eup %5525  ;;  %v7078_v2 = vpop.f32.mrf.mxu2 }
 0x433   : > { %v2264_v36 = vmul.f32 %v5526_v8, %v2212_v61  ;;  %v5528_v25 = vpop.eup %5527 }
 0x434   : > { %v2470_v17 = vmul.f32 1.442695, %v2446_v32  ;;  %v2263_v18 = vmul.f32 %v5528_v25, %v7050_v33  ;;  %v5530_v32 = vpop.eup %5529 }
 0x435   : > { %v2217_v41 = vpop.f32.mrf.mxu0 }
 0x436   : > { %v7071_v45 = vmul.f32 %v5524_v22, %v2217_v41  ;;  %v5284_v22 = vpack.i.bf16 %v2264_v36, %v2263_v18  ;;  %5533 = vpow2.f32 %v2470_v17 }
 0x438   : > { %2573 = vmatmul.bf16.gmra.mxu2 %v2521_v28  ;;  %v2149_v51 = vpop.xlane.xlu0 %2148 }
 0x439   : > { %v2147_v31 = vpop.xlane.xlu1 %2146  ;;  %v2425_v46 = vpop.xlane.xlu2 %2424  ;;  %5280 = vrot.lane.b32.xlu0 %v5279_v37, %s5891_s3 }
 0x43a   : > { %v2447_v1 = vsub.f32 %v6954_v24, %v2425_v46  ;;  %v5532_v37 = vpop.eup %5531 }
 0x43c   : > { %v2472_v23 = vmul.f32 1.442695, %v2447_v1  ;;  %v7083_v56 = vpop.eup %5533 }
 0x43d   : > { %v2220_v38 = vpop.f32.mrf.mxu0 }
 0x43e   : > { %5535 = vpow2.f32 %v2472_v23 }
 0x43f   : > { %5537 = vrcp.f32 %v2147_v31  ;;  %5285 = vrot.lane.b32.xlu1 %v5284_v22, %s5889_s1  ;;  %v7089_v31 = vmul.f32 %v5532_v37, %v2220_v38 }
 0x440   : > { %v1801_v61 = vpop.xlane.xlu0 %1800  ;;  %5539 = vrcp.f32 %v1797_v14 }
 0x441   : > { %v1799_v41 = vpop.xlane.xlu1 %1798  ;;  %v2427_v28 = vpop.xlane.xlu2 %2426 }
 0x442   : > { %v1871_v8 = vpop.f32.mrf.mxu2  ;;  %v2448_v57 = vsub.f32 %v6960_v34, %v2427_v28  ;;  %5541 = vrcp.f32 %v1799_v41 }
 0x443   : > { %v7085_v24 = vmul.f32 %v5530_v32, %v1871_v8 }
 0x444   : > { %v5536_v33 = vpop.eup %5535  ;;  %v2474_v25 = vmul.f32 1.442695, %v2448_v57 }
 0x445   : > { %v5538_v15 = vpop.eup %5537  ;;  %v2222_v36 = vpop.f32.mrf.mxu0  ;;  %2504 = vadd.xlane.f32.xlu2 %v5536_v33  ;;  %v2522_v17 = vpack.c.bf16 %v5536_v33, %v7083_v56 }
 0x446   : > { %v7091_v46 = vmul.f32 %v5538_v15, %v2222_v36  ;;  %v5540_v34 = vpop.eup %5539  ;;  %5543 = vpow2.f32 %v2474_v25 }
 0x448   : > { %v5304_v1 = vpack.i.bf16 %v7091_v46, %v7089_v31  ;;  %2578 = vmatmul.bf16.gmra.mxu2 %v2522_v17  ;;  %v2429_v18 = vpop.xlane.xlu0 %2428  ;;  %v5542_v33 = vpop.eup %5541 }
 0x449   : > { %v2449_v23 = vsub.f32 %v6965_v58, %v2429_v18  ;;  %v7096_v14 = vpop.xlane.xlu1 %1412  ;;  %v2151_v38 = vpop.xlane.xlu2 %2150 }
 0x44a   : > { %v1873_v22 = vpop.f32.mrf.mxu2 }
 0x44b   : > { %v2476_v32 = vmul.f32 1.442695, %v2449_v23  ;;  %v7098_v28 = vmul.f32 %v5540_v34, %v1873_v22 }
 0x44c   : > { %v7103_v15 = vpop.eup %5543 }
 0x44d   : > { %5545 = vpow2.f32 %v2476_v32  ;;  %v2225_v8 = vpop.f32.mrf.mxu0  ;;  %1802 = vadd.xlane.f32.xlu2 %v6983_v10 }
 0x44e   : > { %5547 = vrcp.f32 %v2149_v51 }
 0x44f   : > { %5549 = vrcp.f32 %v2151_v38 }
 0x450   : > { %v2431_v58 = vpop.xlane.xlu0 %2430  ;;  %5551 = vrcp.f32 %v1801_v61 }
 0x451   : > { %v2433_v57 = vpop.xlane.xlu1 %2432  ;;  %v2450_v17 = vsub.f32 %v6973_v12, %v2431_v58  ;;  %5553 = vrcp.f32 %v7052_v48  ;;  %v2155_v12 = vpop.xlane.xlu2 %2154 }
 0x452   : > { %v1876_v41 = vpop.f32.mrf.mxu2  ;;  %v2451_v23 = vsub.f32 %v6979_v6, %v2433_v57  ;;  %5555 = vrcp.f32 %v7042_v53 }
 0x453   : > { %v7105_v36 = vpop.eup %5545  ;;  %v7108_v25 = vmul.f32 %v5542_v33, %v1876_v41  ;;  %v2478_v38 = vmul.f32 1.442695, %v2450_v17 }
 0x454   : > { %v5548_v18 = vpop.eup %5547  ;;  %v2523_v10 = vpack.c.bf16 %v7105_v36, %v7103_v15  ;;  %v2480_v37 = vmul.f32 1.442695, %v2451_v23 }
 0x455   : > { %v5550_v51 = vpop.eup %5549  ;;  %v2227_v34 = vpop.f32.mrf.mxu0  ;;  %v7113_v22 = vmul.f32 %v5548_v18, %v2225_v8  ;;  %5557 = vpow2.f32 %v2478_v38 }
 0x456   : > { %v7115_v32 = vmul.f32 %v5550_v51, %v2227_v34  ;;  %v5552_v61 = vpop.eup %5551  ;;  %5559 = vpow2.f32 %v2480_v37 }
 0x457   : > { %v5554_v41 = vpop.eup %5553 }
 0x458   : > { %v5334_v58 = vpack.i.bf16 %v7115_v32, %v7113_v22  ;;  %2583 = vmatmul.bf16.gmra.mxu2 %v2523_v10  ;;  %v2153_v6 = vpop.xlane.xlu0 %2152  ;;  %v1914_v17 = vmul.f32 %v5554_v41, %v7078_v2  ;;  %v5556_v18 = vpop.eup %5555  ;;  %v5015_v32 = vld [vmem:[%s6074_s19 + $0x8] sm:$0xff] }
 0x459   : > { %5561 = vrcp.f32 %v2153_v6  ;;  %v1913_v53 = vmul.f32 %v5556_v18, %v7059_v35  ;;  %v2435_v10 = vpop.xlane.xlu1 %2434  ;;  %v2437_v34 = vpop.xlane.xlu2 %2436 }
 0x45a   : > { %v1878_v33 = vpop.f32.mrf.mxu2  ;;  %5563 = vrcp.f32 %v2155_v12 }
 0x45b   : > { %v7121_v57 = vmul.f32 %v5552_v61, %v1878_v33  ;;  %v7126_v23 = vpop.eup %5557  ;;  %v5299_v37 = vpack.i.bf16 %v1914_v17, %v1913_v53  ;;  %v2452_v61 = vsub.f32 %v6992_v52, %v2435_v10  ;;  %v2453_v33 = vsub.f32 %v7001_v54, %v2437_v34 }
 0x45c   : > { %v7129_v51 = vpop.eup %5559  ;;  %v8317_v34 = vpack.i.bf16 %v7071_v45, %v7069_v19 }
 0x45d   : > { %v5344_v8 = vpack.i.bf16 %v7121_v57, %v7108_v25  ;;  %v2230_v48 = vpop.f32.mrf.mxu0  ;;  %v2524_v18 = vpack.c.bf16 %v7129_v51, %v7126_v23  ;;  %v2482_v17 = vmul.f32 1.442695, %v2452_v61  ;;  %v2484_v52 = vmul.f32 1.442695, %v2453_v33 }
 0x45f   : > { %v5562_v38 = vpop.eup %5561  ;;  %5565 = vpow2.f32 %v2482_v17 }
 0x460   : > { %v5564_v6 = vpop.eup %5563  ;;  %v7137_v41 = vmul.f32 %v5562_v38, %v2230_v48  ;;  %5567 = vpow2.f32 %v2484_v52 }
 0x461   : > { %5569 = vrcp.f32 %v7045_v20 }
 0x462   : > { %v7134_v2 = vpop.f32.mrf.mxu2  ;;  %5571 = vrcp.f32 %v6880_v21 }
 0x463   : > { %2498 = vadd.xlane.f32.xlu0 %v7064_v43 }
 0x465   : > { %v2232_v12 = vpop.f32.mrf.mxu0  ;;  %5300 = vrot.lane.b32.xlu2 %v5299_v37, %s5891_s3  ;;  %v7148_v53 = vpop.eup %5565 }
 0x466   : > { %v7139_v35 = vmul.f32 %v5564_v6, %v2232_v12  ;;  %v7150_v48 = vpop.eup %5567 }
 0x467   : > { %v2525_v10 = vpack.c.bf16 %v7150_v48, %v7148_v53  ;;  %v5570_v38 = vpop.eup %5569 }
 0x468   : > { %v5349_v43 = vpack.i.bf16 %v7139_v35, %v7137_v41  ;;  %2588 = vmatmul.bf16.gmra.mxu2 %v2524_v18  ;;  %v1912_v37 = vmul.f32 %v5570_v38, %v7056_v5  ;;  %v7171_v18 = vpop.permute.xlu2 %5270  ;;  %v5572_v5 = vpop.eup %5571  ;;  %v8320_v41 = vld [vmem:[#allocation28_spill] sm:$0xff] }
 0x469   : > { %2500 = vadd.xlane.f32.xlu1 %v7062_v40  ;;  %v2487_v20 = vpop.xlane.xlu0 %2486  ;;  %v5272_v17 = vunpack.i.l.bf16 %v7171_v18  ;;  %v1553_v52 = vmul.f32 %v5572_v5, %v6873_v49 }
 0x46a   : > { %v7146_v54 = vpop.f32.mrf.mxu2  ;;  %v5289_v61 = vpack.i.bf16 %v1912_v37, %v7048_v62 }
 0x46b   : > { %v2823_v21 = vsel %vm1222_vm0, %v1553_v52, %v5272_v17 }
 0x472   : > { %v7159_v40 = vpop.f32.mrf.mxu2 }
 0x477   : > { %5295 = vrot.lane.b32.xlu0 %v8317_v34, %s5889_s1 }
 0x478   : > { %2593 = vmatmul.bf16.gmra.mxu2 %v2525_v10  ;;  %v2491_v12 = vpop.xlane.xlu0 %2490  ;;  %v2489_v10 = vpop.xlane.xlu1 %2488 }
 0x47a   : > { %v7164_v6 = vpop.f32.mrf.mxu2 }
 0x482   : > { %5290 = vrot.lane.b32.xlu1 %v5289_v61, %s5891_s3  ;;  %v7166_v33 = vpop.f32.mrf.mxu2 }
 0x48a   : > { %v2561_v19 = vpop.f32.mrf.mxu2 }
 0x48e   : > { %2508 = vadd.xlane.f32.xlu2 %v7105_v36 }
 0x490   : > { %v2495_v45 = vpop.xlane.xlu0 %2494 }
 0x496   : > { %1416 = vadd.xlane.f32.xlu2 %v6764_v7 }
 0x49b   : > { %v2564_v62 = vpop.f32.mrf.mxu2 }
 0x49e   : > { %1808 = vadd.xlane.f32.xlu2 %v7007_v50 }
 0x4a1   : > { %2506 = vadd.xlane.f32.xlu0 %v7103_v15  ;;  %v2493_v15 = vpop.xlane.xlu1 %2492 }
 0x4a2   : > { %5573 = vrcp.f32 %v2493_v15 }
 0x4a3   : > { %v7177_v36 = vpop.permute.xlu0 %5275  ;;  %v2566_v50 = vpop.f32.mrf.mxu2  ;;  %5575 = vrcp.f32 %v2491_v12 }
 0x4a4   : > { %v5277_v7 = vunpack.i.l.bf16 %v7177_v36 }
 0x4a6   : > { %v7182_v34 = vsel %vm2839_vm1, %v2823_v21, %v5277_v7  ;;  %2162 = vadd.xlane.f32.xlu2 %v7028_v47 }
 0x4a8   : > { %v5574_v37 = vpop.eup %5573 }
 0x4a9   : > { %1414 = vadd.xlane.f32.xlu0 %v6745_v0  ;;  %v2497_v38 = vpop.xlane.xlu1 %2496  ;;  %v2618_v61 = vmul.f32 %v5574_v37, %v2566_v50  ;;  %v5576_v17 = vpop.eup %5575 }
 0x4aa   : > { %5577 = vrcp.f32 %v2497_v38  ;;  %v2617_v0 = vmul.f32 %v5576_v17, %v2564_v62  ;;  %v5021_v38 = vld [vmem:[%s6074_s19 + $0x38] sm:$0xff] }
 0x4ab   : > { %v2569_v49 = vpop.f32.mrf.mxu2  ;;  %5579 = vrcp.f32 %v2495_v45  ;;  %3037 = vmatpush.bf16.msra.mxu3 %v5021_v38 }
 0x4ac   : > { %2502 = vadd.xlane.f32.xlu1 %v7083_v56  ;;  %v5319_v47 = vpack.i.bf16 %v2618_v61, %v2617_v0  ;;  %5581 = vrcp.f32 %v7096_v14 }
 0x4ad   : > { %5583 = vrcp.f32 %v2489_v10 }
 0x4ae   : > { %5585 = vrcp.f32 %v2487_v20 }
 0x4af   : > { %5587 = vrcp.f32 %v6910_v26 }
 0x4b0   : > { %5589 = vrcp.f32 %v6913_v29 }
 0x4b1   : > { %2156 = vadd.xlane.f32.xlu0 %v7011_v55  ;;  %v5578_v55 = vpop.eup %5577  ;;  %v5286_v20 = vpop.permute.xlu1 %5285 }
 0x4b2   : > { %v5580_v52 = vpop.eup %5579  ;;  %v5288_v26 = vunpack.i.h.bf16 %v5286_v20 }
 0x4b3   : > { %v2571_v56 = vpop.f32.mrf.mxu2  ;;  %v2619_v7 = vmul.f32 %v5580_v52, %v2569_v49  ;;  %v5287_v52 = vunpack.i.l.bf16 %v5286_v20 }
 0x4b4   : > { %1804 = vadd.xlane.f32.xlu1 %v6985_v63  ;;  %v2620_v63 = vmul.f32 %v5578_v55, %v2571_v56 }
 0x4b6   : > { %v5324_v21 = vpack.i.bf16 %v2620_v63, %v2619_v7 }
 0x4b8   : > { %v7189_v5 = vpop.xlane.xlu2 %2504 }
 0x4b9   : > { %2510 = vadd.xlane.f32.xlu0 %v7126_v23  ;;  %v5582_v23 = vpop.eup %5581 }
 0x4ba   : > { %v5584_v14 = vpop.eup %5583 }
 0x4bb   : > { %v5586_v15 = vpop.eup %5585 }
 0x4bc   : > { %2158 = vadd.xlane.f32.xlu1 %v7013_v44  ;;  %v1559_v44 = vmul.f32 %v5582_v23, %v6943_v3  ;;  %v2615_v3 = vmul.f32 %v5586_v15, %v7166_v33  ;;  %v5588_v0 = vpop.eup %5587 }
 0x4bd   : > { %v1556_v29 = vmul.f32 %v5588_v0, %v6915_v59 }
 0x4be   : > { %5320 = vrot.lane.b32.xlu2 %v5319_v47, %s5890_s2  ;;  %v5590_v47 = vpop.eup %5589 }
 0x4bf   : > { %v1555_v63 = vmul.f32 %v5590_v47, %v6904_v9 }
 0x4c0   : > { %v7195_v12 = vpop.xlane.xlu2 %1802 }
 0x4c4   : > { %2512 = vadd.xlane.f32.xlu1 %v7129_v51  ;;  %v2616_v51 = vmul.f32 %v5584_v14, %v2561_v19 }
 0x4c6   : > { %5325 = vrot.lane.b32.xlu2 %v5324_v21, %s5890_s2  ;;  %v5314_v49 = vpack.i.bf16 %v2616_v51, %v2615_v3  ;;  %v5020_v21 = vld [vmem:[%s6074_s19 + $0x30] sm:$0xff] }
 0x4c7   : > { %3038 = vmatpush.bf16.msra.mxu3 %v5020_v21 }
 0x4c8   : > { %v7199_v45 = vpop.permute.xlu2 %5300 }
 0x4c9   : > { %v5302_v62 = vunpack.i.l.bf16 %v7199_v45 }
 0x4cb   : > { %v7204_v50 = vsel %vm1222_vm0, %v1559_v44, %v5302_v62 }
 0x4cc   : > { %1806 = vadd.xlane.f32.xlu1 %v7005_v13  ;;  %v5281_v13 = vpop.permute.xlu0 %5280 }
 0x4cd   : > { %5305 = vrot.lane.b32.xlu0 %v5304_v1, %s5889_s1  ;;  %v2574_v1 = vpop.f32.mrf.mxu2  ;;  %v5282_v56 = vunpack.i.l.bf16 %v5281_v13 }
 0x4cf   : > { %v2825_v44 = vsel %vm1222_vm0, %v1555_v63, %v5282_v56 }
 0x4d5   : > { %v2576_v37 = vpop.f32.mrf.mxu2 }
 0x4d6   : > { %v2499_v46 = vpop.xlane.xlu0 %2498 }
 0x4dc   : > { %v2501_v33 = vpop.xlane.xlu1 %2500 }
 0x4dd   : > { %5591 = vrcp.f32 %v2501_v33 }
 0x4de   : > { %5593 = vrcp.f32 %v2499_v46 }
 0x4df   : > { %5595 = vrcp.f32 %v6920_v11 }
 0x4e0   : > { %5597 = vrcp.f32 %v6929_v30 }
 0x4e3   : > { %v5592_v55 = vpop.eup %5591 }
 0x4e4   : > { %v5594_v23 = vpop.eup %5593  ;;  %v2622_v51 = vmul.f32 %v5592_v55, %v2576_v37 }
 0x4e5   : > { %5315 = vrot.lane.b32.xlu1 %v5314_v49, %s5890_s2  ;;  %v5596_v11 = vpop.eup %5595  ;;  %v5303_v49 = vunpack.i.h.bf16 %v7199_v45 }
 0x4e6   : > { %v5598_v14 = vpop.eup %5597 }
 0x4e7   : > { %v1558_v56 = vmul.f32 %v5598_v14, %v6935_v4 }
 0x4e9   : > { %v7220_v10 = vpop.permute.xlu0 %5295 }
 0x4ea   : > { %v5298_v63 = vunpack.i.h.bf16 %v7220_v10 }
 0x4ef   : > { %2516 = vadd.xlane.f32.xlu2 %v7150_v48 }
 0x4f4   : > { %v5291_v61 = vpop.permute.xlu1 %5290 }
 0x4f5   : > { %v5293_v46 = vunpack.i.h.bf16 %v5291_v61  ;;  %v5292_v33 = vunpack.i.l.bf16 %v5291_v61 }
 0x4f7   : > { %1418 = vadd.xlane.f32.xlu0 %v6768_v60  ;;  %v8318_v60 = vpack.i.bf16 %v7098_v28, %v7085_v24  ;;  %v5283_v28 = vunpack.i.h.bf16 %v5281_v13  ;;  %v2621_v13 = vmul.f32 %v5594_v23, %v2574_v1  ;;  %v2828_v55 = vsel %vm1222_vm0, %v1558_v56, %v5293_v46 }
 0x4f9   : > { %v2826_v30 = vsel %vm1222_vm0, %v1556_v29, %v5283_v28  ;;  %v1557_v28 = vmul.f32 %v5596_v11, %v6924_v39  ;;  %v5329_v45 = vpack.i.bf16 %v2622_v51, %v2621_v13  ;;  %v5297_v39 = vunpack.i.l.bf16 %v7220_v10 }
 0x4fa   : > { %v2843_v59 = vsel %vm2839_vm1, %v2826_v30, %v5288_v26  ;;  %v2845_v11 = vsel %vm2839_vm1, %v2828_v55, %v5298_v63 }
 0x4fb   : > { %v2827_v29 = vsel %vm1222_vm0, %v1557_v28, %v5292_v33 }
 0x4ff   : > { %2160 = vadd.xlane.f32.xlu0 %v7030_v27 }
 0x501   : > { %v7216_v31 = vpop.xlane.xlu2 %2508 }
 0x509   : > { %v7218_v19 = vpop.xlane.xlu2 %1416 }
 0x50f   : > { %2514 = vadd.xlane.f32.xlu1 %v7148_v53  ;;  %v2579_v53 = vpop.f32.mrf.mxu2 }
 0x511   : > { %v7224_v48 = vpop.xlane.xlu2 %1808 }
 0x513   : > { %5310 = vrot.lane.b32.xlu0 %v8318_v60, %s5891_s3 }
 0x514   : > { %v7230_v27 = vpop.xlane.xlu0 %2506 }
 0x517   : > { %v2581_v20 = vpop.f32.mrf.mxu2 }
 0x519   : > { %v7234_v17 = vpop.xlane.xlu2 %2162 }
 0x51c   : > { %v1415_v24 = vpop.xlane.xlu0 %1414 }
 0x51d   : > { %5599 = vrcp.f32 %v1415_v24 }
 0x51e   : > { %5601 = vrcp.f32 %v7189_v5  ;;  %v2842_v5 = vsel %vm2839_vm1, %v2825_v44, %v5287_v52 }
 0x51f   : > { %v2503_v7 = vpop.xlane.xlu1 %2502  ;;  %v2584_v14 = vpop.f32.mrf.mxu2 }
 0x520   : > { %5603 = vrcp.f32 %v2503_v7  ;;  %v5018_v7 = vld [vmem:[%s6074_s19 + $0x20] sm:$0xff] }
 0x521   : > { %v5321_v62 = vpop.permute.xlu2 %5320  ;;  %5605 = vrcp.f32 %v7230_v27 }
 0x522   : > { %v5323_v9 = vunpack.i.h.bf16 %v5321_v62  ;;  %v5322_v15 = vunpack.i.l.bf16 %v5321_v62  ;;  %5607 = vrcp.f32 %v7216_v31  ;;  %v5014_v31 = vld [vmem:[%s6074_s19] sm:$0xff] }
 0x523   : > { %v5600_v3 = vpop.eup %5599 }
 0x524   : > { %v1560_v38 = vmul.f32 %v5600_v3, %v6952_v42  ;;  %v2859_v60 = vsel %vm2856_vm2, %v2842_v5, %v5322_v15  ;;  %v2860_v0 = vsel %vm2856_vm2, %v2843_v59, %v5323_v9  ;;  %v5602_v47 = vpop.eup %5601  ;;  %v5019_v42 = vld [vmem:[%s6074_s19 + $0x28] sm:$0xff]  ;;  %v5017_v59 = vld [vmem:[%s6074_s19 + $0x18] sm:$0xff]  ;;  %v5016_v9 = vld [vmem:[%s6074_s19 + $0x10] sm:$0xff]  ;;  %v2157_v5 = vpop.xlane.xlu0 %2156 }
 0x525   : > { %v5103_v37 = vpack.c.bf16 %v2860_v0, %v2859_v60  ;;  %v2624_v26 = vmul.f32 %v5602_v47, %v2581_v20  ;;  %3039 = vmatpush.bf16.msra.mxu3 %v5019_v42  ;;  %v8319_v3 = vld [vmem:[#allocation30_spill] sm:$0xff]  ;;  %v5273_v20 = vunpack.i.h.bf16 %v7171_v18  ;;  %v8321_v0 = vld [vmem:[#allocation32_spill] sm:$0xff] }
 0x526   : > { %v5604_v24 = vpop.eup %5603  ;;  %v7253_v1 = vsel %vm1222_vm0, %v1560_v38, %v5303_v49  ;;  %v5278_v38 = vunpack.i.h.bf16 %v7177_v36  ;;  %v8322_v36 = vld [vmem:[#allocation26_spill] sm:$0xff] }
 0x527   : > { %v2623_v61 = vmul.f32 %v5604_v24, %v2579_v53  ;;  %5142 = vst [vmem:[#allocation4] sm:$0xff] %v5103_v37   ;;  %v2844_v53 = vsel %vm2839_vm1, %v2827_v29, %v5297_v39  ;;  %v1805_v10 = vpop.xlane.xlu1 %1804  ;;  %v5606_v51 = vpop.eup %5605 }
 0x528   : > { %5330 = vrot.lane.b32.xlu1 %v5329_v45, %s5890_s2  ;;  %v5608_v22 = vpop.eup %5607  ;;  %v2625_v25 = vmul.f32 %v5606_v51, %v2584_v14  ;;  %5609 = vrcp.f32 %v1805_v10  ;;  %v2235_v39 = vpop.f32.mrf.mxu0  ;;  %v8324_v14 = vld [vmem:[#allocation29_spill] sm:$0xff] }
 0x529   : > { %v5326_v52 = vpop.permute.xlu2 %5325  ;;  %v5339_v4 = vpack.i.bf16 %v2624_v26, %v2623_v61  ;;  %3040 = vmatpush.bf16.msra.mxu3 %v5018_v7  ;;  %5611 = vrcp.f32 %v7195_v12 }
 0x52a   : > { %v5328_v21 = vunpack.i.h.bf16 %v5326_v52  ;;  %v5327_v23 = vunpack.i.l.bf16 %v5326_v52  ;;  %5613 = vrcp.f32 %v8320_v41 }
 0x52b   : > { %5340 = vrot.lane.b32.xlu2 %v5339_v4, %s5890_s2 }
 0x52c   : > { %v2861_v30 = vsel %vm2856_vm2, %v2844_v53, %v5327_v23  ;;  %v2862_v44 = vsel %vm2856_vm2, %v2845_v11, %v5328_v21  ;;  %v2511_v49 = vpop.xlane.xlu0 %2510 }
 0x52d   : > { %v5108_v62 = vpack.c.bf16 %v2862_v44, %v2861_v30  ;;  %3041 = vmatpush.bf16.msra.mxu3 %v5017_v59 }
 0x52e   : > { %v5007_v59 = vld [vmem:[#allocation4] sm:$0xff] }
 0x52f   : > { %5143 = vst [vmem:[#allocation4 + $0x10] sm:$0xff] %v5108_v62   ;;  %v2159_v15 = vpop.xlane.xlu1 %2158 }
 0x530   : > { %5335 = vrot.lane.b32.xlu1 %v5334_v58, %s5889_s1  ;;  %v2586_v58 = vpop.f32.mrf.mxu2  ;;  %v2237_v23 = vpop.f32.mrf.mxu0 }
 0x531   : > { %3042 = vmatpush.bf16.msra.mxu3 %v5016_v9  ;;  %v2626_v57 = vmul.f32 %v5608_v22, %v2586_v58 }
 0x533   : > { %5345 = vrot.lane.b32.xlu2 %v5344_v8, %s5891_s3  ;;  %v5354_v8 = vpack.i.bf16 %v2626_v57, %v2625_v25 }
 0x535   : > { %3043 = vmatpush.bf16.msra.mxu3 %v5015_v32 }
 0x537   : > { %v2513_v27 = vpop.xlane.xlu1 %2512 }
 0x538   : > { %5615 = vrcp.f32 %v2513_v27 }
 0x539   : > { %3044 = vmatpush.bf16.msra.mxu3 %v5014_v31  ;;  %5617 = vrcp.f32 %v2511_v49  ;;  %v8325_v49 = vld [vmem:[#allocation31_spill] sm:$0xff] }
 0x53a   : > { %5619 = vrcp.f32 %v2159_v15 }
 0x53b   : > { %5350 = vrot.lane.b32.xlu2 %v5349_v43, %s5889_s1  ;;  %v2589_v43 = vpop.f32.mrf.mxu2  ;;  %5621 = vrcp.f32 %v2157_v5 }
 0x53d   : > { %1420 = vadd.xlane.f32.xlu0 %v6786_v16  ;;  %v5610_v16 = vpop.eup %5609 }
 0x53e   : > { %v5612_v13 = vpop.eup %5611  ;;  %v1920_v46 = vmul.f32 %v5610_v16, %v7146_v54 }
 0x53f   : > { %v1807_v35 = vpop.xlane.xlu1 %1806  ;;  %v5614_v33 = vpop.eup %5613  ;;  %v1919_v60 = vmul.f32 %v5612_v13, %v7134_v2 }
 0x540   : > { %v1554_v12 = vmul.f32 %v5614_v33, %v8321_v0  ;;  %v5616_v24 = vpop.eup %5615  ;;  %v5306_v4 = vpop.permute.xlu0 %5305  ;;  %5623 = vrcp.f32 %v1807_v35 }
 0x541   : > { %v5359_v37 = vpack.i.bf16 %v1920_v46, %v1919_v60  ;;  %v5618_v54 = vpop.eup %5617  ;;  %5625 = vrcp.f32 %v7224_v48  ;;  %v2240_v48 = vpop.f32.mrf.mxu0  ;;  %v5308_v13 = vunpack.i.h.bf16 %v5306_v4  ;;  %v5307_v46 = vunpack.i.l.bf16 %v5306_v4 }
 0x542   : > { %v2824_v28 = vsel %vm1222_vm0, %v1554_v12, %v5273_v20  ;;  %v2627_v29 = vmul.f32 %v5618_v54, %v2589_v43  ;;  %v5620_v7 = vpop.eup %5619  ;;  %v8326_v54 = vld [vmem:[#allocation33_spill] sm:$0xff] }
 0x543   : > { %5355 = vrot.lane.b32.xlu2 %v5354_v8, %s5890_s2  ;;  %v2841_v26 = vsel %vm2839_vm1, %v2824_v28, %v5278_v38  ;;  %v2591_v18 = vpop.f32.mrf.mxu2  ;;  %v5622_v21 = vpop.eup %5621  ;;  %v2274_v53 = vmul.f32 %v5620_v7, %v2237_v23  ;;  %v5008_v8 = vld [vmem:[#allocation4 + $0x10] sm:$0xff]  ;;  %v2847_v60 = vsel %vm2839_vm1, %v7253_v1, %v5308_v13  ;;  %v2846_v0 = vsel %vm2839_vm1, %v7204_v50, %v5307_v46  ;;  %v8330_v13 = vld [vmem:[#allocation38_spill] sm:$0xff] }
 0x544   : > { %v2628_v42 = vmul.f32 %v5616_v24, %v2591_v18  ;;  %v2273_v11 = vmul.f32 %v5622_v21, %v2235_v39 }
 0x545   : > { %1426 = vadd.xlane.f32.xlu0 %v8319_v3 }
 0x546   : > { %v5369_v63 = vpack.i.bf16 %v2628_v42, %v2627_v29  ;;  %v5364_v44 = vpack.i.bf16 %v2274_v53, %v2273_v11  ;;  %v5624_v62 = vpop.eup %5623 }
 0x547   : > { %v5626_v10 = vpop.eup %5625  ;;  %v1921_v51 = vmul.f32 %v5624_v62, %v7159_v40 }
 0x548   : > { %v1922_v9 = vmul.f32 %v5626_v10, %v7164_v6  ;;  %v8328_v10 = vld [vmem:[#allocation35_spill] sm:$0xff] }
 0x549   : > { %v2242_v6 = vpop.f32.mrf.mxu0 }
 0x54a   : > { %v5374_v15 = vpack.i.bf16 %v1922_v9, %v1921_v51 }
 0x54b   : > { %v2594_v32 = vpop.f32.mrf.mxu2 }
 0x553   : > { %v2596_v41 = vpop.f32.mrf.mxu2 }
 0x557   : > { %v5316_v47 = vpop.permute.xlu1 %5315 }
 0x558   : > { %v5318_v56 = vunpack.i.h.bf16 %v5316_v47  ;;  %v5317_v45 = vunpack.i.l.bf16 %v5316_v47 }
 0x559   : > { %5360 = vrot.lane.b32.xlu0 %v5359_v37, %s5891_s3 }
 0x55a   : > { %v2858_v61 = vsel %vm2856_vm2, %v2841_v26, %v5318_v56  ;;  %v2857_v2 = vsel %vm2856_vm2, %v7182_v34, %v5317_v45  ;;  %1422 = vadd.xlane.f32.xlu1 %v8322_v36  ;;  %v8323_v34 = vld [vmem:[#allocation27_spill] sm:$0xff] }
 0x55b   : > { %v5098_v55 = vpack.c.bf16 %v2858_v61, %v2857_v2  ;;  %v8327_v61 = vld [vmem:[#allocation34_spill] sm:$0xff] }
 0x55d   : > { %5099 = vst [vmem:[#allocation4 + $0x30] sm:$0xff] %v5098_v55  }
 0x561   : > { %5370 = vrot.lane.b32.xlu0 %v5369_v63, %s5890_s2 }
 0x562   : > { %v2517_v25 = vpop.xlane.xlu2 %2516 }
 0x564   : > { %v5006_v52 = vld [vmem:[#allocation4 + $0x30] sm:$0xff] }
 0x565   : > { %3045 = vmatmul.bf16.vlgmr.msra.gmra.mxu3 %v5006_v52 }
 0x56a   : > { %v1419_v30 = vpop.xlane.xlu0 %1418 }
 0x56c   : > { %1424 = vadd.xlane.f32.xlu2 %v8323_v34 }
 0x572   : > { %v2161_v22 = vpop.xlane.xlu0 %2160 }
 0x573   : > { %5365 = vrot.lane.b32.xlu1 %v5364_v44, %s5889_s1  ;;  %5627 = vrcp.f32 %v2161_v22 }
 0x574   : > { %1430 = vadd.xlane.f32.xlu2 %v8324_v14  ;;  %5629 = vrcp.f32 %v7234_v17 }
 0x575   : > { %3050 = vmatmul.bf16.gmra.mxu3 %v5007_v59  ;;  %5631 = vrcp.f32 %v2517_v25 }
 0x579   : > { %v5628_v57 = vpop.eup %5627 }
 0x57a   : > { %v5630_v31 = vpop.eup %5629  ;;  %v2275_v40 = vmul.f32 %v5628_v57, %v2240_v48 }
 0x57b   : > { %5375 = vrot.lane.b32.xlu1 %v5374_v15, %s5891_s3  ;;  %v5632_v27 = vpop.eup %5631  ;;  %v2276_v3 = vmul.f32 %v5630_v31, %v2242_v6 }
 0x57c   : > { %v2630_v35 = vmul.f32 %v5632_v27, %v2596_v41 }
 0x57d   : > { %v5379_v43 = vpack.i.bf16 %v2276_v3, %v2275_v40 }
 0x582   : > { %v2515_v58 = vpop.xlane.xlu1 %2514 }
 0x583   : > { %5633 = vrcp.f32 %v2515_v58 }
 0x584   : > { %5635 = vrcp.f32 %v7218_v19 }
 0x585   : > { %3055 = vmatmul.bf16.gmra.mxu3 %v5008_v8  ;;  %5637 = vrcp.f32 %v1419_v30  ;;  %v5311_v12 = vpop.permute.xlu0 %5310  ;;  %v5341_v26 = vpop.permute.xlu2 %5340 }
 0x586   : > { %v5313_v56 = vunpack.i.h.bf16 %v5311_v12  ;;  %v5312_v45 = vunpack.i.l.bf16 %v5311_v12  ;;  %v5343_v50 = vunpack.i.h.bf16 %v5341_v26  ;;  %v5342_v55 = vunpack.i.l.bf16 %v5341_v26 }
 0x589   : > { %v5634_v5 = vpop.eup %5633 }
 0x58a   : > { %v2629_v16 = vmul.f32 %v5634_v5, %v2594_v32  ;;  %v5636_v24 = vpop.eup %5635  ;;  %v8329_v32 = vld [vmem:[#allocation36_spill] sm:$0xff] }
 0x58b   : > { %1428 = vadd.xlane.f32.xlu0 %v8325_v49  ;;  %v5638_v19 = vpop.eup %5637  ;;  %v1561_v18 = vmul.f32 %v5636_v24, %v8326_v54 }
 0x58c   : > { %5380 = vrot.lane.b32.xlu2 %v5379_v43, %s5889_s1  ;;  %v5384_v17 = vpack.i.bf16 %v2630_v35, %v2629_v16  ;;  %v1562_v2 = vmul.f32 %v5638_v19, %v8327_v61 }
 0x58d   : > { %v2831_v63 = vsel %vm1222_vm0, %v1561_v18, %v5312_v45  ;;  %v5346_v53 = vpop.permute.xlu2 %5345 }
 0x58e   : > { %5385 = vrot.lane.b32.xlu1 %v5384_v17, %s5890_s2  ;;  %v2832_v29 = vsel %vm1222_vm0, %v1562_v2, %v5313_v56  ;;  %v5347_v59 = vunpack.i.l.bf16 %v5346_v53  ;;  %v5348_v25 = vunpack.i.h.bf16 %v5346_v53 }
 0x595   : > { %v5351_v30 = vpop.permute.xlu2 %5350 }
 0x596   : > { %v5352_v15 = vunpack.i.l.bf16 %v5351_v30  ;;  %v5353_v57 = vunpack.i.h.bf16 %v5351_v30 }
 0x59a   : > { %v5331_v20 = vpop.permute.xlu1 %5330 }
 0x59b   : > { %v5333_v33 = vunpack.i.h.bf16 %v5331_v20  ;;  %v5332_v38 = vunpack.i.l.bf16 %v5331_v20 }
 0x59d   : > { %v2864_v47 = vsel %vm2856_vm2, %v2847_v60, %v5333_v33  ;;  %v2863_v37 = vsel %vm2856_vm2, %v2846_v0, %v5332_v38  ;;  %v5356_v22 = vpop.permute.xlu2 %5355  ;;  %v7343_v0 = vld [vmem:[%s8331_s15] ss:$0 sm:$0xff] }
 0x59e   : > { %v5113_v28 = vpack.c.bf16 %v2864_v47, %v2863_v37  ;;  %v5358_v31 = vunpack.i.h.bf16 %v5356_v22  ;;  %v5357_v40 = vunpack.i.l.bf16 %v5356_v22  ;;  %v8332_v37 = vld [vmem:[#allocation37_spill] sm:$0xff] }
 0x5a0   : > { %5144 = vst [vmem:[#allocation4 + $0x28] sm:$0xff] %v5113_v28  }
 0x5a2   : > { %v5336_v1 = vpop.permute.xlu1 %5335 }
 0x5a3   : > { %v5338_v36 = vunpack.i.h.bf16 %v5336_v1  ;;  %v5337_v42 = vunpack.i.l.bf16 %v5336_v1 }
 0x5a5   : > { %v2849_v39 = vsel %vm2839_vm1, %v2832_v29, %v5338_v36  ;;  %v2848_v52 = vsel %vm2839_vm1, %v2831_v63, %v5337_v42  ;;  %v5717_v42 = vld [vmem:[#allocation2 + $0x30] sm:$0xff]  ;;  %v5718_v63 = vld [vmem:[#allocation2] sm:$0xff] }
 0x5a6   : > { %v2866_v4 = vsel %vm2856_vm2, %v2849_v39, %v5343_v50  ;;  %v2865_v7 = vsel %vm2856_vm2, %v2848_v52, %v5342_v55 }
 0x5a7   : > { %v5118_v21 = vpack.c.bf16 %v2866_v4, %v2865_v7  ;;  %v5009_v23 = vld [vmem:[#allocation4 + $0x28] sm:$0xff] }
 0x5a8   : > { %3060 = vmatmul.bf16.gmra.mxu3 %v5009_v23 }
 0x5a9   : > { %5145 = vst [vmem:[#allocation4 + $0x38] sm:$0xff] %v5118_v21  }
 0x5b0   : > { %v5010_v34 = vld [vmem:[#allocation4 + $0x38] sm:$0xff]  ;;  %v1421_v11 = vpop.xlane.xlu0 %1420 }
 0x5b1   : > { %5639 = vrcp.f32 %v1421_v11 }
 0x5b7   : > { %v5640_v44 = vpop.eup %5639 }
 0x5b8   : > { %3065 = vmatmul.bf16.gmra.mxu3 %v5010_v34  ;;  %v1563_v14 = vmul.f32 %v5640_v44, %v8328_v10  ;;  %v1427_v48 = vpop.xlane.xlu0 %1426  ;;  %v5719_v34 = vld [vmem:[#allocation2 + $0x58] sm:$0xff] }
 0x5ba   : > { %v2833_v51 = vsel %vm1222_vm0, %v1563_v14, %v5347_v59 }
 0x5bb   : > { %v2850_v8 = vsel %vm2839_vm1, %v2833_v51, %v5352_v15  ;;  %v5720_v15 = vld [vmem:[#allocation2 + $0x18] sm:$0xff] }
 0x5bc   : > { %v2867_v3 = vsel %vm2856_vm2, %v2850_v8, %v5357_v40 }
 0x5cb   : > { %v5361_v35 = vpop.permute.xlu0 %5360 }
 0x5cc   : > { %v5363_v49 = vunpack.i.h.bf16 %v5361_v35  ;;  %v5362_v47 = vunpack.i.l.bf16 %v5361_v35 }
 0x5cd   : > { %v1423_v62 = vpop.xlane.xlu1 %1422 }
 0x5ce   : > { %5641 = vrcp.f32 %v1423_v62  ;;  %v8333_v62 = vld [vmem:[#allocation40_spill] sm:$0xff] }
 0x5cf   : > { %5643 = vrcp.f32 %v1427_v48 }
 0x5d3   : > { %v5371_v38 = vpop.permute.xlu0 %5370 }
 0x5d4   : > { %v5642_v9 = vpop.eup %5641  ;;  %v5373_v56 = vunpack.i.h.bf16 %v5371_v38  ;;  %v5372_v45 = vunpack.i.l.bf16 %v5371_v38 }
 0x5d5   : > { %v1564_v58 = vmul.f32 %v5642_v9, %v8329_v32  ;;  %v5644_v43 = vpop.eup %5643 }
 0x5d6   : > { %v1566_v46 = vmul.f32 %v5644_v43, %v8330_v13 }
 0x5d7   : > { %v2834_v27 = vsel %vm1222_vm0, %v1564_v58, %v5348_v25 }
 0x5d8   : > { %v2851_v6 = vsel %vm2839_vm1, %v2834_v27, %v5353_v57  ;;  %v2836_v12 = vsel %vm1222_vm0, %v1566_v46, %v5363_v49  ;;  %v8334_v57 = vld [vmem:[#allocation39_spill] sm:$0xff] }
 0x5d9   : > { %v2868_v5 = vsel %vm2856_vm2, %v2851_v6, %v5358_v31 }
 0x5da   : > { %v5123_v41 = vpack.c.bf16 %v2868_v5, %v2867_v3 }
 0x5dc   : > { %5146 = vst [vmem:[#allocation4 + $0x18] sm:$0xff] %v5123_v41  }
 0x5df   : > { %v1425_v16 = vpop.xlane.xlu2 %1424 }
 0x5e0   : > { %5645 = vrcp.f32 %v1425_v16 }
 0x5e3   : > { %v5011_v17 = vld [vmem:[#allocation4 + $0x18] sm:$0xff] }
 0x5e4   : > { %3070 = vmatmul.bf16.gmra.mxu3 %v5011_v17  ;;  %v5721_v17 = vld [vmem:[#allocation2 + $0x50] sm:$0xff] }
 0x5e5   : > { %v5366_v20 = vpop.permute.xlu1 %5365 }
 0x5e6   : > { %v5646_v33 = vpop.eup %5645  ;;  %v5368_v60 = vunpack.i.h.bf16 %v5366_v20  ;;  %v5367_v19 = vunpack.i.l.bf16 %v5366_v20 }
 0x5e7   : > { %v1565_v24 = vmul.f32 %v5646_v33, %v8332_v37  ;;  %v1431_v4 = vpop.xlane.xlu2 %1430  ;;  %v5722_v33 = vld [vmem:[#allocation2 + $0x68] sm:$0xff] }
 0x5e8   : > { %v2853_v28 = vsel %vm2839_vm1, %v2836_v12, %v5368_v60  ;;  %v3046_v54 = vpop.f32.mrf.mxu3  ;;  %5647 = vrcp.f32 %v1431_v4 }
 0x5e9   : > { %v2835_v26 = vsel %vm1222_vm0, %v1565_v24, %v5362_v47  ;;  %v3047_v61 = vadd.f32 %v7343_v0, %v3046_v54  ;;  %v2870_v2 = vsel %vm2856_vm2, %v2853_v28, %v5373_v56  ;;  %v5723_v24 = vld [vmem:[#allocation2 + $0x48] sm:$0xff]  ;;  %v5892_v54 = vmov 128.0  }
 0x5ea   : > { %v2852_v18 = vsel %vm2839_vm1, %v2835_v26, %v5367_v19 }
 0x5eb   : > { %v2869_v1 = vsel %vm2856_vm2, %v2852_v18, %v5372_v45  ;;  %v7353_v50 = vadd.f32 %v5717_v42, %v3047_v61  ;;  %v5724_v45 = vld [vmem:[#allocation2 + $0x40] sm:$0xff] }
 0x5ec   : > { %v5128_v36 = vpack.c.bf16 %v2870_v2, %v2869_v1 }
 0x5ed   : > { %3102 = vadd.xlane.f32.xlu1 %v7353_v50  ;;  %v5376_v23 = vpop.permute.xlu1 %5375 }
 0x5ee   : > { %5147 = vst [vmem:[#allocation4 + $0x8] sm:$0xff] %v5128_v36   ;;  %v5648_v30 = vpop.eup %5647  ;;  %v5378_v14 = vunpack.i.h.bf16 %v5376_v23  ;;  %v5377_v58 = vunpack.i.l.bf16 %v5376_v23 }
 0x5ef   : > { %v1568_v10 = vmul.f32 %v5648_v30, %v8333_v62  ;;  %v5381_v59 = vpop.permute.xlu2 %5380 }
 0x5f0   : > { %v3048_v55 = vpop.f32.mrf.mxu3  ;;  %v5383_v25 = vunpack.i.h.bf16 %v5381_v59  ;;  %v5382_v40 = vunpack.i.l.bf16 %v5381_v59 }
 0x5f1   : > { %v3049_v29 = vadd.f32 %v7343_v0, %v3048_v55  ;;  %v2838_v32 = vsel %vm1222_vm0, %v1568_v10, %v5378_v14 }
 0x5f2   : > { %v2855_v3 = vsel %vm2839_vm1, %v2838_v32, %v5383_v25 }
 0x5f3   : > { %v7357_v39 = vadd.f32 %v5718_v63, %v3049_v29 }
 0x5f5   : > { %v5012_v52 = vld [vmem:[#allocation4 + $0x8] sm:$0xff]  ;;  %3104 = vadd.xlane.f32.xlu2 %v7357_v39 }
 0x5f6   : > { %3075 = vmatmul.bf16.gmra.mxu3 %v5012_v52 }
 0x5f8   : > { %v3051_v7 = vpop.f32.mrf.mxu3 }
 0x5f9   : > { %v3052_v21 = vadd.f32 %v7343_v0, %v3051_v7 }
 0x5fb   : > { %v7361_v53 = vadd.f32 %v5719_v34, %v3052_v21  ;;  %v5725_v34 = vld [vmem:[#allocation2 + $0x8] sm:$0xff] }
 0x5fd   : > { %3106 = vadd.xlane.f32.xlu0 %v7361_v53 }
 0x5fe   : > { %v1429_v11 = vpop.xlane.xlu0 %1428 }
 0x5ff   : > { %5649 = vrcp.f32 %v1429_v11 }
 0x600   : > { %v3053_v44 = vpop.f32.mrf.mxu3  ;;  %v5386_v9 = vpop.permute.xlu1 %5385  ;;  %5651 = vrcp.f32 %v5892_v54  ;;  %v5730_v54 = vld [vmem:[#allocation2 + $0x28] sm:$0xff] }
 0x601   : > { %v3054_v51 = vadd.f32 %v7343_v0, %v3053_v44  ;;  %v5388_v31 = vunpack.i.h.bf16 %v5386_v9  ;;  %v5387_v27 = vunpack.i.l.bf16 %v5386_v9 }
 0x603   : > { %v7366_v22 = vadd.f32 %v5720_v15, %v3054_v51  ;;  %v2872_v16 = vsel %vm2856_vm2, %v2855_v3, %v5388_v31 }
 0x605   : > { %v5650_v48 = vpop.eup %5649  ;;  %3108 = vadd.xlane.f32.xlu0 %v7366_v22 }
 0x606   : > { %v1567_v8 = vmul.f32 %v5650_v48, %v8334_v57  ;;  %v5652_v18 = vpop.eup %5651  ;;  %v5726_v48 = vld [vmem:[#allocation2 + $0x20] sm:$0xff] }
 0x607   : > { %v3135_v61 = vmul.f32 128.0, %v5652_v18  ;;  %vm3139_vm3 = vweird.f32 %v5652_v18 }
 0x608   : > { %v2837_v6 = vsel %vm1222_vm0, %v1567_v8, %v5377_v58  ;;  %v3056_v41 = vpop.f32.mrf.mxu3 }
 0x609   : > { %v2854_v5 = vsel %vm2839_vm1, %v2837_v6, %v5382_v40  ;;  %v3057_v43 = vadd.f32 %v7343_v0, %v3056_v41  ;;  %v3136_v2 = vsub.f32 1.0, %v3135_v61  ;;  %v4894_v61 = vld [vmem:[%s6123_s9 + $0x70] sm:$0xf] }
 0x60a   : > { %v2871_v35 = vsel %vm2856_vm2, %v2854_v5, %v5387_v27 }
 0x60b   : > { %v5133_v49 = vpack.c.bf16 %v2872_v16, %v2871_v35  ;;  %v7377_v13 = vadd.f32 %v5721_v17, %v3057_v43  ;;  %v3137_v1 = vmul.f32 %v5652_v18, %v3136_v2  ;;  %v5728_v35 = vld [vmem:[#allocation2 + $0x38] sm:$0xff] }
 0x60c   : > { %v5037_v2 = vld [vmem:[%s6123_s9 + $0x74] sm:$0xf0] }
 0x60d   : > { %5148 = vst [vmem:[#allocation4 + $0x20] sm:$0xff] %v5133_v49   ;;  %3110 = vadd.xlane.f32.xlu0 %v7377_v13  ;;  %v3138_v36 = vadd.f32 %v5652_v18, %v3137_v1  ;;  %v5036_v1 = vld [vmem:[%s6123_s9 + $0x74] sm:$0xf] }
 0x60f   : > { %v7392_v42 = vsel %vm3139_vm3, %v5652_v18, %v3138_v36  ;;  %v4896_v36 = vld [vmem:[%s6123_s9 + $0x78] sm:$0xf0] }
 0x610   : > { %v3058_v46 = vpop.f32.mrf.mxu3 }
 0x611   : > { %v3059_v20 = vadd.f32 %v7343_v0, %v3058_v46 }
 0x613   : > { %v7381_v38 = vadd.f32 %v5722_v33, %v3059_v20 }
 0x614   : > { %v5013_v60 = vld [vmem:[#allocation4 + $0x20] sm:$0xff] }
 0x615   : > { %3112 = vadd.xlane.f32.xlu1 %v7381_v38  ;;  %3080 = vmatmul.bf16.gmra.mxu3 %v5013_v60 }
 0x62b   : > { %v3061_v12 = vpop.f32.mrf.mxu3 }
 0x62c   : > { %v3062_v7 = vadd.f32 %v7343_v0, %v3061_v12 }
 0x62e   : > { %v7405_v11 = vadd.f32 %v5725_v34, %v3062_v7 }
 0x633   : > { %v3063_v47 = vpop.f32.mrf.mxu3 }
 0x634   : > { %v3064_v37 = vadd.f32 %v7343_v0, %v3063_v47 }
 0x636   : > { %v7385_v28 = vadd.f32 %v5723_v24, %v3064_v37 }
 0x638   : > { %3116 = vadd.xlane.f32.xlu2 %v7385_v28 }
 0x63b   : > { %v3066_v19 = vpop.f32.mrf.mxu3 }
 0x63c   : > { %v3067_v56 = vadd.f32 %v7343_v0, %v3066_v19 }
 0x63e   : > { %v7389_v26 = vadd.f32 %v5724_v45, %v3067_v56 }
 0x640   : > { %3118 = vadd.xlane.f32.xlu2 %v7389_v26 }
 0x643   : > { %v3068_v10 = vpop.f32.mrf.mxu3 }
 0x644   : > { %v3069_v59 = vadd.f32 %v7343_v0, %v3068_v10 }
 0x646   : > { %v7421_v25 = vadd.f32 %v5726_v48, %v3069_v59  ;;  %v4870_v59 = vld [vmem:[%s6123_s9 + $0x40] sm:$0xf] }
 0x660   : > { %v3103_v55 = vpop.xlane.xlu1 %3102 }
 0x661   : > { %v3141_v29 = vmul.f32 %v7392_v42, %v3103_v55  ;;  %v4899_v55 = vor.u32 %v5036_v1, %v4896_v36 }
 0x663   : > { %v7396_v63 = vsub.f32 %v7353_v50, %v3141_v29  ;;  %3628 = vmatpush.bf16.msrb.mxu1 %v4899_v55  ;;  %v4886_v29 = vld [vmem:[%s6123_s9 + $0x60] sm:$0xf] }
 0x665   : > { %v3173_v52 = vmul.f32 %v7396_v63, %v7396_v63 }
 0x667   : > { %3189 = vadd.xlane.f32.xlu0 %v3173_v52  ;;  %v3071_v15 = vpop.f32.mrf.mxu3  ;;  %v5035_v52 = vld [vmem:[%s6123_s9 + $0x64] sm:$0xf0] }
 0x668   : > { %v3105_v4 = vpop.xlane.xlu2 %3104  ;;  %v3072_v58 = vadd.f32 %v7343_v0, %v3071_v15  ;;  %v4887_v7 = vor.u32 %v5035_v52, %v4886_v29  ;;  %v5030_v15 = vld [vmem:[%s6123_s9 + $0x44] sm:$0xf] }
 0x669   : > { %v3142_v21 = vmul.f32 %v7392_v42, %v3105_v4  ;;  %v5034_v4 = vld [vmem:[%s6123_s9 + $0x64] sm:$0xf] }
 0x66b   : > { %v7403_v23 = vsub.f32 %v7357_v39, %v3142_v21  ;;  %v4888_v21 = vld [vmem:[%s6123_s9 + $0x68] sm:$0xf0] }
 0x66c   : > { %v4891_v34 = vor.u32 %v5034_v4, %v4888_v21 }
 0x66d   : > { %v3174_v30 = vmul.f32 %v7403_v23, %v7403_v23 }
 0x66e   : > { %3629 = vmatpush.bf16.msrb.mxu1 %v4891_v34 }
 0x66f   : > { %3191 = vadd.xlane.f32.xlu1 %v3174_v30  ;;  %3114 = vadd.xlane.f32.xlu0 %v7405_v11  ;;  %v3073_v27 = vpop.f32.mrf.mxu3  ;;  %v4878_v30 = vld [vmem:[%s6123_s9 + $0x50] sm:$0xf] }
 0x670   : > { %v3107_v50 = vpop.xlane.xlu0 %3106  ;;  %v3074_v3 = vadd.f32 %v7343_v0, %v3073_v27  ;;  %v4864_v27 = vld [vmem:[%s6123_s9 + $0x38] sm:$0xf0] }
 0x671   : > { %v3143_v44 = vmul.f32 %v7392_v42, %v3107_v50  ;;  %v5033_v50 = vld [vmem:[%s6123_s9 + $0x54] sm:$0xf0] }
 0x672   : > { %v7441_v16 = vadd.f32 %v5728_v35, %v3074_v3  ;;  %v4879_v10 = vor.u32 %v5033_v50, %v4878_v30  ;;  %v4854_v3 = vld [vmem:[%s6123_s9 + $0x20] sm:$0xf]  ;;  %v5026_v35 = vld [vmem:[%s6123_s9 + $0x24] sm:$0xf] }
 0x673   : > { %v7412_v62 = vsub.f32 %v7361_v53, %v3143_v44  ;;  %v5032_v44 = vld [vmem:[%s6123_s9 + $0x54] sm:$0xf] }
 0x675   : > { %v3175_v39 = vmul.f32 %v7412_v62, %v7412_v62 }
 0x677   : > { %3193 = vadd.xlane.f32.xlu1 %v3175_v39  ;;  %v4880_v39 = vld [vmem:[%s6123_s9 + $0x58] sm:$0xf0] }
 0x678   : > { %v3109_v14 = vpop.xlane.xlu0 %3108 }
 0x679   : > { %v3144_v51 = vmul.f32 %v7392_v42, %v3109_v14  ;;  %v3076_v49 = vpop.f32.mrf.mxu3  ;;  %v4883_v14 = vor.u32 %v5032_v44, %v4880_v39 }
 0x67a   : > { %v3077_v17 = vadd.f32 %v7343_v0, %v3076_v49  ;;  %v4856_v49 = vld [vmem:[%s6123_s9 + $0x28] sm:$0xf0] }
 0x67b   : > { %v7419_v9 = vsub.f32 %v7366_v22, %v3144_v51  ;;  %v5727_v22 = vld [vmem:[#allocation2 + $0x10] sm:$0xff]  ;;  %3630 = vmatpush.bf16.msrb.mxu1 %v4883_v14  ;;  %v5031_v51 = vld [vmem:[%s6123_s9 + $0x44] sm:$0xf0] }
 0x67c   : > { %v7431_v31 = vadd.f32 %v5727_v22, %v3072_v58  ;;  %v4871_v48 = vor.u32 %v5031_v51, %v4870_v59  ;;  %v4862_v58 = vld [vmem:[%s6123_s9 + $0x30] sm:$0xf]  ;;  %v5028_v22 = vld [vmem:[%s6123_s9 + $0x34] sm:$0xf] }
 0x67d   : > { %v3176_v53 = vmul.f32 %v7419_v9, %v7419_v9 }
 0x67f   : > { %3120 = vadd.xlane.f32.xlu1 %v7421_v25  ;;  %3195 = vadd.xlane.f32.xlu0 %v3176_v53  ;;  %v4872_v53 = vld [vmem:[%s6123_s9 + $0x48] sm:$0xf0] }
 0x680   : > { %v3111_v32 = vpop.xlane.xlu0 %3110 }
 0x681   : > { %v3145_v57 = vmul.f32 %v7392_v42, %v3111_v32  ;;  %v7450_v20 = vpop.f32.mrf.mxu3  ;;  %v4875_v32 = vor.u32 %v5030_v15, %v4872_v53 }
 0x682   : > { %v3079_v14 = vadd.f32 %v7343_v0, %v7450_v20 }
 0x683   : > { %v7429_v8 = vsub.f32 %v7377_v13, %v3145_v57  ;;  %v5729_v13 = vld [vmem:[#allocation2 + $0x60] sm:$0xff]  ;;  %3631 = vmatpush.bf16.msrb.mxu1 %v4875_v32  ;;  %v5029_v57 = vld [vmem:[%s6123_s9 + $0x34] sm:$0xf0]  ;;  %v5731_v32 = vld [vmem:[#allocation2 + $0x70] sm:$0xff] }
 0x684   : > { %v7447_v46 = vadd.f32 %v5729_v13, %v3077_v17  ;;  %v4859_v17 = vor.u32 %v5026_v35, %v4856_v49  ;;  %v4846_v13 = vld [vmem:[%s6123_s9 + $0x10] sm:$0xf]  ;;  %v7525_v49 = vld [vmem:[%s8336_s25] ss:$0 sm:$0xff] }
 0x685   : > { %v3177_v40 = vmul.f32 %v7429_v8, %v7429_v8 }
 0x687   : > { %3122 = vadd.xlane.f32.xlu1 %v7431_v31  ;;  %3197 = vadd.xlane.f32.xlu0 %v3177_v40  ;;  %v4863_v40 = vor.u32 %v5029_v57, %v4862_v58  ;;  %v7513_v58 = vadd.f32 %v5731_v32, %v3079_v14 }
 0x688   : > { %v3113_v6 = vpop.xlane.xlu1 %3112 }
 0x689   : > { %v3146_v5 = vmul.f32 %v7392_v42, %v3113_v6  ;;  %v4867_v6 = vor.u32 %v5028_v22, %v4864_v27 }
 0x68b   : > { %v7439_v41 = vsub.f32 %v7381_v38, %v3146_v5  ;;  %3632 = vmatpush.bf16.msrb.mxu1 %v4867_v6  ;;  %v5027_v5 = vld [vmem:[%s6123_s9 + $0x24] sm:$0xf0] }
 0x68d   : > { %v3178_v43 = vmul.f32 %v7439_v41, %v7439_v41 }
 0x68f   : > { %3199 = vadd.xlane.f32.xlu2 %v3178_v43  ;;  %3124 = vadd.xlane.f32.xlu0 %v7441_v16  ;;  %v4855_v43 = vor.u32 %v5027_v5, %v4854_v3 }
 0x690   : > { %3633 = vmatpush.bf16.msrb.mxu1 %v4859_v17 }
 0x697   : > { %3126 = vadd.xlane.f32.xlu0 %v7447_v46 }
 0x698   : > { %v7456_v12 = vpop.f32.mrf.mxu3 }
 0x699   : > { %v3082_v6 = vadd.f32 %v7343_v0, %v7456_v12 }
 0x6ab   : > { %v3117_v33 = vpop.xlane.xlu2 %3116 }
 0x6ac   : > { %v3148_v38 = vmul.f32 %v7392_v42, %v3117_v33  ;;  %v5025_v33 = vld [vmem:[%s6123_s9 + $0x14] sm:$0xf0] }
 0x6ae   : > { %v7454_v60 = vsub.f32 %v7385_v28, %v3148_v38  ;;  %v3083_v28 = vpop.f32.mrf.mxu3  ;;  %v5024_v38 = vld [vmem:[%s6123_s9 + $0x14] sm:$0xf] }
 0x6af   : > { %v3084_v45 = vadd.f32 %v7343_v0, %v3083_v28 }
 0x6b0   : > { %v3180_v47 = vmul.f32 %v7454_v60, %v7454_v60 }
 0x6b1   : > { %v7467_v18 = vadd.f32 %v5730_v54, %v3084_v45  ;;  %v4838_v45 = vld [vmem:[%s6123_s9] sm:$0xf]  ;;  %v5023_v54 = vld [vmem:[%s6123_s9 + $0x4] sm:$0xf0] }
 0x6b2   : > { %3203 = vadd.xlane.f32.xlu1 %v3180_v47  ;;  %v4847_v47 = vor.u32 %v5025_v33, %v4846_v13  ;;  %v4839_v1 = vor.u32 %v5023_v54, %v4838_v45 }
 0x6b3   : > { %v3119_v37 = vpop.xlane.xlu2 %3118 }
 0x6b4   : > { %v3149_v24 = vmul.f32 %v7392_v42, %v3119_v37  ;;  %v4848_v37 = vld [vmem:[%s6123_s9 + $0x18] sm:$0xf0] }
 0x6b6   : > { %v7462_v19 = vsub.f32 %v7389_v26, %v3149_v24  ;;  %v4895_v26 = vor.u32 %v5037_v2, %v4894_v61  ;;  %v5022_v61 = vld [vmem:[%s6123_s9 + $0x4] sm:$0xf] }
 0x6b8   : > { %v3181_v56 = vmul.f32 %v7462_v19, %v7462_v19  ;;  %3579 = vmatpush.bf16.msrb.mxu0 %v4895_v26  ;;  %v4840_v26 = vld [vmem:[%s6123_s9 + $0x8] sm:$0xf0]  ;;  %s8338_s9 = scalar_lea.vmem %s8337_s20, %s6087_s27 }
 0x6b9   : > { %v4843_v36 = vor.u32 %v5022_v61, %v4840_v26 }
 0x6ba   : > { %3205 = vadd.xlane.f32.xlu1 %v3181_v56  ;;  %v4851_v56 = vor.u32 %v5024_v38, %v4848_v37  ;;  %v5732_v38 = vld [vmem:[#allocation2 + $0x78] sm:$0xff] }
 0x6bc   : > { %3580 = vmatpush.bf16.msrb.mxu0 %v4887_v7  ;;  %3634 = vmatpush.bf16.msrb.mxu1 %v4851_v56 }
 0x6c0   : > { %3581 = vmatpush.bf16.msrb.mxu0 %v4879_v10  ;;  %3635 = vmatpush.bf16.msrb.mxu1 %v4843_v36 }
 0x6c2   : > { %3132 = vadd.xlane.f32.xlu1 %v7467_v18 }
 0x6c4   : > { %3582 = vmatpush.bf16.msrb.mxu0 %v4871_v48 }
 0x6c8   : > { %3583 = vmatpush.bf16.msrb.mxu0 %v4863_v40 }
 0x6cc   : > { %3584 = vmatpush.bf16.msrb.mxu0 %v4855_v43 }
 0x6d0   : > { %3585 = vmatpush.bf16.msrb.mxu0 %v4847_v47  ;;  %v7531_v47 = vadd.f32 %v5732_v38, %v3082_v6 }
 0x6d4   : > { %3586 = vmatpush.bf16.msrb.mxu0 %v4839_v1 }
 0x6da   : > { %v3190_v24 = vpop.xlane.xlu0 %3189 }
 0x6db   : > { %v3221_v28 = vmul.f32 %v3190_v24, %v7392_v42 }
 0x6dd   : > { %v3237_v2 = vadd.f32 1e-05, %v3221_v28 }
 0x6df   : > { %5653 = vrsqrt.f32 %v3237_v2  ;;  %vm3259_vm5 = vweird.f32 %v3237_v2 }
 0x6e2   : > { %v3192_v55 = vpop.xlane.xlu1 %3191  ;;  %v3115_v29 = vpop.xlane.xlu0 %3114 }
 0x6e3   : > { %v3222_v52 = vmul.f32 %v3192_v55, %v7392_v42  ;;  %v3147_v4 = vmul.f32 %v7392_v42, %v3115_v29 }
 0x6e5   : > { %v5654_v7 = vpop.eup %5653  ;;  %v3238_v21 = vadd.f32 1e-05, %v3222_v52  ;;  %v7506_v34 = vsub.f32 %v7405_v11, %v3147_v4 }
 0x6e6   : > { %v3254_v30 = vmul.f32 %v5654_v7, %v3237_v2  ;;  %vm3260_vm4 = vweird.f32 %v5654_v7 }
 0x6e7   : > { %5655 = vrsqrt.f32 %v3238_v21  ;;  %v3179_v50 = vmul.f32 %v7506_v34, %v7506_v34  ;;  %vm3261_vm6 = vmor %vm3259_vm5, %vm3260_vm4  ;;  %vm3269_vm8 = vweird.f32 %v3238_v21 }
 0x6e8   : > { %v3255_v44 = vmul.f32 %v5654_v7, %v3254_v30 }
 0x6e9   : > { %3201 = vadd.xlane.f32.xlu2 %v3179_v50 }
 0x6ea   : > { %v3256_v10 = vmul.f32 0.5, %v3255_v44  ;;  %v3194_v39 = vpop.xlane.xlu1 %3193 }
 0x6eb   : > { %v3223_v59 = vmul.f32 %v3194_v39, %v7392_v42 }
 0x6ec   : > { %v3257_v51 = vsub.f32 1.5, %v3256_v10 }
 0x6ed   : > { %v5656_v15 = vpop.eup %5655  ;;  %v3239_v48 = vadd.f32 1e-05, %v3223_v59 }
 0x6ee   : > { %v3258_v53 = vmul.f32 %v5654_v7, %v3257_v51  ;;  %v3264_v11 = vmul.f32 %v5656_v15, %v3238_v21  ;;  %vm3270_vm7 = vweird.f32 %v5656_v15 }
 0x6ef   : > { %5657 = vrsqrt.f32 %v3239_v48  ;;  %vm3271_vm9 = vmor %vm3269_vm8, %vm3270_vm7  ;;  %vm3279_vm11 = vweird.f32 %v3239_v48 }
 0x6f0   : > { %v3265_v57 = vmul.f32 %v5656_v15, %v3264_v11  ;;  %v3262_v22 = vsel %vm3261_vm6, %v5654_v7, %v3258_v53 }
 0x6f1   : > { %3128 = vadd.xlane.f32.xlu2 %v7513_v58  ;;  %v3413_v17 = vmul.f32 %v3262_v22, %v7396_v63  ;;  %v7540_v63 = vld [vmem:[%s8338_s9] ss:$0 sm:$0xff] }
 0x6f2   : > { %v3266_v20 = vmul.f32 0.5, %v3265_v57  ;;  %v3121_v40 = vpop.xlane.xlu1 %3120  ;;  %v3196_v27 = vpop.xlane.xlu0 %3195 }
 0x6f3   : > { %v3150_v3 = vmul.f32 %v7392_v42, %v3121_v40  ;;  %v3224_v5 = vmul.f32 %v3196_v27, %v7392_v42 }
 0x6f4   : > { %v3267_v35 = vsub.f32 1.5, %v3266_v20 }
 0x6f5   : > { %v5658_v43 = vpop.eup %5657  ;;  %v7529_v13 = vsub.f32 %v7421_v25, %v3150_v3  ;;  %v3240_v0 = vadd.f32 1e-05, %v3224_v5  ;;  %v3433_v25 = vmul.f32 %v7525_v49, %v3413_v17 }
 0x6f6   : > { %v3268_v12 = vmul.f32 %v5656_v15, %v3267_v35  ;;  %v3274_v33 = vmul.f32 %v5658_v43, %v3239_v48  ;;  %vm3280_vm10 = vweird.f32 %v5658_v43 }
 0x6f7   : > { %5659 = vrsqrt.f32 %v3240_v0  ;;  %v3182_v37 = vmul.f32 %v7529_v13, %v7529_v13  ;;  %v7549_v29 = vadd.f32 %v7540_v63, %v3433_v25  ;;  %vm3281_vm12 = vmor %vm3279_vm11, %vm3280_vm10  ;;  %vm3289_vm14 = vweird.f32 %v3240_v0 }
 0x6f8   : > { %v3272_v24 = vsel %vm3271_vm9, %v5656_v15, %v3268_v12  ;;  %v3275_v56 = vmul.f32 %v5658_v43, %v3274_v33 }
 0x6f9   : > { %v3414_v28 = vmul.f32 %v3272_v24, %v7403_v23  ;;  %3207 = vadd.xlane.f32.xlu0 %v3182_v37  ;;  %3130 = vadd.xlane.f32.xlu2 %v7531_v47 }
 0x6fa   : > { %v3276_v45 = vmul.f32 0.5, %v3275_v56  ;;  %v3123_v54 = vpop.xlane.xlu1 %3122  ;;  %v3198_v61 = vpop.xlane.xlu0 %3197 }
 0x6fb   : > { %v3434_v2 = vmul.f32 %v7525_v49, %v3414_v28  ;;  %v3151_v1 = vmul.f32 %v7392_v42, %v3123_v54  ;;  %v3225_v26 = vmul.f32 %v3198_v61, %v7392_v42 }
 0x6fc   : > { %v3277_v36 = vsub.f32 1.5, %v3276_v45 }
 0x6fd   : > { %v5660_v55 = vpop.eup %5659  ;;  %v7552_v52 = vadd.f32 %v7540_v63, %v3434_v2  ;;  %v7555_v23 = vsub.f32 %v7431_v31, %v3151_v1  ;;  %v3241_v4 = vadd.f32 1e-05, %v3225_v26 }
 0x6fe   : > { %v3278_v7 = vmul.f32 %v5658_v43, %v3277_v36  ;;  %v3284_v21 = vmul.f32 %v5660_v55, %v3240_v0  ;;  %vm3290_vm13 = vweird.f32 %v5660_v55 }
 0x6ff   : > { %5661 = vrsqrt.f32 %v3241_v4  ;;  %v3183_v30 = vmul.f32 %v7555_v23, %v7555_v23  ;;  %v3469_v50 = vpack.c.bf16 %v7552_v52, %v7549_v29  ;;  %vm3291_vm15 = vmor %vm3289_vm14, %vm3290_vm13  ;;  %vm3299_vm1 = vweird.f32 %v3241_v4 }
 0x700   : > { %v3285_v44 = vmul.f32 %v5660_v55, %v3284_v21  ;;  %v3282_v10 = vsel %vm3281_vm12, %v5658_v43, %v3278_v7 }
 0x701   : > { %3209 = vadd.xlane.f32.xlu0 %v3183_v30  ;;  %3587 = vmatmul.bf16.vlgmr.msrb.gmra.mxu0 %v3469_v50  ;;  %v3415_v11 = vmul.f32 %v3282_v10, %v7412_v62 }
 0x702   : > { %v3286_v39 = vmul.f32 0.5, %v3285_v44  ;;  %3636 = vmatmul.bf16.vlgmr.msrb.gmra.mxu1 %v3469_v50  ;;  %v3200_v31 = vpop.xlane.xlu2 %3199  ;;  %v3125_v14 = vpop.xlane.xlu0 %3124 }
 0x703   : > { %v3226_v59 = vmul.f32 %v3200_v31, %v7392_v42  ;;  %v3152_v51 = vmul.f32 %v7392_v42, %v3125_v14  ;;  %v3435_v3 = vmul.f32 %v7525_v49, %v3415_v11  ;;  %v5044_v31 = vld [vmem:[%s6133_s16 + $0x30] sm:$0xff] }
 0x704   : > { %v3287_v15 = vsub.f32 1.5, %v3286_v39  ;;  %v5045_v39 = vld [vmem:[%s6133_s16 + $0x38] sm:$0xff] }
 0x705   : > { %v5662_v53 = vpop.eup %5661  ;;  %v3242_v32 = vadd.f32 1e-05, %v3226_v59  ;;  %v7565_v48 = vsub.f32 %v7441_v16, %v3152_v51  ;;  %v7577_v12 = vadd.f32 %v7540_v63, %v3435_v3  ;;  %3857 = vmatpush.bf16.msrb.mxu2 %v5045_v39  ;;  %v5043_v59 = vld [vmem:[%s6133_s16 + $0x28] sm:$0xff]  ;;  %v5052_v3 = vld [vmem:[%s6133_s16 + $0x70] sm:$0xff] }
 0x706   : > { %v3288_v57 = vmul.f32 %v5660_v55, %v3287_v15  ;;  %v3294_v22 = vmul.f32 %v5662_v53, %v3241_v4  ;;  %vm3300_vm0 = vweird.f32 %v5662_v53  ;;  %v5042_v15 = vld [vmem:[%s6133_s16 + $0x20] sm:$0xff] }
 0x707   : > { %5663 = vrsqrt.f32 %v3242_v32  ;;  %v3184_v20 = vmul.f32 %v7565_v48, %v7565_v48  ;;  %vm3301_vm2 = vmor %vm3299_vm1, %vm3300_vm0  ;;  %vm3309_vm4 = vweird.f32 %v3242_v32 }
 0x708   : > { %v3292_v40 = vsel %vm3291_vm15, %v5660_v55, %v3288_v57  ;;  %v3295_v27 = vmul.f32 %v5662_v53, %v3294_v22  ;;  %v5041_v22 = vld [vmem:[%s6133_s16 + $0x18] sm:$0xff] }
 0x709   : > { %v3416_v6 = vmul.f32 %v3292_v40, %v7419_v9  ;;  %3211 = vadd.xlane.f32.xlu2 %v3184_v20  ;;  %3858 = vmatpush.bf16.msrb.mxu2 %v5044_v31  ;;  %v5053_v20 = vld [vmem:[%s6133_s16 + $0x78] sm:$0xff]  ;;  %v5048_v31 = vld [vmem:[%s6133_s16 + $0x50] sm:$0xff] }
 0x70a   : > { %v3296_v62 = vmul.f32 0.5, %v3295_v27  ;;  %v3127_v5 = vpop.xlane.xlu0 %3126  ;;  %5149 = vmatpush.bf16.msrb.mxu3 %v5053_v20  ;;  %3906 = vmatpush.bf16.msra.mxu0 %v5053_v20 }
 0x70b   : > { %v3153_v16 = vmul.f32 %v7392_v42, %v3127_v5  ;;  %v3436_v35 = vmul.f32 %v7525_v49, %v3416_v6  ;;  %v5040_v6 = vld [vmem:[%s6133_s16 + $0x10] sm:$0xff] }
 0x70c   : > { %v3297_v43 = vsub.f32 1.5, %v3296_v62 }
 0x70d   : > { %v5664_v17 = vpop.eup %5663  ;;  %v7574_v0 = vsub.f32 %v7447_v46, %v3153_v16  ;;  %v7580_v33 = vadd.f32 %v7540_v63, %v3436_v35  ;;  %3859 = vmatpush.bf16.msrb.mxu2 %v5043_v59 }
 0x70e   : > { %v3298_v9 = vmul.f32 %v5662_v53, %v3297_v43  ;;  %v3304_v38 = vmul.f32 %v5664_v17, %v3242_v32  ;;  %vm3310_vm3 = vweird.f32 %v5664_v17  ;;  %5150 = vmatpush.bf16.msrb.mxu3 %v5052_v3  ;;  %3907 = vmatpush.bf16.msra.mxu0 %v5052_v3  ;;  %v5039_v43 = vld [vmem:[%s6133_s16 + $0x8] sm:$0xff] }
 0x70f   : > { %v3470_v37 = vpack.c.bf16 %v7580_v33, %v7577_v12  ;;  %v3185_v24 = vmul.f32 %v7574_v0, %v7574_v0  ;;  %vm3311_vm5 = vmor %vm3309_vm4, %vm3310_vm3 }
 0x710   : > { %v3305_v56 = vmul.f32 %v5664_v17, %v3304_v38  ;;  %v3302_v46 = vsel %vm3301_vm2, %v5662_v53, %v3298_v9 }
 0x711   : > { %3592 = vmatmul.bf16.gmra.mxu0 %v3470_v37  ;;  %3213 = vadd.xlane.f32.xlu1 %v3185_v24  ;;  %v3417_v45 = vmul.f32 %v3302_v46, %v7429_v8 }
 0x712   : > { %v3306_v25 = vmul.f32 0.5, %v3305_v56  ;;  %3641 = vmatmul.bf16.gmra.mxu1 %v3470_v37  ;;  %3860 = vmatpush.bf16.msrb.mxu2 %v5042_v15 }
 0x713   : > { %v3437_v1 = vmul.f32 %v7525_v49, %v3417_v45 }
 0x714   : > { %v3307_v28 = vsub.f32 1.5, %v3306_v25  ;;  %v5038_v25 = vld [vmem:[%s6133_s16] sm:$0xff] }
 0x715   : > { %v7591_v36 = vadd.f32 %v7540_v63, %v3437_v1 }
 0x716   : > { %v3308_v54 = vmul.f32 %v5664_v17, %v3307_v28  ;;  %3861 = vmatpush.bf16.msrb.mxu2 %v5041_v22  ;;  %v5050_v28 = vld [vmem:[%s6133_s16 + $0x60] sm:$0xff] }
 0x718   : > { %v3312_v61 = vsel %vm3311_vm5, %v5664_v17, %v3308_v54  ;;  %v5051_v17 = vld [vmem:[%s6133_s16 + $0x68] sm:$0xff] }
 0x719   : > { %v3418_v2 = vmul.f32 %v3312_v61, %v7439_v41  ;;  %5151 = vmatpush.bf16.msrb.mxu3 %v5051_v17  ;;  %3908 = vmatpush.bf16.msra.mxu0 %v5051_v17 }
 0x71a   : > { %3862 = vmatpush.bf16.msrb.mxu2 %v5040_v6  ;;  %v5046_v6 = vld [vmem:[%s6133_s16 + $0x40] sm:$0xff] }
 0x71b   : > { %v3438_v26 = vmul.f32 %v7525_v49, %v3418_v2 }
 0x71d   : > { %v7594_v55 = vadd.f32 %v7540_v63, %v3438_v26  ;;  %5152 = vmatpush.bf16.msrb.mxu3 %v5050_v28  ;;  %3909 = vmatpush.bf16.msra.mxu0 %v5050_v28 }
 0x71e   : > { %3863 = vmatpush.bf16.msrb.mxu2 %v5039_v43 }
 0x71f   : > { %v3471_v8 = vpack.c.bf16 %v7594_v55, %v7591_v36 }
 0x721   : > { %3597 = vmatmul.bf16.gmra.mxu0 %v3471_v8 }
 0x722   : > { %3646 = vmatmul.bf16.gmra.mxu1 %v3471_v8  ;;  %3864 = vmatpush.bf16.msrb.mxu2 %v5038_v25 }
 0x725   : > { %v3204_v4 = vpop.xlane.xlu1 %3203 }
 0x726   : > { %v3228_v44 = vmul.f32 %v3204_v4, %v7392_v42  ;;  %v5049_v4 = vld [vmem:[%s6133_s16 + $0x58] sm:$0xff] }
 0x727   : > { %5153 = vmatpush.bf16.msrb.mxu3 %v5049_v4  ;;  %3910 = vmatpush.bf16.msra.mxu0 %v5049_v4 }
 0x728   : > { %v3244_v10 = vadd.f32 1e-05, %v3228_v44 }
 0x72a   : > { %5665 = vrsqrt.f32 %v3244_v10  ;;  %vm3329_vm7 = vweird.f32 %v3244_v10 }
 0x72b   : > { %5154 = vmatpush.bf16.msrb.mxu3 %v5048_v31  ;;  %3911 = vmatpush.bf16.msra.mxu0 %v5048_v31 }
 0x72d   : > { %v3206_v41 = vpop.xlane.xlu1 %3205 }
 0x72e   : > { %v3229_v51 = vmul.f32 %v3206_v41, %v7392_v42 }
 0x730   : > { %v5666_v14 = vpop.eup %5665  ;;  %v7610_v53 = vadd.f32 1e-05, %v3229_v51 }
 0x731   : > { %vm3330_vm6 = vweird.f32 %v5666_v14 }
 0x732   : > { %5667 = vrsqrt.f32 %v7610_v53  ;;  %vm3331_vm8 = vmor %vm3329_vm7, %vm3330_vm6  ;;  %vm3339_vm13 = vweird.f32 %v7610_v53 }
 0x735   : > { %v3133_v7 = vpop.xlane.xlu1 %3132 }
 0x736   : > { %v3156_v21 = vmul.f32 %v7392_v42, %v3133_v7 }
 0x738   : > { %v7600_v30 = vsub.f32 %v7467_v18, %v3156_v21  ;;  %v3324_v18 = vmul.f32 %v5666_v14, %v3244_v10  ;;  %v7618_v16 = vpop.eup %5667 }
 0x739   : > { %v3334_v24 = vmul.f32 %v7618_v16, %v7610_v53  ;;  %vm3340_vm12 = vweird.f32 %v7618_v16 }
 0x73a   : > { %v3188_v50 = vmul.f32 %v7600_v30, %v7600_v30  ;;  %v3325_v11 = vmul.f32 %v5666_v14, %v3324_v18  ;;  %vm3341_vm14 = vmor %vm3339_vm13, %vm3340_vm12 }
 0x73b   : > { %v3335_v54 = vmul.f32 %v7618_v16, %v3334_v24 }
 0x73c   : > { %3219 = vadd.xlane.f32.xlu1 %v3188_v50  ;;  %v3326_v27 = vmul.f32 0.5, %v3325_v11  ;;  %v5047_v11 = vld [vmem:[%s6133_s16 + $0x48] sm:$0xff] }
 0x73d   : > { %v3336_v44 = vmul.f32 0.5, %v3335_v54  ;;  %5155 = vmatpush.bf16.msrb.mxu3 %v5047_v11  ;;  %3912 = vmatpush.bf16.msra.mxu0 %v5047_v11 }
 0x73e   : > { %v3327_v62 = vsub.f32 1.5, %v3326_v27 }
 0x740   : > { %v3328_v37 = vmul.f32 %v5666_v14, %v3327_v62 }
 0x741   : > { %5156 = vmatpush.bf16.msrb.mxu3 %v5046_v6  ;;  %3913 = vmatpush.bf16.msra.mxu0 %v5046_v6 }
 0x75c   : > { %v3202_v32 = vpop.xlane.xlu2 %3201 }
 0x75d   : > { %v3227_v57 = vmul.f32 %v3202_v32, %v7392_v42 }
 0x75f   : > { %v3243_v40 = vadd.f32 1e-05, %v3227_v57 }
 0x761   : > { %5669 = vrsqrt.f32 %v3243_v40  ;;  %vm3319_vm10 = vweird.f32 %v3243_v40 }
 0x764   : > { %v3129_v5 = vpop.xlane.xlu2 %3128 }
 0x765   : > { %v3154_v35 = vmul.f32 %v7392_v42, %v3129_v5 }
 0x767   : > { %v5670_v9 = vpop.eup %5669  ;;  %v7624_v38 = vsub.f32 %v7513_v58, %v3154_v35  ;;  %v3332_v58 = vsel %vm3331_vm8, %v5666_v14, %v3328_v37 }
 0x768   : > { %v3314_v56 = vmul.f32 %v5670_v9, %v3243_v40  ;;  %vm3320_vm9 = vweird.f32 %v5670_v9  ;;  %v3420_v7 = vmul.f32 %v3332_v58, %v7454_v60 }
 0x769   : > { %v3186_v46 = vmul.f32 %v7624_v38, %v7624_v38  ;;  %vm3321_vm11 = vmor %vm3319_vm10, %vm3320_vm9 }
 0x76a   : > { %v3315_v45 = vmul.f32 %v5670_v9, %v3314_v56  ;;  %v3440_v60 = vmul.f32 %v7525_v49, %v3420_v7 }
 0x76b   : > { %3215 = vadd.xlane.f32.xlu0 %v3186_v46 }
 0x76c   : > { %v3316_v61 = vmul.f32 0.5, %v3315_v45  ;;  %v3131_v2 = vpop.xlane.xlu2 %3130  ;;  %v3208_v1 = vpop.xlane.xlu0 %3207 }
 0x76d   : > { %v3155_v26 = vmul.f32 %v7392_v42, %v3131_v2  ;;  %v3230_v8 = vmul.f32 %v3208_v1, %v7392_v42 }
 0x76e   : > { %v3317_v41 = vsub.f32 1.5, %v3316_v61 }
 0x76f   : > { %v7638_v21 = vsub.f32 %v7531_v47, %v3155_v26  ;;  %v3246_v50 = vadd.f32 1e-05, %v3230_v8  ;;  %v3337_v47 = vsub.f32 1.5, %v3336_v44 }
 0x770   : > { %v3318_v10 = vmul.f32 %v5670_v9, %v3317_v41 }
 0x771   : > { %5671 = vrsqrt.f32 %v3246_v50  ;;  %v3187_v39 = vmul.f32 %v7638_v21, %v7638_v21  ;;  %v3338_v20 = vmul.f32 %v7618_v16, %v3337_v47  ;;  %vm3349_vm0 = vweird.f32 %v3246_v50 }
 0x772   : > { %v3322_v14 = vsel %vm3321_vm11, %v5670_v9, %v3318_v10  ;;  %v3493_v9 = vld [vmem:[%s6128_s12] sm:$0x3] }
 0x773   : > { %v3419_v59 = vmul.f32 %v3322_v14, %v7506_v34  ;;  %3217 = vadd.xlane.f32.xlu2 %v3187_v39  ;;  %v7654_v34 = vadd.f32 %v7540_v63, %v3440_v60  ;;  %v3342_v62 = vsel %vm3341_vm14, %v7618_v16, %v3338_v20  ;;  %v7668_v16 = vperm.slane %v3493_v9, 0 }
 0x774   : > { %v3210_v51 = vpop.xlane.xlu0 %3209  ;;  %v3421_v56 = vmul.f32 %v3342_v62, %v7462_v19  ;;  %v7670_v54 = vperm.slane %v3493_v9, 1 }
 0x775   : > { %v3231_v18 = vmul.f32 %v3210_v51, %v7392_v42  ;;  %v3439_v15 = vmul.f32 %v7525_v49, %v3419_v59 }
 0x776   : > { %v3441_v2 = vmul.f32 %v7525_v49, %v3421_v56 }
 0x777   : > { %v5672_v32 = vpop.eup %5671  ;;  %v7648_v57 = vadd.f32 1e-05, %v3231_v18  ;;  %v7651_v22 = vadd.f32 %v7540_v63, %v3439_v15 }
 0x778   : > { %v3344_v40 = vmul.f32 %v5672_v32, %v3246_v50  ;;  %vm3350_vm15 = vweird.f32 %v5672_v32  ;;  %v7679_v10 = vadd.f32 %v7540_v63, %v3441_v2 }
 0x779   : > { %5673 = vrsqrt.f32 %v7648_v57  ;;  %v3472_v27 = vpack.c.bf16 %v7654_v34, %v7651_v22  ;;  %vm3351_vm1 = vmor %vm3349_vm0, %vm3350_vm15  ;;  %vm3359_vm3 = vweird.f32 %v7648_v57 }
 0x77a   : > { %v3345_v3 = vmul.f32 %v5672_v32, %v3344_v40 }
 0x77b   : > { %3602 = vmatmul.bf16.gmra.mxu0 %v3472_v27  ;;  %3651 = vmatmul.bf16.gmra.mxu1 %v3472_v27 }
 0x77c   : > { %v3346_v5 = vmul.f32 0.5, %v3345_v3  ;;  %v3212_v35 = vpop.xlane.xlu2 %3211 }
 0x77d   : > { %v3232_v43 = vmul.f32 %v3212_v35, %v7392_v42 }
 0x77e   : > { %v3347_v17 = vsub.f32 1.5, %v3346_v5  ;;  %v3588_v37 = vpop.f32.mrf.mxu0 }
 0x77f   : > { %v5674_v24 = vpop.eup %5673  ;;  %v3248_v53 = vadd.f32 1e-05, %v3232_v43  ;;  %v3637_v46 = vpop.f32.mrf.mxu1  ;;  %v3589_v19 = vadd.f32 %v3588_v37, %v7668_v16 }
 0x780   : > { %v3348_v25 = vmul.f32 %v5672_v32, %v3347_v17  ;;  %v3354_v28 = vmul.f32 %v5674_v24, %v7648_v57  ;;  %v3638_v4 = vadd.f32 %v3637_v46, %v7670_v54  ;;  %vm3360_vm2 = vweird.f32 %v5674_v24 }
 0x781   : > { %5675 = vrsqrt.f32 %v3248_v53  ;;  %v3677_v59 = vmax.f32 %v3589_v19, 0.0  ;;  %vm3361_vm4 = vmor %vm3359_vm3, %vm3360_vm2  ;;  %vm3369_vm6 = vweird.f32 %v3248_v53 }
 0x782   : > { %v3352_v45 = vsel %vm3351_vm1, %v5672_v32, %v3348_v25  ;;  %v3355_v58 = vmul.f32 %v5674_v24, %v3354_v28  ;;  %v3678_v18 = vmax.f32 %v3638_v4, 0.0 }
 0x783   : > { %v3422_v61 = vmul.f32 %v3352_v45, %v7529_v13 }
 0x784   : > { %v3356_v1 = vmul.f32 0.5, %v3355_v58 }
 0x785   : > { %v3442_v26 = vmul.f32 %v7525_v49, %v3422_v61 }
 0x786   : > { %v3357_v8 = vsub.f32 1.5, %v3356_v1  ;;  %v3590_v41 = vpop.f32.mrf.mxu0 }
 0x787   : > { %v5676_v7 = vpop.eup %5675  ;;  %v3591_v50 = vadd.f32 %v3590_v41, %v7668_v16  ;;  %v3639_v44 = vpop.f32.mrf.mxu1  ;;  %v7682_v13 = vadd.f32 %v7540_v63, %v3442_v26 }
 0x788   : > { %v3358_v39 = vmul.f32 %v5674_v24, %v3357_v8  ;;  %v3364_v31 = vmul.f32 %v5676_v7, %v3248_v53  ;;  %v3640_v14 = vadd.f32 %v3639_v44, %v7670_v54  ;;  %vm3370_vm5 = vweird.f32 %v5676_v7 }
 0x789   : > { %v3679_v60 = vmax.f32 %v3591_v50, 0.0  ;;  %v3473_v47 = vpack.c.bf16 %v7682_v13, %v7679_v10  ;;  %vm3371_vm7 = vmor %vm3369_vm6, %vm3370_vm5 }
 0x78a   : > { %v3365_v51 = vmul.f32 %v5676_v7, %v3364_v31  ;;  %v3680_v15 = vmax.f32 %v3640_v14, 0.0  ;;  %v3362_v32 = vsel %vm3361_vm4, %v5674_v24, %v3358_v39 }
 0x78b   : > { %v3709_v11 = vpack.c.bf16 %v3679_v60, %v3677_v59  ;;  %3607 = vmatmul.bf16.gmra.mxu0 %v3473_v47  ;;  %3656 = vmatmul.bf16.gmra.mxu1 %v3473_v47  ;;  %v3423_v3 = vmul.f32 %v3362_v32, %v7555_v23 }
 0x78c   : > { %v3366_v20 = vmul.f32 0.5, %v3365_v51  ;;  %v7688_v40 = vpack.c.bf16 %v3680_v15, %v3678_v18  ;;  %v3214_v51 = vpop.xlane.xlu1 %3213 }
 0x78d   : > { %3865 = vmatmul.bf16.vlgmr.msrb.gmra.mxu2 %v3709_v11  ;;  %v3443_v43 = vmul.f32 %v7525_v49, %v3423_v3  ;;  %v3233_v18 = vmul.f32 %v3214_v51, %v7392_v42 }
 0x78e   : > { %v3367_v27 = vsub.f32 1.5, %v3366_v20  ;;  %v3593_v6 = vpop.f32.mrf.mxu0 }
 0x78f   : > { %v3642_v62 = vpop.f32.mrf.mxu1  ;;  %v3594_v17 = vadd.f32 %v3593_v6, %v7668_v16  ;;  %v7698_v23 = vadd.f32 %v7540_v63, %v3443_v43  ;;  %v3249_v15 = vadd.f32 1e-05, %v3233_v18 }
 0x790   : > { %v3368_v5 = vmul.f32 %v5676_v7, %v3367_v27  ;;  %v3643_v37 = vadd.f32 %v3642_v62, %v7670_v54 }
 0x791   : > { %v3681_v25 = vmax.f32 %v3594_v17, 0.0  ;;  %5677 = vrsqrt.f32 %v3249_v15  ;;  %vm3379_vm9 = vweird.f32 %v3249_v15 }
 0x792   : > { %v3372_v57 = vsel %vm3371_vm7, %v5676_v7, %v3368_v5  ;;  %v3682_v58 = vmax.f32 %v3643_v37, 0.0 }
 0x793   : > { %v3424_v35 = vmul.f32 %v3372_v57, %v7565_v48 }
 0x795   : > { %v3444_v9 = vmul.f32 %v7525_v49, %v3424_v35 }
 0x796   : > { %v3595_v24 = vpop.f32.mrf.mxu0 }
 0x797   : > { %v3596_v56 = vadd.f32 %v3595_v24, %v7668_v16  ;;  %v3644_v46 = vpop.f32.mrf.mxu1  ;;  %v7701_v53 = vadd.f32 %v7540_v63, %v3444_v9  ;;  %v5678_v32 = vpop.eup %5677 }
 0x798   : > { %v3645_v48 = vadd.f32 %v3644_v46, %v7670_v54  ;;  %v3374_v27 = vmul.f32 %v5678_v32, %v3249_v15  ;;  %vm3380_vm8 = vweird.f32 %v5678_v32 }
 0x799   : > { %v3683_v28 = vmax.f32 %v3596_v56, 0.0  ;;  %v3474_v45 = vpack.c.bf16 %v7701_v53, %v7698_v23  ;;  %vm3381_vm10 = vmor %vm3379_vm9, %vm3380_vm8 }
 0x79a   : > { %v3684_v61 = vmax.f32 %v3645_v48, 0.0  ;;  %v3375_v3 = vmul.f32 %v5678_v32, %v3374_v27 }
 0x79b   : > { %v3711_v2 = vpack.c.bf16 %v3683_v28, %v3681_v25  ;;  %3612 = vmatmul.bf16.gmra.mxu0 %v3474_v45  ;;  %3661 = vmatmul.bf16.gmra.mxu1 %v3474_v45 }
 0x79c   : > { %v3712_v1 = vpack.c.bf16 %v3684_v61, %v3682_v58  ;;  %v3376_v35 = vmul.f32 0.5, %v3375_v3 }
 0x79d   : > { %3870 = vmatmul.bf16.gmra.mxu2 %v3711_v2 }
 0x79e   : > { %3919 = vmatmul.bf16.vlgmr.msrb.gmra.mxu3 %v3712_v1  ;;  %v3598_v19 = vpop.f32.mrf.mxu0  ;;  %v3377_v43 = vsub.f32 1.5, %v3376_v35 }
 0x79f   : > { %v3647_v26 = vpop.f32.mrf.mxu1  ;;  %v3599_v8 = vadd.f32 %v3598_v19, %v7668_v16 }
 0x7a0   : > { %v3648_v4 = vadd.f32 %v3647_v26, %v7670_v54  ;;  %v3378_v46 = vmul.f32 %v5678_v32, %v3377_v43 }
 0x7a1   : > { %v3685_v39 = vmax.f32 %v3599_v8, 0.0 }
 0x7a2   : > { %v3686_v14 = vmax.f32 %v3648_v4, 0.0  ;;  %v3382_v45 = vsel %vm3381_vm10, %v5678_v32, %v3378_v46 }
 0x7a3   : > { %v3425_v19 = vmul.f32 %v3382_v45, %v7574_v0 }
 0x7a6   : > { %v3600_v41 = vpop.f32.mrf.mxu0 }
 0x7a7   : > { %v3601_v7 = vadd.f32 %v3600_v41, %v7668_v16  ;;  %v3649_v50 = vpop.f32.mrf.mxu1 }
 0x7a8   : > { %v3650_v44 = vadd.f32 %v3649_v50, %v7670_v54 }
 0x7a9   : > { %v3687_v31 = vmax.f32 %v3601_v7, 0.0 }
 0x7aa   : > { %v3688_v59 = vmax.f32 %v3650_v44, 0.0  ;;  %v3445_v44 = vmul.f32 %v7525_v49, %v3425_v19 }
 0x7ab   : > { %v3713_v60 = vpack.c.bf16 %v3687_v31, %v3685_v39 }
 0x7ac   : > { %v3714_v47 = vpack.c.bf16 %v3688_v59, %v3686_v14  ;;  %v7719_v0 = vadd.f32 %v7540_v63, %v3445_v44 }
 0x7ad   : > { %3875 = vmatmul.bf16.gmra.mxu2 %v3713_v60 }
 0x7ae   : > { %3924 = vmatmul.bf16.gmra.mxu3 %v3714_v47 }
 0x7af   : > { %v3220_v11 = vpop.xlane.xlu1 %3219 }
 0x7b0   : > { %v3236_v20 = vmul.f32 %v3220_v11, %v7392_v42 }
 0x7b2   : > { %v3252_v6 = vadd.f32 1e-05, %v3236_v20 }
 0x7b4   : > { %5679 = vrsqrt.f32 %v3252_v6  ;;  %vm3409_vm2 = vweird.f32 %v3252_v6 }
 0x7ba   : > { %v5680_v9 = vpop.eup %5679 }
 0x7bb   : > { %v3404_v48 = vmul.f32 %v5680_v9, %v3252_v6  ;;  %vm3410_vm15 = vweird.f32 %v5680_v9 }
 0x7bc   : > { %vm3411_vm3 = vmor %vm3409_vm2, %vm3410_vm15 }
 0x7bd   : > { %v3405_v58 = vmul.f32 %v5680_v9, %v3404_v48 }
 0x7bf   : > { %v3406_v26 = vmul.f32 0.5, %v3405_v58 }
 0x7c1   : > { %v3407_v39 = vsub.f32 1.5, %v3406_v26 }
 0x7c3   : > { %v3408_v18 = vmul.f32 %v5680_v9, %v3407_v39 }
 0x7c5   : > { %v3412_v32 = vsel %vm3411_vm3, %v5680_v9, %v3408_v18 }
 0x7de   : > { %v3216_v62 = vpop.xlane.xlu0 %3215 }
 0x7df   : > { %v3234_v5 = vmul.f32 %v3216_v62, %v7392_v42 }
 0x7e1   : > { %v3250_v57 = vadd.f32 1e-05, %v3234_v5 }
 0x7e3   : > { %5681 = vrsqrt.f32 %v3250_v57  ;;  %vm3389_vm12 = vweird.f32 %v3250_v57 }
 0x7e6   : > { %v3218_v17 = vpop.xlane.xlu2 %3217 }
 0x7e7   : > { %v3235_v37 = vmul.f32 %v3218_v17, %v7392_v42 }
 0x7e9   : > { %v5682_v24 = vpop.eup %5681  ;;  %v3251_v56 = vadd.f32 1e-05, %v3235_v37 }
 0x7ea   : > { %v3384_v25 = vmul.f32 %v5682_v24, %v3250_v57  ;;  %vm3390_vm11 = vweird.f32 %v5682_v24  ;;  %v3428_v57 = vmul.f32 %v3412_v32, %v7600_v30 }
 0x7eb   : > { %5683 = vrsqrt.f32 %v3251_v56  ;;  %vm3391_vm13 = vmor %vm3389_vm12, %vm3390_vm11  ;;  %vm3399_vm0 = vweird.f32 %v3251_v56 }
 0x7ec   : > { %v3385_v28 = vmul.f32 %v5682_v24, %v3384_v25 }
 0x7ee   : > { %v3386_v61 = vmul.f32 0.5, %v3385_v28 }
 0x7f0   : > { %v3387_v2 = vsub.f32 1.5, %v3386_v61 }
 0x7f1   : > { %v5684_v1 = vpop.eup %5683 }
 0x7f2   : > { %v3388_v8 = vmul.f32 %v5682_v24, %v3387_v2  ;;  %v3394_v4 = vmul.f32 %v5684_v1, %v3251_v56  ;;  %vm3400_vm14 = vweird.f32 %v5684_v1 }
 0x7f3   : > { %vm3401_vm1 = vmor %vm3399_vm0, %vm3400_vm14 }
 0x7f4   : > { %v3392_v41 = vsel %vm3391_vm13, %v5682_v24, %v3388_v8  ;;  %v3395_v7 = vmul.f32 %v5684_v1, %v3394_v4 }
 0x7f5   : > { %v3426_v50 = vmul.f32 %v3392_v41, %v7624_v38 }
 0x7f6   : > { %v3396_v31 = vmul.f32 0.5, %v3395_v7 }
 0x7f7   : > { %v3446_v14 = vmul.f32 %v7525_v49, %v3426_v50 }
 0x7f8   : > { %v3397_v59 = vsub.f32 1.5, %v3396_v31  ;;  %v3603_v60 = vpop.f32.mrf.mxu0  ;;  %v3652_v47 = vpop.f32.mrf.mxu1 }
 0x7f9   : > { %v7722_v51 = vadd.f32 %v7540_v63, %v3446_v14  ;;  %v3604_v20 = vadd.f32 %v3603_v60, %v7668_v16  ;;  %v3653_v3 = vadd.f32 %v3652_v47, %v7670_v54  ;;  %v7758_v60 = vld [vmem:[%s664_s28] ss:$0 sm:$0xff] }
 0x7fa   : > { %v3398_v15 = vmul.f32 %v5684_v1, %v3397_v59 }
 0x7fb   : > { %v3475_v38 = vpack.c.bf16 %v7722_v51, %v7719_v0  ;;  %v3689_v6 = vmax.f32 %v3604_v20, 0.0  ;;  %v3690_v17 = vmax.f32 %v3653_v3, 0.0 }
 0x7fc   : > { %v3402_v11 = vsel %vm3401_vm1, %v5684_v1, %v3398_v15 }
 0x7fd   : > { %3617 = vmatmul.bf16.gmra.mxu0 %v3475_v38  ;;  %3666 = vmatmul.bf16.gmra.mxu1 %v3475_v38  ;;  %v3427_v27 = vmul.f32 %v3402_v11, %v7638_v21  ;;  %v3448_v21 = vmul.f32 %v7525_v49, %v3428_v57 }
 0x7ff   : > { %v3447_v9 = vmul.f32 %v7525_v49, %v3427_v27  ;;  %v7738_v28 = vadd.f32 %v7540_v63, %v3448_v21 }
 0x800   : > { %v3605_v62 = vpop.f32.mrf.mxu0  ;;  %v3654_v5 = vpop.f32.mrf.mxu1 }
 0x801   : > { %v3606_v35 = vadd.f32 %v3605_v62, %v7668_v16  ;;  %v3655_v43 = vadd.f32 %v3654_v5, %v7670_v54  ;;  %v7735_v48 = vadd.f32 %v7540_v63, %v3447_v9 }
 0x803   : > { %v3691_v37 = vmax.f32 %v3606_v35, 0.0  ;;  %v3692_v24 = vmax.f32 %v3655_v43, 0.0  ;;  %v3476_v45 = vpack.c.bf16 %v7738_v28, %v7735_v48 }
 0x805   : > { %v3715_v56 = vpack.c.bf16 %v3691_v37, %v3689_v6  ;;  %v3716_v46 = vpack.c.bf16 %v3692_v24, %v3690_v17 }
 0x807   : > { %3880 = vmatmul.bf16.gmra.mxu2 %v3715_v56  ;;  %3929 = vmatmul.bf16.gmra.mxu3 %v3716_v46 }
 0x808   : > { %v3608_v30 = vpop.f32.mrf.mxu0  ;;  %v3657_v25 = vpop.f32.mrf.mxu1 }
 0x809   : > { %v3609_v58 = vadd.f32 %v3608_v30, %v7668_v16  ;;  %v3658_v61 = vadd.f32 %v3657_v25, %v7670_v54 }
 0x80b   : > { %v3693_v63 = vmax.f32 %v3609_v58, 0.0  ;;  %v3694_v8 = vmax.f32 %v3658_v61, 0.0 }
 0x80d   : > { %3622 = vmatmul.bf16.gmra.mxu0 %v3476_v45  ;;  %3671 = vmatmul.bf16.gmra.mxu1 %v3476_v45 }
 0x810   : > { %v3610_v49 = vpop.f32.mrf.mxu0  ;;  %v3659_v2 = vpop.f32.mrf.mxu1 }
 0x811   : > { %v3611_v1 = vadd.f32 %v3610_v49, %v7668_v16  ;;  %v3660_v19 = vadd.f32 %v3659_v2, %v7670_v54  ;;  %v7746_v26 = vpop.f32.mrf.mxu2 }
 0x813   : > { %v3695_v4 = vmax.f32 %v3611_v1, 0.0  ;;  %v3696_v41 = vmax.f32 %v3660_v19, 0.0 }
 0x815   : > { %v3717_v7 = vpack.c.bf16 %v3695_v4, %v3693_v63  ;;  %v3718_v50 = vpack.c.bf16 %v3696_v41, %v3694_v8 }
 0x817   : > { %3885 = vmatmul.bf16.gmra.mxu2 %v3717_v7  ;;  %3934 = vmatmul.bf16.gmra.mxu3 %v3718_v50 }
 0x818   : > { %v3613_v44 = vpop.f32.mrf.mxu0  ;;  %v3662_v39 = vpop.f32.mrf.mxu1 }
 0x819   : > { %v7748_v31 = vpop.f32.mrf.mxu2  ;;  %v3614_v14 = vadd.f32 %v3613_v44, %v7668_v16  ;;  %v3663_v59 = vadd.f32 %v3662_v39, %v7670_v54 }
 0x81b   : > { %v3697_v20 = vmax.f32 %v3614_v14, 0.0  ;;  %v3698_v27 = vmax.f32 %v3663_v59, 0.0 }
 0x81d   : > { %3914 = vmatmul.bf16.vlgmr.msra.gmra.mxu0 %v7688_v40 }
 0x820   : > { %v3615_v47 = vpop.f32.mrf.mxu0  ;;  %v3664_v18 = vpop.f32.mrf.mxu1 }
 0x821   : > { %v3616_v15 = vadd.f32 %v3615_v47, %v7668_v16  ;;  %v3665_v38 = vadd.f32 %v3664_v18, %v7670_v54  ;;  %v3871_v11 = vpop.f32.mrf.mxu2  ;;  %v3920_v32 = vpop.f32.mrf.mxu3 }
 0x822   : > { %v3872_v40 = vadd.f32 %v7758_v60, %v3871_v11 }
 0x823   : > { %v3699_v3 = vmax.f32 %v3616_v15, 0.0  ;;  %v3700_v62 = vmax.f32 %v3665_v38, 0.0 }
 0x824   : > { %v3921_v5 = vadd.f32 %v3920_v32, %v3872_v40 }
 0x825   : > { %v3719_v57 = vpack.c.bf16 %v3699_v3, %v3697_v20  ;;  %v3720_v35 = vpack.c.bf16 %v3700_v62, %v3698_v27 }
 0x826   : > { %v7764_v43 = vadd.f32 %v3921_v5, %v7577_v12 }
 0x827   : > { %3890 = vmatmul.bf16.gmra.mxu2 %v3719_v57  ;;  %3939 = vmatmul.bf16.gmra.mxu3 %v3720_v35 }
 0x828   : > { %3975 = vadd.xlane.f32.xlu1 %v7764_v43 }
 0x829   : > { %v3873_v6 = vpop.f32.mrf.mxu2  ;;  %v3922_v17 = vpop.f32.mrf.mxu3 }
 0x82a   : > { %v3874_v37 = vadd.f32 %v7758_v60, %v3873_v6 }
 0x82c   : > { %v7768_v24 = vadd.f32 %v3922_v17, %v3874_v37  ;;  %v3867_v37 = vadd.f32 %v7758_v60, %v7746_v26 }
 0x831   : > { %v3876_v9 = vpop.f32.mrf.mxu2  ;;  %v3925_v56 = vpop.f32.mrf.mxu3 }
 0x832   : > { %v3877_v46 = vadd.f32 %v7758_v60, %v3876_v9 }
 0x834   : > { %v7771_v21 = vadd.f32 %v3925_v56, %v3877_v46 }
 0x839   : > { %v3878_v30 = vpop.f32.mrf.mxu2  ;;  %v3927_v25 = vpop.f32.mrf.mxu3 }
 0x83a   : > { %v3879_v12 = vadd.f32 %v7758_v60, %v3878_v30 }
 0x83c   : > { %v3928_v45 = vadd.f32 %v3927_v25, %v3879_v12 }
 0x83e   : > { %v7775_v58 = vadd.f32 %v3928_v45, %v7594_v55  ;;  %v3869_v45 = vadd.f32 %v7758_v60, %v7748_v31  ;;  %v7802_v31 = vadd.f32 %v7771_v21, %v7591_v36 }
 0x840   : > { %3981 = vadd.xlane.f32.xlu1 %v7775_v58 }
 0x87a   : > { %v3618_v61 = vpop.f32.mrf.mxu0  ;;  %v3667_v49 = vpop.f32.mrf.mxu1 }
 0x87b   : > { %v3619_v2 = vadd.f32 %v3618_v61, %v7668_v16  ;;  %v3668_v1 = vadd.f32 %v3667_v49, %v7670_v54 }
 0x87d   : > { %v3701_v41 = vmax.f32 %v3619_v2, 0.0  ;;  %v3702_v7 = vmax.f32 %v3668_v1, 0.0  ;;  %v3958_v1 = vadd.f32 %v7768_v24, %v7580_v33 }
 0x882   : > { %v3620_v19 = vpop.f32.mrf.mxu0  ;;  %v3669_v63 = vpop.f32.mrf.mxu1 }
 0x883   : > { %v3621_v8 = vadd.f32 %v3620_v19, %v7668_v16  ;;  %v3670_v4 = vadd.f32 %v3669_v63, %v7670_v54 }
 0x885   : > { %v3703_v50 = vmax.f32 %v3621_v8, 0.0  ;;  %v3704_v44 = vmax.f32 %v3670_v4, 0.0 }
 0x887   : > { %v3721_v55 = vpack.c.bf16 %v3703_v50, %v3701_v41  ;;  %v3722_v39 = vpack.c.bf16 %v3704_v44, %v3702_v7 }
 0x889   : > { %3895 = vmatmul.bf16.gmra.mxu2 %v3721_v55  ;;  %3944 = vmatmul.bf16.gmra.mxu3 %v3722_v39 }
 0x88a   : > { %v3623_v14 = vpop.f32.mrf.mxu0  ;;  %v3672_v59 = vpop.f32.mrf.mxu1 }
 0x88b   : > { %v3881_v47 = vpop.f32.mrf.mxu2  ;;  %v3930_v18 = vpop.f32.mrf.mxu3  ;;  %v3624_v15 = vadd.f32 %v3623_v14, %v7668_v16  ;;  %v3673_v38 = vadd.f32 %v3672_v59, %v7670_v54 }
 0x88c   : > { %v3882_v19 = vadd.f32 %v7758_v60, %v3881_v47 }
 0x88d   : > { %v3705_v62 = vmax.f32 %v3624_v15, 0.0  ;;  %v3706_v5 = vmax.f32 %v3673_v38, 0.0 }
 0x892   : > { %v3625_v11 = vpop.f32.mrf.mxu0  ;;  %v3674_v32 = vpop.f32.mrf.mxu1 }
 0x893   : > { %v3626_v40 = vadd.f32 %v3625_v11, %v7668_v16  ;;  %v3675_v20 = vadd.f32 %v3674_v32, %v7670_v54  ;;  %v3883_v27 = vpop.f32.mrf.mxu2  ;;  %v3932_v3 = vpop.f32.mrf.mxu3 }
 0x894   : > { %v3884_v41 = vadd.f32 %v7758_v60, %v3883_v27 }
 0x895   : > { %v3707_v57 = vmax.f32 %v3626_v40, 0.0  ;;  %v3708_v35 = vmax.f32 %v3675_v20, 0.0 }
 0x897   : > { %v3723_v6 = vpack.c.bf16 %v3707_v57, %v3705_v62  ;;  %v3724_v17 = vpack.c.bf16 %v3708_v35, %v3706_v5 }
 0x899   : > { %3900 = vmatmul.bf16.gmra.mxu2 %v3723_v6  ;;  %3949 = vmatmul.bf16.gmra.mxu3 %v3724_v17 }
 0x89a   : > { %v3915_v9 = vpop.f32.mrf.mxu0 }
 0x89b   : > { %v3886_v56 = vpop.f32.mrf.mxu2  ;;  %v3916_v46 = vadd.f32 %v3915_v9, %v3867_v37  ;;  %v3935_v30 = vpop.f32.mrf.mxu3 }
 0x89c   : > { %v3887_v16 = vadd.f32 %v7758_v60, %v3886_v56 }
 0x89d   : > { %v3955_v54 = vadd.f32 %v3916_v46, %v7549_v29 }
 0x89e   : > { %v3936_v12 = vadd.f32 %v3935_v30, %v3887_v16 }
 0x89f   : > { %3971 = vadd.xlane.f32.xlu0 %v3955_v54 }
 0x8a0   : > { %v7791_v25 = vadd.f32 %v3936_v12, %v7679_v10  ;;  %v3931_v10 = vadd.f32 %v3930_v18, %v3882_v19 }
 0x8a2   : > { %3987 = vadd.xlane.f32.xlu1 %v7791_v25  ;;  %v3917_v26 = vpop.f32.mrf.mxu0  ;;  %v7805_v4 = vadd.f32 %v3931_v10, %v7651_v22 }
 0x8a3   : > { %v3888_v61 = vpop.f32.mrf.mxu2  ;;  %v3918_v49 = vadd.f32 %v3917_v26, %v3869_v45  ;;  %v3937_v2 = vpop.f32.mrf.mxu3 }
 0x8a4   : > { %v3889_v33 = vadd.f32 %v7758_v60, %v3888_v61  ;;  %v3976_v45 = vpop.xlane.xlu1 %3975 }
 0x8a5   : > { %v3956_v29 = vadd.f32 %v3918_v49, %v7552_v52  ;;  %v3933_v52 = vadd.f32 %v3932_v3, %v3884_v41 }
 0x8a6   : > { %v3938_v24 = vadd.f32 %v3937_v2, %v3889_v33 }
 0x8a7   : > { %3973 = vadd.xlane.f32.xlu2 %v3956_v29  ;;  %3977 = vadd.xlane.f32.xlu0 %v3958_v1  ;;  %v7813_v44 = vadd.f32 %v3933_v52, %v7654_v34 }
 0x8a8   : > { %v7816_v36 = vadd.f32 %v3938_v24, %v7682_v13 }
 0x8ab   : > { %v3891_v63 = vpop.f32.mrf.mxu2  ;;  %v3940_v8 = vpop.f32.mrf.mxu3 }
 0x8ac   : > { %v3892_v22 = vadd.f32 %v7758_v60, %v3891_v63 }
 0x8ae   : > { %v3941_v14 = vadd.f32 %v3940_v8, %v3892_v22 }
 0x8af   : > { %3979 = vadd.xlane.f32.xlu2 %v7802_v31  ;;  %3983 = vadd.xlane.f32.xlu0 %v7805_v4 }
 0x8b0   : > { %v7826_v34 = vadd.f32 %v3941_v14, %v7698_v23 }
 0x8b3   : > { %v3893_v7 = vpop.f32.mrf.mxu2  ;;  %v3942_v21 = vpop.f32.mrf.mxu3 }
 0x8b4   : > { %v3894_v50 = vadd.f32 %v7758_v60, %v3893_v7  ;;  %v3982_v8 = vpop.xlane.xlu1 %3981 }
 0x8b6   : > { %v3943_v55 = vadd.f32 %v3942_v21, %v3894_v50 }
 0x8b7   : > { %3985 = vadd.xlane.f32.xlu2 %v7813_v44  ;;  %3989 = vadd.xlane.f32.xlu0 %v7816_v36 }
 0x8b8   : > { %v7822_v39 = vadd.f32 %v3943_v55, %v7701_v53 }
 0x8ba   : > { %3993 = vadd.xlane.f32.xlu1 %v7822_v39 }
 0x8bf   : > { %3991 = vadd.xlane.f32.xlu2 %v7826_v34 }
 0x90c   : > { %v3896_v13 = vpop.f32.mrf.mxu2  ;;  %v3945_v59 = vpop.f32.mrf.mxu3 }
 0x90d   : > { %v3897_v47 = vadd.f32 %v7758_v60, %v3896_v13 }
 0x90f   : > { %v3946_v18 = vadd.f32 %v3945_v59, %v3897_v47 }
 0x911   : > { %v7831_v15 = vadd.f32 %v3946_v18, %v7719_v0 }
 0x912   : > { %v3972_v38 = vpop.xlane.xlu0 %3971 }
 0x913   : > { %3995 = vadd.xlane.f32.xlu0 %v7831_v15  ;;  %v4003_v23 = vmul.f32 %v3972_v38, %v7392_v42 }
 0x914   : > { %v3898_v53 = vpop.f32.mrf.mxu2  ;;  %v3947_v11 = vpop.f32.mrf.mxu3 }
 0x915   : > { %v3899_v32 = vadd.f32 %v7758_v60, %v3898_v53  ;;  %v7840_v5 = vsub.f32 %v3955_v54, %v4003_v23  ;;  %v3988_v21 = vpop.xlane.xlu1 %3987 }
 0x916   : > { %v4011_v59 = vmul.f32 %v3988_v21, %v7392_v42 }
 0x917   : > { %v3948_v40 = vadd.f32 %v3947_v11, %v3899_v32 }
 0x919   : > { %v7837_v20 = vadd.f32 %v3948_v40, %v7722_v51  ;;  %v4035_v51 = vmul.f32 %v7840_v5, %v7840_v5 }
 0x91a   : > { %v3974_v27 = vpop.xlane.xlu2 %3973  ;;  %v3978_v3 = vpop.xlane.xlu0 %3977 }
 0x91b   : > { %3997 = vadd.xlane.f32.xlu2 %v7837_v20  ;;  %v4004_v6 = vmul.f32 %v3974_v27, %v7392_v42  ;;  %v4006_v17 = vmul.f32 %v3978_v3, %v7392_v42 }
 0x91c   : > { %v3901_v62 = vpop.f32.mrf.mxu2  ;;  %v3950_v0 = vpop.f32.mrf.mxu3 }
 0x91d   : > { %v3902_v57 = vadd.f32 %v7758_v60, %v3901_v62  ;;  %v7851_v56 = vsub.f32 %v3956_v29, %v4004_v6  ;;  %v7853_v30 = vsub.f32 %v3958_v1, %v4006_v17  ;;  %v4005_v1 = vmul.f32 %v3976_v45, %v7392_v42 }
 0x91f   : > { %v3951_v35 = vadd.f32 %v3950_v0, %v3902_v57  ;;  %v4038_v19 = vmul.f32 %v7853_v30, %v7853_v30  ;;  %v7874_v63 = vsub.f32 %v7764_v43, %v4005_v1 }
 0x921   : > { %v7846_v37 = vadd.f32 %v3951_v35, %v7735_v48  ;;  %v4036_v48 = vmul.f32 %v7851_v56, %v7851_v56 }
 0x922   : > { %v3980_v9 = vpop.xlane.xlu2 %3979  ;;  %v3984_v46 = vpop.xlane.xlu0 %3983 }
 0x923   : > { %3999 = vadd.xlane.f32.xlu1 %v7846_v37  ;;  %4051 = vadd.xlane.f32.xlu2 %v4035_v51  ;;  %v4007_v61 = vmul.f32 %v3980_v9, %v7392_v42  ;;  %v4009_v49 = vmul.f32 %v3984_v46, %v7392_v42 }
 0x924   : > { %v3903_v16 = vpop.f32.mrf.mxu2  ;;  %v3952_v12 = vpop.f32.mrf.mxu3 }
 0x925   : > { %v3904_v54 = vadd.f32 %v7758_v60, %v3903_v16  ;;  %v7868_v29 = vsub.f32 %v7802_v31, %v4007_v61  ;;  %v7871_v10 = vsub.f32 %v7805_v4, %v4009_v49  ;;  %v4008_v31 = vmul.f32 %v3982_v8, %v7392_v42 }
 0x926   : > { %v4037_v4 = vmul.f32 %v7874_v63, %v7874_v63 }
 0x927   : > { %v3953_v26 = vadd.f32 %v3952_v12, %v3904_v54  ;;  %v4039_v52 = vmul.f32 %v7868_v29, %v7868_v29  ;;  %v4041_v24 = vmul.f32 %v7871_v10, %v7871_v10  ;;  %v7892_v50 = vsub.f32 %v7775_v58, %v4008_v31 }
 0x929   : > { %v7861_v2 = vadd.f32 %v3953_v26, %v7738_v28 }
 0x92a   : > { %v3986_v60 = vpop.xlane.xlu2 %3985  ;;  %v3990_v28 = vpop.xlane.xlu0 %3989 }
 0x92b   : > { %4053 = vadd.xlane.f32.xlu1 %v4036_v48  ;;  %4057 = vadd.xlane.f32.xlu2 %v4038_v19  ;;  %v4010_v41 = vmul.f32 %v3986_v60, %v7392_v42  ;;  %v4012_v33 = vmul.f32 %v3990_v28, %v7392_v42 }
 0x92c   : > { %4001 = vadd.xlane.f32.xlu0 %v7861_v2 }
 0x92d   : > { %v7886_v43 = vsub.f32 %v7813_v44, %v4010_v41  ;;  %v7889_v7 = vsub.f32 %v7816_v36, %v4012_v33  ;;  %v4040_v44 = vmul.f32 %v7892_v50, %v7892_v50  ;;  %v7906_v36 = vsub.f32 %v7791_v25, %v4011_v59  ;;  %v3994_v47 = vpop.xlane.xlu1 %3993 }
 0x92e   : > { %v4014_v38 = vmul.f32 %v3994_v47, %v7392_v42 }
 0x92f   : > { %v4042_v14 = vmul.f32 %v7886_v43, %v7886_v43  ;;  %v4044_v13 = vmul.f32 %v7889_v7, %v7889_v7  ;;  %v4043_v53 = vmul.f32 %v7906_v36, %v7906_v36 }
 0x930   : > { %v7914_v11 = vsub.f32 %v7822_v39, %v4014_v38 }
 0x932   : > { %v3992_v22 = vpop.xlane.xlu2 %3991 }
 0x933   : > { %4059 = vadd.xlane.f32.xlu1 %v4039_v52  ;;  %4063 = vadd.xlane.f32.xlu2 %v4041_v24  ;;  %v4013_v55 = vmul.f32 %v3992_v22, %v7392_v42 }
 0x934   : > { %4055 = vadd.xlane.f32.xlu0 %v4037_v4 }
 0x935   : > { %v7903_v58 = vsub.f32 %v7826_v34, %v4013_v55  ;;  %v4046_v34 = vmul.f32 %v7914_v11, %v7914_v11 }
 0x937   : > { %v4045_v18 = vmul.f32 %v7903_v58, %v7903_v58 }
 0x93b   : > { %4065 = vadd.xlane.f32.xlu1 %v4042_v14  ;;  %4069 = vadd.xlane.f32.xlu2 %v4044_v13  ;;  %v7962_v13 = vld [vmem:[%s667_s26] ss:$0 sm:$0xff] }
 0x93c   : > { %4061 = vadd.xlane.f32.xlu0 %v4040_v44 }
 0x943   : > { %4071 = vadd.xlane.f32.xlu1 %v4045_v18  ;;  %v7972_v18 = vld [vmem:[%s670_s5] ss:$0 sm:$0xff] }
 0x944   : > { %4067 = vadd.xlane.f32.xlu0 %v4043_v53 }
 0x94c   : > { %4073 = vadd.xlane.f32.xlu0 %v4046_v34 }
 0x986   : > { %v3996_v25 = vpop.xlane.xlu0 %3995 }
 0x987   : > { %v4015_v32 = vmul.f32 %v3996_v25, %v7392_v42 }
 0x989   : > { %v7920_v40 = vsub.f32 %v7831_v15, %v4015_v32 }
 0x98b   : > { %v4047_v23 = vmul.f32 %v7920_v40, %v7920_v40 }
 0x98d   : > { %4075 = vadd.xlane.f32.xlu2 %v4047_v23 }
 0x98e   : > { %v3998_v27 = vpop.xlane.xlu2 %3997 }
 0x98f   : > { %v4016_v3 = vmul.f32 %v3998_v27, %v7392_v42 }
 0x991   : > { %v7926_v39 = vsub.f32 %v7837_v20, %v4016_v3 }
 0x993   : > { %v4048_v62 = vmul.f32 %v7926_v39, %v7926_v39 }
 0x995   : > { %4077 = vadd.xlane.f32.xlu1 %v4048_v62 }
 0x996   : > { %v4000_v0 = vpop.xlane.xlu1 %3999  ;;  %v4052_v57 = vpop.xlane.xlu2 %4051 }
 0x997   : > { %v4017_v35 = vmul.f32 %v4000_v0, %v7392_v42  ;;  %v4083_v15 = vmul.f32 %v4052_v57, %v7392_v42 }
 0x999   : > { %v7933_v6 = vsub.f32 %v7846_v37, %v4017_v35  ;;  %v4099_v17 = vadd.f32 1e-05, %v4083_v15 }
 0x99b   : > { %5685 = vrsqrt.f32 %v4099_v17  ;;  %v4049_v51 = vmul.f32 %v7933_v6, %v7933_v6  ;;  %vm4121_vm5 = vweird.f32 %v4099_v17 }
 0x99d   : > { %4079 = vadd.xlane.f32.xlu0 %v4049_v51 }
 0x99e   : > { %v4054_v20 = vpop.xlane.xlu1 %4053  ;;  %v4058_v9 = vpop.xlane.xlu2 %4057 }
 0x99f   : > { %v4084_v46 = vmul.f32 %v4054_v20, %v7392_v42  ;;  %v4086_v16 = vmul.f32 %v4058_v9, %v7392_v42  ;;  %v4002_v54 = vpop.xlane.xlu0 %4001 }
 0x9a0   : > { %v4018_v12 = vmul.f32 %v4002_v54, %v7392_v42 }
 0x9a1   : > { %v5686_v45 = vpop.eup %5685  ;;  %v4100_v26 = vadd.f32 1e-05, %v4084_v46  ;;  %v7940_v48 = vadd.f32 1e-05, %v4086_v16 }
 0x9a2   : > { %v4116_v37 = vmul.f32 %v5686_v45, %v4099_v17  ;;  %v7943_v61 = vsub.f32 %v7861_v2, %v4018_v12  ;;  %vm4122_vm4 = vweird.f32 %v5686_v45 }
 0x9a3   : > { %5687 = vrsqrt.f32 %v4100_v26  ;;  %vm4123_vm6 = vmor %vm4121_vm5, %vm4122_vm4  ;;  %vm4131_vm7 = vweird.f32 %v4100_v26  ;;  %vm4151_vm10 = vweird.f32 %v7940_v48 }
 0x9a4   : > { %v4117_v49 = vmul.f32 %v5686_v45, %v4116_v37  ;;  %5689 = vrsqrt.f32 %v7940_v48  ;;  %v4050_v19 = vmul.f32 %v7943_v61, %v7943_v61 }
 0x9a6   : > { %v4118_v1 = vmul.f32 0.5, %v4117_v49  ;;  %4081 = vadd.xlane.f32.xlu2 %v4050_v19  ;;  %v4060_v60 = vpop.xlane.xlu1 %4059  ;;  %v4064_v28 = vpop.xlane.xlu2 %4063 }
 0x9a7   : > { %v4087_v8 = vmul.f32 %v4060_v60, %v7392_v42  ;;  %v4089_v41 = vmul.f32 %v4064_v28, %v7392_v42  ;;  %v4056_v33 = vpop.xlane.xlu0 %4055 }
 0x9a8   : > { %v4119_v52 = vsub.f32 1.5, %v4118_v1  ;;  %v4085_v2 = vmul.f32 %v4056_v33, %v7392_v42 }
 0x9a9   : > { %v5688_v24 = vpop.eup %5687  ;;  %v7951_v31 = vadd.f32 1e-05, %v4087_v8  ;;  %v7953_v4 = vadd.f32 1e-05, %v4089_v41 }
 0x9aa   : > { %v5690_v22 = vpop.eup %5689  ;;  %v4120_v21 = vmul.f32 %v5686_v45, %v4119_v52  ;;  %v4126_v55 = vmul.f32 %v5688_v24, %v4100_v26  ;;  %v7955_v14 = vadd.f32 1e-05, %v4085_v2  ;;  %vm4132_vm8 = vweird.f32 %v5688_v24 }
 0x9ab   : > { %v4146_v59 = vmul.f32 %v5690_v22, %v7940_v48  ;;  %5691 = vrsqrt.f32 %v7951_v31  ;;  %vm4152_vm9 = vweird.f32 %v5690_v22  ;;  %vm4133_vm11 = vmor %vm4131_vm7, %vm4132_vm8  ;;  %vm4161_vm13 = vweird.f32 %v7951_v31 }
 0x9ac   : > { %v4124_v44 = vsel %vm4123_vm6, %v5686_v45, %v4120_v21  ;;  %v4127_v47 = vmul.f32 %v5688_v24, %v4126_v55  ;;  %5693 = vrsqrt.f32 %v7953_v4  ;;  %vm4153_vm12 = vmor %vm4151_vm10, %vm4152_vm9  ;;  %vm4181_vm2 = vweird.f32 %v7953_v4 }
 0x9ad   : > { %v4275_v38 = vmul.f32 %v4124_v44, %v7840_v5  ;;  %v4147_v53 = vmul.f32 %v5690_v22, %v4146_v59  ;;  %5695 = vrsqrt.f32 %v7955_v14  ;;  %vm4141_vm3 = vweird.f32 %v7955_v14 }
 0x9ae   : > { %v4128_v34 = vmul.f32 0.5, %v4127_v47  ;;  %v4066_v25 = vpop.xlane.xlu1 %4065  ;;  %v4070_v32 = vpop.xlane.xlu2 %4069 }
 0x9af   : > { %v4295_v23 = vmul.f32 %v7962_v13, %v4275_v38  ;;  %v4148_v27 = vmul.f32 0.5, %v4147_v53  ;;  %v4090_v3 = vmul.f32 %v4066_v25, %v7392_v42  ;;  %v4092_v62 = vmul.f32 %v4070_v32, %v7392_v42  ;;  %v4062_v0 = vpop.xlane.xlu0 %4061 }
 0x9b0   : > { %v4129_v57 = vsub.f32 1.5, %v4128_v34  ;;  %v4088_v35 = vmul.f32 %v4062_v0, %v7392_v42 }
 0x9b1   : > { %v7980_v5 = vpop.eup %5691  ;;  %v7983_v15 = vadd.f32 %v7972_v18, %v4295_v23  ;;  %v4149_v17 = vsub.f32 1.5, %v4148_v27  ;;  %v7985_v51 = vadd.f32 1e-05, %v4090_v3  ;;  %v7992_v16 = vadd.f32 1e-05, %v4092_v62 }
 0x9b2   : > { %v7987_v20 = vpop.eup %5693  ;;  %v4130_v9 = vmul.f32 %v5688_v24, %v4129_v57  ;;  %v4156_v46 = vmul.f32 %v7980_v5, %v7951_v31  ;;  %v8001_v37 = vadd.f32 1e-05, %v4088_v35  ;;  %vm4162_vm14 = vweird.f32 %v7980_v5 }
 0x9b3   : > { %v7994_v54 = vpop.eup %5695  ;;  %4331 = vst [vmem:[#allocation2 + $0x30] sm:$0xff] %v7983_v15  ;;  %v4150_v12 = vmul.f32 %v5690_v22, %v4149_v17  ;;  %v4176_v45 = vmul.f32 %v7987_v20, %v7953_v4  ;;  %5697 = vrsqrt.f32 %v7985_v51  ;;  %vm4182_vm15 = vweird.f32 %v7987_v20  ;;  %vm4163_vm1 = vmor %vm4161_vm13, %vm4162_vm14 }
 0x9b4   : > { %v4134_v48 = vsel %vm4133_vm11, %v5688_v24, %v4130_v9  ;;  %v4157_v49 = vmul.f32 %v7980_v5, %v4156_v46  ;;  %v4136_v19 = vmul.f32 %v7994_v54, %v7955_v14  ;;  %5699 = vrsqrt.f32 %v7992_v16  ;;  %vm4183_vm4 = vmor %vm4181_vm2, %vm4182_vm15 }
 0x9b5   : > { %v4276_v26 = vmul.f32 %v4134_v48, %v7851_v56  ;;  %v4154_v1 = vsel %vm4153_vm12, %v5690_v22, %v4150_v12  ;;  %v4177_v60 = vmul.f32 %v7987_v20, %v4176_v45  ;;  %5701 = vrsqrt.f32 %v8001_v37 }
 0x9b6   : > { %v4278_v28 = vmul.f32 %v4154_v1, %v7853_v30  ;;  %v4158_v8 = vmul.f32 0.5, %v4157_v49  ;;  %v4137_v41 = vmul.f32 %v7994_v54, %v4136_v19  ;;  %v4072_v33 = vpop.xlane.xlu1 %4071  ;;  %vm4142_vm0 = vweird.f32 %v7994_v54 }
 0x9b7   : > { %v4296_v52 = vmul.f32 %v7962_v13, %v4276_v26  ;;  %v4178_v2 = vmul.f32 0.5, %v4177_v60  ;;  %v4068_v56 = vpop.xlane.xlu0 %4067  ;;  %v4093_v44 = vmul.f32 %v4072_v33, %v7392_v42  ;;  %vm4143_vm5 = vmor %vm4141_vm3, %vm4142_vm0  ;;  %vm4191_vm7 = vweird.f32 %v7985_v51 }
 0x9b8   : > { %v4298_v24 = vmul.f32 %v7962_v13, %v4278_v28  ;;  %v4159_v22 = vsub.f32 1.5, %v4158_v8  ;;  %v4138_v21 = vmul.f32 0.5, %v4137_v41  ;;  %v4091_v47 = vmul.f32 %v4068_v56, %v7392_v42 }
 0x9b9   : > { %v5698_v30 = vpop.eup %5697  ;;  %v8020_v55 = vadd.f32 %v7972_v18, %v4296_v52  ;;  %v4179_v59 = vsub.f32 1.5, %v4178_v2  ;;  %v8042_v0 = vadd.f32 1e-05, %v4093_v44  ;;  %vm4211_vm11 = vweird.f32 %v7992_v16 }
 0x9ba   : > { %v8025_v38 = vadd.f32 %v7972_v18, %v4298_v24  ;;  %v4160_v53 = vmul.f32 %v7980_v5, %v4159_v22  ;;  %v4139_v34 = vsub.f32 1.5, %v4138_v21  ;;  %v4186_v25 = vmul.f32 %v5698_v30, %v7985_v51  ;;  %v5700_v23 = vpop.eup %5699 }
 0x9bb   : > { %4332 = vst [vmem:[#allocation2] sm:$0xff] %v8020_v55  ;;  %v4180_v32 = vmul.f32 %v7987_v20, %v4179_v59  ;;  %v5702_v31 = vpop.eup %5701  ;;  %v4206_v14 = vmul.f32 %v5700_v23, %v7992_v16  ;;  %v8049_v35 = vadd.f32 1e-05, %v4091_v47  ;;  %vm4192_vm6 = vweird.f32 %v5698_v30 }
 0x9bc   : > { %4334 = vst [vmem:[#allocation2 + $0x18] sm:$0xff] %v8025_v38  ;;  %v4164_v27 = vsel %vm4163_vm1, %v7980_v5, %v4160_v53  ;;  %v4140_v3 = vmul.f32 %v7994_v54, %v4139_v34  ;;  %v4187_v62 = vmul.f32 %v5698_v30, %v4186_v25  ;;  %v4166_v46 = vmul.f32 %v5702_v31, %v8001_v37  ;;  %vm4193_vm8 = vmor %vm4191_vm7, %vm4192_vm6 }
 0x9bd   : > { %v4279_v57 = vmul.f32 %v4164_v27, %v7868_v29  ;;  %v4184_v4 = vsel %vm4183_vm4, %v7987_v20, %v4180_v32  ;;  %v4207_v20 = vmul.f32 %v5700_v23, %v4206_v14  ;;  %5703 = vrsqrt.f32 %v8042_v0 }
 0x9be   : > { %v4281_v5 = vmul.f32 %v4184_v4, %v7871_v10  ;;  %v4144_v17 = vsel %vm4143_vm5, %v7994_v54, %v4140_v3  ;;  %v4188_v9 = vmul.f32 0.5, %v4187_v62  ;;  %v4167_v49 = vmul.f32 %v5702_v31, %v4166_v46 }
 0x9bf   : > { %v4299_v12 = vmul.f32 %v7962_v13, %v4279_v57  ;;  %v4277_v29 = vmul.f32 %v4144_v17, %v7874_v63  ;;  %v4074_v19 = vpop.xlane.xlu0 %4073  ;;  %v4208_v26 = vmul.f32 0.5, %v4207_v20  ;;  %5705 = vrsqrt.f32 %v8049_v35 }
 0x9c0   : > { %v4301_v45 = vmul.f32 %v7962_v13, %v4281_v5  ;;  %v4189_v48 = vsub.f32 1.5, %v4188_v9  ;;  %v4168_v60 = vmul.f32 0.5, %v4167_v49  ;;  %vm4212_vm9 = vweird.f32 %v5700_v23 }
 0x9c1   : > { %v8059_v10 = vadd.f32 %v7972_v18, %v4299_v12  ;;  %v4297_v54 = vmul.f32 %v7962_v13, %v4277_v29  ;;  %v4209_v8 = vsub.f32 1.5, %v4208_v26  ;;  %v4094_v41 = vmul.f32 %v4074_v19, %v7392_v42  ;;  %vm4213_vm12 = vmor %vm4211_vm11, %vm4212_vm9 }
 0x9c2   : > { %v8064_v1 = vadd.f32 %v7972_v18, %v4301_v45  ;;  %v4190_v63 = vmul.f32 %v5698_v30, %v4189_v48  ;;  %v4169_v33 = vsub.f32 1.5, %v4168_v60  ;;  %vm4172_vm10 = vweird.f32 %v5702_v31 }
 0x9c3   : > { %4335 = vst [vmem:[#allocation2 + $0x50] sm:$0xff] %v8059_v10  ;;  %v8069_v28 = vadd.f32 %v7972_v18, %v4297_v54  ;;  %v4210_v2 = vmul.f32 %v5700_v23, %v4209_v8  ;;  %v4110_v56 = vadd.f32 1e-05, %v4094_v41  ;;  %v5704_v24 = vpop.eup %5703  ;;  %vm4171_vm13 = vweird.f32 %v8001_v37 }
 0x9c4   : > { %4337 = vst [vmem:[#allocation2 + $0x8] sm:$0xff] %v8064_v1  ;;  %v4194_v51 = vsel %vm4193_vm8, %v5698_v30, %v4190_v63  ;;  %v4170_v22 = vmul.f32 %v5702_v31, %v4169_v33  ;;  %vm4173_vm14 = vmor %vm4171_vm13, %vm4172_vm10  ;;  %v4216_v30 = vmul.f32 %v5704_v24, %v8042_v0  ;;  %vm4222_vm15 = vweird.f32 %v5704_v24 }
 0x9c5   : > { %4333 = vst [vmem:[#allocation2 + $0x58] sm:$0xff] %v8069_v28  ;;  %v4282_v52 = vmul.f32 %v4194_v51, %v7886_v43  ;;  %v4214_v59 = vsel %vm4213_vm12, %v5700_v23, %v4210_v2  ;;  %v5706_v44 = vpop.eup %5705  ;;  %5707 = vrsqrt.f32 %v4110_v56  ;;  %vm4221_vm0 = vweird.f32 %v8042_v0 }
 0x9c6   : > { %v4284_v47 = vmul.f32 %v4214_v59, %v7889_v7  ;;  %v4174_v53 = vsel %vm4173_vm14, %v5702_v31, %v4170_v22  ;;  %v4217_v34 = vmul.f32 %v5704_v24, %v4216_v30  ;;  %v4196_v25 = vmul.f32 %v5706_v44, %v8049_v35  ;;  %vm4223_vm2 = vmor %vm4221_vm0, %vm4222_vm15 }
 0x9c7   : > { %v4302_v21 = vmul.f32 %v7962_v13, %v4282_v52  ;;  %v4280_v16 = vmul.f32 %v4174_v53, %v7892_v50  ;;  %vm4202_vm1 = vweird.f32 %v5706_v44  ;;  %vm4201_vm3 = vweird.f32 %v8049_v35 }
 0x9c8   : > { %v4304_v37 = vmul.f32 %v7962_v13, %v4284_v47  ;;  %v4218_v23 = vmul.f32 0.5, %v4217_v34  ;;  %v4197_v27 = vmul.f32 %v5706_v44, %v4196_v25  ;;  %vm4203_vm4 = vmor %vm4201_vm3, %vm4202_vm1  ;;  %vm4231_vm6 = vweird.f32 %v4110_v56 }
 0x9c9   : > { %v8082_v43 = vadd.f32 %v7972_v18, %v4302_v21  ;;  %v4300_v32 = vmul.f32 %v7962_v13, %v4280_v16 }
 0x9ca   : > { %v8090_v7 = vadd.f32 %v7972_v18, %v4304_v37  ;;  %v4219_v62 = vsub.f32 1.5, %v4218_v23  ;;  %v4198_v50 = vmul.f32 0.5, %v4197_v27 }
 0x9cb   : > { %4338 = vst [vmem:[#allocation2 + $0x48] sm:$0xff] %v8082_v43  ;;  %v8093_v3 = vadd.f32 %v7972_v18, %v4300_v32  ;;  %v5708_v31 = vpop.eup %5707 }
 0x9cc   : > { %4340 = vst [vmem:[#allocation2 + $0x20] sm:$0xff] %v8090_v7  ;;  %v4220_v57 = vmul.f32 %v5704_v24, %v4219_v62  ;;  %v4199_v4 = vsub.f32 1.5, %v4198_v50  ;;  %v4226_v14 = vmul.f32 %v5708_v31, %v4110_v56  ;;  %vm4232_vm5 = vweird.f32 %v5708_v31 }
 0x9cd   : > { %4336 = vst [vmem:[#allocation2 + $0x68] sm:$0xff] %v8093_v3  ;;  %vm4233_vm7 = vmor %vm4231_vm6, %vm4232_vm5 }
 0x9ce   : > { %v4224_v5 = vsel %vm4223_vm2, %v5704_v24, %v4220_v57  ;;  %v4200_v17 = vmul.f32 %v5706_v44, %v4199_v4  ;;  %v4227_v9 = vmul.f32 %v5708_v31, %v4226_v14 }
 0x9cf   : > { %v4285_v46 = vmul.f32 %v4224_v5, %v7903_v58 }
 0x9d0   : > { %v4204_v12 = vsel %vm4203_vm4, %v5706_v44, %v4200_v17  ;;  %v4228_v29 = vmul.f32 0.5, %v4227_v9 }
 0x9d1   : > { %v4305_v20 = vmul.f32 %v7962_v13, %v4285_v46  ;;  %v4283_v0 = vmul.f32 %v4204_v12, %v7906_v36 }
 0x9d2   : > { %v4229_v45 = vsub.f32 1.5, %v4228_v29 }
 0x9d3   : > { %v8103_v48 = vadd.f32 %v7972_v18, %v4305_v20  ;;  %v4303_v49 = vmul.f32 %v7962_v13, %v4283_v0 }
 0x9d4   : > { %v4230_v19 = vmul.f32 %v5708_v31, %v4229_v45 }
 0x9d5   : > { %4341 = vst [vmem:[#allocation2 + $0x10] sm:$0xff] %v8103_v48  ;;  %v8108_v58 = vadd.f32 %v7972_v18, %v4303_v49 }
 0x9d6   : > { %v4234_v35 = vsel %vm4233_vm7, %v5708_v31, %v4230_v19 }
 0x9d7   : > { %4339 = vst [vmem:[#allocation2 + $0x40] sm:$0xff] %v8108_v58  ;;  %v4286_v36 = vmul.f32 %v4234_v35, %v7914_v11 }
 0x9d9   : > { %v4306_v54 = vmul.f32 %v7962_v13, %v4286_v36 }
 0x9db   : > { %v8114_v26 = vadd.f32 %v7972_v18, %v4306_v54 }
 0x9dd   : > { %4342 = vst [vmem:[#allocation2 + $0x38] sm:$0xff] %v8114_v26 }
 0xa00   : > { %v4076_v63 = vpop.xlane.xlu2 %4075 }
 0xa01   : > { %v4095_v60 = vmul.f32 %v4076_v63, %v7392_v42 }
 0xa03   : > { %v4111_v8 = vadd.f32 1e-05, %v4095_v60 }
 0xa05   : > { %5709 = vrsqrt.f32 %v4111_v8  ;;  %vm4241_vm9 = vweird.f32 %v4111_v8 }
 0xa08   : > { %v4078_v41 = vpop.xlane.xlu1 %4077 }
 0xa09   : > { %v4096_v51 = vmul.f32 %v4078_v41, %v7392_v42 }
 0xa0b   : > { %v5710_v33 = vpop.eup %5709  ;;  %v4112_v52 = vadd.f32 1e-05, %v4096_v51 }
 0xa0c   : > { %v4236_v2 = vmul.f32 %v5710_v33, %v4111_v8  ;;  %vm4242_vm8 = vweird.f32 %v5710_v33 }
 0xa0d   : > { %5711 = vrsqrt.f32 %v4112_v52  ;;  %vm4243_vm10 = vmor %vm4241_vm9, %vm4242_vm8  ;;  %vm4251_vm12 = vweird.f32 %v4112_v52 }
 0xa0e   : > { %v4237_v11 = vmul.f32 %v5710_v33, %v4236_v2 }
 0xa10   : > { %v4238_v56 = vmul.f32 0.5, %v4237_v11  ;;  %v4080_v24 = vpop.xlane.xlu0 %4079 }
 0xa11   : > { %v4097_v22 = vmul.f32 %v4080_v24, %v7392_v42 }
 0xa12   : > { %v4239_v21 = vsub.f32 1.5, %v4238_v56 }
 0xa13   : > { %v5712_v59 = vpop.eup %5711  ;;  %v4113_v30 = vadd.f32 1e-05, %v4097_v22 }
 0xa14   : > { %v4240_v44 = vmul.f32 %v5710_v33, %v4239_v21  ;;  %v4246_v47 = vmul.f32 %v5712_v59, %v4112_v52  ;;  %vm4252_vm11 = vweird.f32 %v5712_v59 }
 0xa15   : > { %5713 = vrsqrt.f32 %v4113_v30  ;;  %vm4253_vm13 = vmor %vm4251_vm12, %vm4252_vm11  ;;  %vm4261_vm15 = vweird.f32 %v4113_v30 }
 0xa16   : > { %v4244_v53 = vsel %vm4243_vm10, %v5710_v33, %v4240_v44  ;;  %v4247_v16 = vmul.f32 %v5712_v59, %v4246_v47 }
 0xa17   : > { %v4287_v34 = vmul.f32 %v4244_v53, %v7920_v40 }
 0xa18   : > { %v4248_v25 = vmul.f32 0.5, %v4247_v16 }
 0xa19   : > { %v4307_v37 = vmul.f32 %v7962_v13, %v4287_v34  ;;  %v4082_v32 = vpop.xlane.xlu2 %4081 }
 0xa1a   : > { %v4249_v23 = vsub.f32 1.5, %v4248_v25  ;;  %v4098_v27 = vmul.f32 %v4082_v32, %v7392_v42 }
 0xa1b   : > { %v5714_v62 = vpop.eup %5713  ;;  %v4327_v50 = vadd.f32 %v7972_v18, %v4307_v37 }
 0xa1c   : > { %v4250_v31 = vmul.f32 %v5712_v59, %v4249_v23  ;;  %v4256_v57 = vmul.f32 %v5714_v62, %v4113_v30  ;;  %v4114_v4 = vadd.f32 1e-05, %v4098_v27  ;;  %vm4262_vm14 = vweird.f32 %v5714_v62 }
 0xa1d   : > { %4343 = vst [vmem:[#allocation2 + $0x60] sm:$0xff] %v4327_v50  ;;  %vm4263_vm0 = vmor %vm4261_vm15, %vm4262_vm14 }
 0xa1e   : > { %v4254_v14 = vsel %vm4253_vm13, %v5712_v59, %v4250_v31  ;;  %v4257_v5 = vmul.f32 %v5714_v62, %v4256_v57  ;;  %5715 = vrsqrt.f32 %v4114_v4  ;;  %vm4271_vm2 = vweird.f32 %v4114_v4 }
 0xa1f   : > { %v4288_v40 = vmul.f32 %v4254_v14, %v7926_v39 }
 0xa20   : > { %v4258_v17 = vmul.f32 0.5, %v4257_v5 }
 0xa21   : > { %v4308_v9 = vmul.f32 %v7962_v13, %v4288_v40 }
 0xa22   : > { %v4259_v46 = vsub.f32 1.5, %v4258_v17 }
 0xa23   : > { %v4328_v42 = vadd.f32 %v7972_v18, %v4308_v9 }
 0xa24   : > { %v5716_v12 = vpop.eup %5715  ;;  %v4260_v29 = vmul.f32 %v5714_v62, %v4259_v46 }
 0xa25   : > { %4344 = vst [vmem:[#allocation2 + $0x70] sm:$0xff] %v4328_v42  ;;  %v4266_v20 = vmul.f32 %v5716_v12, %v4114_v4  ;;  %vm4272_vm1 = vweird.f32 %v5716_v12 }
 0xa26   : > { %v4264_v0 = vsel %vm4263_vm0, %v5714_v62, %v4260_v29  ;;  %vm4273_vm3 = vmor %vm4271_vm2, %vm4272_vm1 }
 0xa27   : > { %v4289_v45 = vmul.f32 %v4264_v0, %v7933_v6  ;;  %v4267_v49 = vmul.f32 %v5716_v12, %v4266_v20 }
 0xa29   : > { %v4309_v19 = vmul.f32 %v7962_v13, %v4289_v45  ;;  %v4268_v39 = vmul.f32 0.5, %v4267_v49 }
 0xa2b   : > { %v4329_v35 = vadd.f32 %v7972_v18, %v4309_v19  ;;  %v4269_v36 = vsub.f32 1.5, %v4268_v39 }
 0xa2d   : > { %4345 = vst [vmem:[#allocation2 + $0x78] sm:$0xff] %v4329_v35  ;;  %v4270_v54 = vmul.f32 %v5716_v12, %v4269_v36 }
 0xa2f   : > { %v4274_v63 = vsel %vm4273_vm3, %v5716_v12, %v4270_v54 }
 0xa30   : > { %v4290_v60 = vmul.f32 %v4274_v63, %v7943_v61 }
 0xa32   : > { %v4310_v8 = vmul.f32 %v7962_v13, %v4290_v60  ;;  %4350 = sbr.rel (%p4964_p10) target bundleno = 2631 (0xa47), region = 84 }
 0xa34   : > { %v4330_v41 = vadd.f32 %v7972_v18, %v4310_v8 }
 0xa36   : > { %4346 = vst [vmem:[#allocation2 + $0x28] sm:$0xff] %v4330_v41 }
 0xa37   : > { %4351 = vst [vmem:[%s6147_s23] sm:$0xff] %v7983_v15 }
 0xa38   : > { %4352 = vst [vmem:[%s6147_s23 + $0x8] sm:$0xff] %v8020_v55 }
 0xa39   : > { %4353 = vst [vmem:[%s6147_s23 + $0x10] sm:$0xff] %v8069_v28 }
 0xa3a   : > { %4354 = vst [vmem:[%s6147_s23 + $0x18] sm:$0xff] %v8025_v38 }
 0xa3b   : > { %4355 = vst [vmem:[%s6147_s23 + $0x20] sm:$0xff] %v8059_v10 }
 0xa3c   : > { %4356 = vst [vmem:[%s6147_s23 + $0x28] sm:$0xff] %v8093_v3 }
 0xa3d   : > { %4357 = vst [vmem:[%s6147_s23 + $0x30] sm:$0xff] %v8064_v1 }
 0xa3e   : > { %4358 = vst [vmem:[%s6147_s23 + $0x38] sm:$0xff] %v8082_v43 }
 0xa3f   : > { %4359 = vst [vmem:[%s6147_s23 + $0x40] sm:$0xff] %v8108_v58 }
 0xa40   : > { %4360 = vst [vmem:[%s6147_s23 + $0x48] sm:$0xff] %v8090_v7 }
 0xa41   : > { %4361 = vst [vmem:[%s6147_s23 + $0x50] sm:$0xff] %v8103_v48 }
 0xa42   : > { %4362 = vst [vmem:[%s6147_s23 + $0x58] sm:$0xff] %v8114_v26 }
 0xa43   : > { %4363 = vst [vmem:[%s6147_s23 + $0x60] sm:$0xff] %v4327_v50 }
 0xa44   : > { %4364 = vst [vmem:[%s6147_s23 + $0x68] sm:$0xff] %v4328_v42 }
 0xa45   : > { %4365 = vst [vmem:[%s6147_s23 + $0x70] sm:$0xff] %v4329_v35 }
 0xa46   : > { %4366 = vst [vmem:[%s6147_s23 + $0x78] sm:$0xff] %v4330_v41 }
 0xa47 PF: > { %s8342_s5 = sld [smem:[#allocation16_spill]]  ;;  %s4380_s6 = sshll.u32 %s6147_s23, 4  ;;  %s4381_s6 = int_to_ptr.vmem [resolvable:$true] %s4380_s6 }
 0xa48   : > { %s8343_s14 = sld [smem:[#allocation12_spill]] }
 0xa49   : > { %s8345_s2 = sld [smem:[#allocation52_spill]] }
 0xa4d   : > { %s5054_s26 = sshll.u32 %s8342_s5, 7 }
 0xa4e   : > { %s8346_s15 = sand.u32 1, %s8343_s14  }
 0xa4f   : > { %s4379_s3 = scalar_lea.hbm %s8345_s2, %s5054_s26  ;;  %s4368_s19 = scalar_lea.sflag [#allocation7], %s8346_s15 }
 0xa50   : > { %s4382_s7 = sshll.u32 %s4379_s3, 4  ;;  %s5783_s10 = scalar_lea.hbm %s8345_s2, 256  ;;  %s4383_s7 = int_to_ptr.hbm [resolvable:$true] %s4382_s7 }
 0xa51   : > { %s5777_s13 = sshra.s32 %s4383_s7, 4  ;;  %s5778_s13 = int_to_ptr.hbm [resolvable:$true] %s5777_s13 }
 0xa52   : > { %s5779_s24 = scalar_lea.hbm %s5778_s13, 128  ;;  %p5784_p1 = scmp.lt.s32.totalorder %s5778_s13, %s8345_s2 }
 0xa53   : > { %p5780_p11 = scmp.ne.s32.totalorder %s5778_s13, %s5779_s24  ;;  %p5785_p4 = scmp.lt.s32.totalorder %s5783_s10, %s5779_s24 }
 0xa55   : > { %p5781_p13 = pnand %p5780_p11, %p6053_p12  ;;  %p5786_p5 = por %p5785_p4, %p5784_p1 }
 0xa57   : > { %p5782_p0 = pneg %p5781_p13 }
 0xa59   : > { %p5787_p6 = pnand %p5786_p5, %p5782_p0 }
 0xa5b   : > { %5790 = shalt.err (!%p5787_p6)
}
 0xa5c   : > { %s5893_s23 = smov 128   ;;  %s5894_s22 = smov 8  }
 0xa5d   : > { %5161 = dma.vmem_to_hbm [thread:$0]  (%p6053_p12), %s4381_s6, 2048, %s4383_s7, %s4368_s19, %s5893_s23, %s5893_s23, %s5894_s22  }
 0xa5e PF: > { %s8347_s12 = sld [smem:[#allocation19_spill]] }
 0xa5f   : > { %s8348_s29 = sld [smem:[#allocation11_spill]] }
 0xa64   : > { %p5172_p7 = scmp.ge.s32.totalorder %s8347_s12, 2 }
 0xa65   : > { %s4397_s18 = sand.u32 1, %s8348_s29  }
 0xa66   : > { %p5168_p3 = pnand %p5172_p7, %p6061_p2  ;;  %s4398_s11 = scalar_lea.sflag [#allocation7], %s4397_s18 }
 0xa68   : > { %p5169_p9 = pneg %p5168_p3 }
 0xa6a   : > { %5840 = dma.done.wait (%p5169_p9), %s4398_s11, 2048  }
 0xa6b   : > { %5842 = vsyncadd (%p5169_p9), %s4398_s11, 4294965248  ;;  %s29_s18 = sadd.s32 1, %s8347_s12   ;;  %s8350_s25 = sld [smem:[#allocation12_spill]] }
 0xa6c   : > { %p26_p8 = scmp.ge.s32.totalorder %s29_s18, 6   ;;  %s8351_s26 = sld [smem:[#allocation13_spill]] }
 0xa6d   : > { %s8352_s27 = sld [smem:[#allocation23_spill]] }
 0xa6e   : > { %s8353_s28 = sld [smem:[#allocation14_spill]] }
 0xa6f   : > { %s8354_s29 = sld [smem:[#allocation15_spill]] }
 0xa70   : > { %s8355_s30 = sld [smem:[#allocation22_spill]]  ;;  %28 = sbr.rel (!%p26_p8) target bundleno = 22 (0x16), region = 161 }
 0xa71   : > { %s8356_s14 = sld [smem:[#allocation17_spill]] }
 0xa72   : > { %s8357_s15 = sld [smem:[#allocation18_spill]] }
 0xa73   : > { %s8358_s16 = sld [smem:[#allocation20_spill]] }
 0xa74   : > { %s8359_s17 = sld [smem:[#allocation21_spill]] }
 0xa75   :  { %4404 = vsyncpa [#allocation6], 1 }
 0xa76   :  { %4406 = vsyncpa [#allocation6 + $0x1], 1 }
 0xa77   :  { %4407 = vsyncpa [#allocation7], 1 }
 0xa78   :  { %4409 = vsyncpa [#allocation7 + $0x1], 1 }

</bundles_post_ra>
